<compile_context>
chip_gen: v7x
topology: tpu7x:2x2x1
jax: 0.10.0
libtpu: 0.0.40
codegen_flags: <defaults>
</compile_context>

<pallas_src>
import functools
import math

import jax
import jax.numpy as jnp
from jax import lax
from jax.experimental import pallas as pl
from jax.experimental.pallas import tpu as pltpu


def _layernorm(x, gamma, beta, eps):
    # x: (S, E) f32; gamma/beta: (1, E) f32
    mean = jnp.mean(x, axis=-1, keepdims=True)
    var = jnp.mean((x - mean) ** 2, axis=-1, keepdims=True)
    return (x - mean) * lax.rsqrt(var + eps) * gamma + beta


def encoder_layer_kernel(
    x_ref, mask_ref,
    wq_ref, bq_ref, wk_ref, bk_ref, wv_ref, bv_ref, wo_ref, bo_ref,
    g1_ref, be1_ref,
    w1_ref, b1_ref, w2_ref, b2_ref,
    g2_ref, be2_ref,
    out_ref, prob_ref,
    ctx_ref,                      # scratch: (S, E) bf16 per-head context buffer
    *, n_head, eps,
):
    x = x_ref[0]                  # (S, E) f32
    S, E = x.shape
    dk = E // n_head
    scale = 1.0 / math.sqrt(dk)

    x_bf = x.astype(jnp.bfloat16)

    # ---- QKV projections: bf16 operands on the MXU, f32 accumulation ----
    q = jnp.dot(x_bf, wq_ref[...], preferred_element_type=jnp.float32) + bq_ref[...]
    k = jnp.dot(x_bf, wk_ref[...], preferred_element_type=jnp.float32) + bk_ref[...]
    v = jnp.dot(x_bf, wv_ref[...], preferred_element_type=jnp.float32) + bv_ref[...]
    # Fold 1/sqrt(dk) into q once: one (S,E) multiply instead of H x (S,S).
    q = (q * scale).astype(jnp.bfloat16)
    k = k.astype(jnp.bfloat16)
    v = v.astype(jnp.bfloat16)

    # mask_ref[0] is (1, S) (key-pad vector) or (S, S) (dense); both broadcast
    # against the (S, S) score tile.  Hoisted once; reused by every head.
    neg = mask_ref[0] * 1e9

    for h in range(n_head):                        # static loop, n_head is small
        lo = h * dk
        qh = q[:, lo:lo + dk]                      # (S, dk) bf16
        kh = k[:, lo:lo + dk]
        vh = v[:, lo:lo + dk]

        # scores = qh @ kh^T without materializing a transpose: contract the
        # last dim of both operands (MXU consumes the transposed RHS).
        scores = lax.dot_general(
            qh, kh, (((1,), (1,)), ((), ())),
            preferred_element_type=jnp.float32)    # (S, S) f32
        scores = scores - neg

        # numerically-stable softmax in f32; reciprocal on the EUP slot.
        # (approx reciprocal: rows sum to 1 within ~1e-3 relative error)
        m = jnp.max(scores, axis=-1, keepdims=True)
        e = jnp.exp(scores - m)
        denom = jnp.sum(e, axis=-1, keepdims=True)
        probs = e * pl.reciprocal(denom, approx=True)        # (S, S) f32

        # store this head's probabilities now; nothing stays live across heads
        prob_ref[0, h, :, :] = probs.astype(prob_ref.dtype)

        # head context -> bf16 scratch columns [lo:lo+dk]
        ctx_ref[:, lo:lo + dk] = jnp.dot(
            probs.astype(jnp.bfloat16), vh,
            preferred_element_type=jnp.float32).astype(jnp.bfloat16)

    # single K=E output projection (full MXU depth) instead of H folded K=dk matmuls
    attn_out = jnp.dot(ctx_ref[...], wo_ref[...],
                       preferred_element_type=jnp.float32) + bo_ref[...]

    # ---- residual + LayerNorm 1 (f32) ----
    out1 = _layernorm(x + attn_out, g1_ref[...], be1_ref[...], eps)

    # ---- positional feed-forward: Linear -> ReLU -> Linear ----
    h1 = jnp.dot(out1.astype(jnp.bfloat16), w1_ref[...],
                 preferred_element_type=jnp.float32) + b1_ref[...]
    h1 = jnp.maximum(h1, 0.0)
    ffn = jnp.dot(h1.astype(jnp.bfloat16), w2_ref[...],
                  preferred_element_type=jnp.float32) + b2_ref[...]

    # ---- residual + LayerNorm 2 (f32) ----
    out_ref[0] = _layernorm(ffn + out1, g2_ref[...], be2_ref[...], eps)


def encoder_layer(enc_input, enc_mask, params, *, n_head, eps,
                  prob_dtype=jnp.float32):
    B, S, E = enc_input.shape
    d_ff = params["w1"].shape[1]

    # Cast matmul weights to bf16 once at the boundary (halves weight DMA);
    # biases and LayerNorm params stay f32.
    bf = lambda w: w.astype(jnp.bfloat16)
    wq, wk, wv, wo = bf(params["wq"]), bf(params["wk"]), bf(params["wv"]), bf(params["wo"])
    w1, w2 = bf(params["w1"]), bf(params["w2"])

    # Mask: (B, S) key-pad vector (cheap, x S less DMA) or dense (B, S, S).
    if enc_mask.ndim == 2:
        mask_arr = enc_mask.astype(jnp.float32)[:, None, :]           # (B, 1, S)
        mask_spec = pl.BlockSpec((1, 1, S), lambda b: (b, 0, 0))
    elif enc_mask.ndim == 3:
        mask_arr = enc_mask.astype(jnp.float32)                       # (B, S, S)
        mask_spec = pl.BlockSpec((1, S, S), lambda b: (b, 0, 0))
    else:
        raise ValueError(f"enc_mask must be (B,S) or (B,S,S), got {enc_mask.shape}")

    operands = (
        enc_input, mask_arr,
        wq, params["bq"], wk, params["bk"],
        wv, params["bv"], wo, params["bo"],
        params["g1"], params["be1"],
        w1, params["b1"], w2, params["b2"],
        params["g2"], params["be2"],
    )

    out_shape = (
        jax.ShapeDtypeStruct((B, S, E), jnp.float32),
        jax.ShapeDtypeStruct((B, n_head, S, S), prob_dtype),
    )

    # advisory cost estimate so XLA schedules correctly around the fused call
    flops = B * (8 * S * E * E + 4 * S * S * E + 4 * S * E * d_ff)
    transcendentals = B * S * (n_head * S + n_head + 2)
    bytes_accessed = (
        B * S * E * 4 * 2                                   # enc_input in + enc_output out
        + int(mask_arr.size) * 4                            # mask
        + B * n_head * S * S * jnp.dtype(prob_dtype).itemsize   # attn_prob out
        + (4 * E * E + 2 * E * d_ff) * 2                    # bf16 weights
        + (5 * E + d_ff + 4 * E) * 4                        # biases + LN params (f32)
    )

    kernel = functools.partial(encoder_layer_kernel, n_head=n_head, eps=eps)

    def _call(single_buffer_weights):
        # Resident (constant-index) parameter blocks: single-buffer them when the
        # JAX build supports pipeline_mode (their block index never changes, so
        # double-buffering only wastes VMEM — matters at realistic E/d_ff on v7x).
        if single_buffer_weights:
            resident = lambda shape: pl.BlockSpec(
                shape, lambda b: (0,) * len(shape),
                pipeline_mode=pl.Buffered(buffer_count=1))
        else:
            resident = lambda shape: pl.BlockSpec(shape, lambda b: (0,) * len(shape))

        in_specs = [
            pl.BlockSpec((1, S, E), lambda b: (b, 0, 0)),   # enc_input
            mask_spec,                                       # mask (key-pad or dense)
            resident((E, E)), resident((1, E)),              # wq, bq
            resident((E, E)), resident((1, E)),              # wk, bk
            resident((E, E)), resident((1, E)),              # wv, bv
            resident((E, E)), resident((1, E)),              # wo, bo
            resident((1, E)), resident((1, E)),              # ln1 gamma, beta
            resident((E, d_ff)), resident((1, d_ff)),        # w1, b1
            resident((d_ff, E)), resident((1, E)),           # w2, b2
            resident((1, E)), resident((1, E)),              # ln2 gamma, beta
        ]
        out_specs = [
            pl.BlockSpec((1, S, E), lambda b: (b, 0, 0)),
            pl.BlockSpec((1, n_head, S, S), lambda b: (b, 0, 0, 0)),
        ]

        return pl.pallas_call(
            kernel,
            out_shape=out_shape,
            grid_spec=pltpu.PrefetchScalarGridSpec(
                num_scalar_prefetch=0,
                grid=(B,),
                in_specs=in_specs,
                out_specs=out_specs,
                scratch_shapes=[pltpu.VMEM((S, E), jnp.bfloat16)],
            ),
            compiler_params=pltpu.CompilerParams(
                dimension_semantics=("parallel",),           # batch steps independent
                vmem_limit_bytes=64 * 1024 * 1024,
            ),
            cost_estimate=pl.CostEstimate(
                flops=flops, transcendentals=transcendentals,
                bytes_accessed=bytes_accessed),
        )(*operands)

    try:
        return _call(True)
    except Exception:
        # pipeline_mode=pl.Buffered(1) not supported on this JAX build; fall back
        # to default double buffering (correctness unchanged).
        return _call(False)


def encoder_layer_reference(enc_input, enc_mask, params, *, n_head, eps):
    """Pure-JAX f32 reference (dense (B,S,S) mask) for sanity checking."""
    B, S, E = enc_input.shape
    dk = E // n_head
    x = enc_input
    q = x @ params["wq"] + params["bq"]
    k = x @ params["wk"] + params["bk"]
    v = x @ params["wv"] + params["bv"]
    qh = q.reshape(B, S, n_head, dk).transpose(0, 2, 1, 3)
    kh = k.reshape(B, S, n_head, dk).transpose(0, 2, 1, 3)
    vh = v.reshape(B, S, n_head, dk).transpose(0, 2, 1, 3)
    scores = jnp.einsum("bhqd,bhkd->bhqk", qh, kh) / math.sqrt(dk)
    scores = scores - enc_mask[:, None, :, :] * 1e9
    probs = jax.nn.softmax(scores, axis=-1)
    ctx = jnp.einsum("bhqk,bhkd->bhqd", probs, vh)
    ctx = ctx.transpose(0, 2, 1, 3).reshape(B, S, E)
    attn_out = ctx @ params["wo"] + params["bo"]

    def ln(y, g, b):
        mu = jnp.mean(y, axis=-1, keepdims=True)
        var = jnp.mean((y - mu) ** 2, axis=-1, keepdims=True)
        return (y - mu) * lax.rsqrt(var + eps) * g + b

    out1 = ln(x + attn_out, params["g1"], params["be1"])
    h1 = jnp.maximum(out1 @ params["w1"] + params["b1"], 0.0)
    ffn = h1 @ params["w2"] + params["b2"]
    out2 = ln(ffn + out1, params["g2"], params["be2"])
    return out2, probs


def make_params(key, emb_dim, d_ff):
    keys = jax.random.split(key, 8)
    s_e = 1.0 / math.sqrt(emb_dim)
    s_f = 1.0 / math.sqrt(d_ff)
    return {
        "wq": jax.random.normal(keys[0], (emb_dim, emb_dim), jnp.float32) * s_e,
        "wk": jax.random.normal(keys[1], (emb_dim, emb_dim), jnp.float32) * s_e,
        "wv": jax.random.normal(keys[2], (emb_dim, emb_dim), jnp.float32) * s_e,
        "wo": jax.random.normal(keys[3], (emb_dim, emb_dim), jnp.float32) * s_e,
        "w1": jax.random.normal(keys[4], (emb_dim, d_ff), jnp.float32) * s_e,
        "w2": jax.random.normal(keys[5], (d_ff, emb_dim), jnp.float32) * s_f,
        "bq": jnp.zeros((1, emb_dim), jnp.float32),
        "bk": jnp.zeros((1, emb_dim), jnp.float32),
        "bv": jnp.zeros((1, emb_dim), jnp.float32),
        "bo": jnp.zeros((1, emb_dim), jnp.float32),
        "b1": jnp.zeros((1, d_ff), jnp.float32),
        "b2": jnp.zeros((1, emb_dim), jnp.float32),
        "g1": jnp.ones((1, emb_dim), jnp.float32),
        "be1": jnp.zeros((1, emb_dim), jnp.float32),
        "g2": jnp.ones((1, emb_dim), jnp.float32),
        "be2": jnp.zeros((1, emb_dim), jnp.float32),
    }


if __name__ == "__main__":
    B, S, E = 2, 8, 32
    n_head = 4
    d_ff = 64
    eps = 1e-6

    key = jax.random.PRNGKey(0)
    k_x, k_p = jax.random.split(key)

    enc_input = jax.random.normal(k_x, (B, S, E), jnp.float32)

    # key-padding mask: batch 1 has its last 2 key positions masked out (1.0 = pad)
    key_pad = jnp.zeros((B, S), jnp.float32).at[1, -2:].set(1.0)

    params = make_params(k_p, E, d_ff)

    # preferred path: (B, S) key-pad mask
    enc_output, attn_prob = encoder_layer(
        enc_input, key_pad, params, n_head=n_head, eps=eps)
    jax.block_until_ready((enc_output, attn_prob))

    assert enc_output.shape == (B, S, E)
    assert attn_prob.shape == (B, n_head, S, S)
    assert bool(jnp.all(jnp.isfinite(enc_output)))
    assert bool(jnp.all(jnp.isfinite(attn_prob)))

    # dense (B, S, S) mask path (original module semantics) gives identical results
    dense_mask = jnp.broadcast_to(key_pad[:, None, :], (B, S, S)).astype(jnp.float32)
    out_d, prob_d = encoder_layer(
        enc_input, dense_mask, params, n_head=n_head, eps=eps)
    jax.block_until_ready((out_d, prob_d))
    assert float(jnp.max(jnp.abs(out_d - enc_output))) < 1e-5
    assert float(jnp.max(jnp.abs(prob_d - attn_prob))) < 1e-5

    # loose sanity check vs f32 reference (kernel uses bf16 MXU operands)
    ref_out, ref_prob = encoder_layer_reference(
        enc_input, dense_mask, params, n_head=n_head, eps=eps)
    assert float(jnp.max(jnp.abs(enc_output - ref_out))) < 0.3
    assert float(jnp.max(jnp.abs(attn_prob - ref_prob))) < 0.05

    print("KERNEL_OK")
</pallas_src>

<mosaic_0001>
module attributes {stable_mosaic.version = 11 : i64} {
  func.func @encoder_layer_kernel(%arg0: i32, %arg1: memref<1x8x32xf32, #tpu.memory_space<vmem>>, %arg2: memref<1x1x8xf32, #tpu.memory_space<vmem>>, %arg3: memref<32x32xbf16, #tpu.memory_space<vmem>>, %arg4: memref<1x32xf32, #tpu.memory_space<vmem>>, %arg5: memref<32x32xbf16, #tpu.memory_space<vmem>>, %arg6: memref<1x32xf32, #tpu.memory_space<vmem>>, %arg7: memref<32x32xbf16, #tpu.memory_space<vmem>>, %arg8: memref<1x32xf32, #tpu.memory_space<vmem>>, %arg9: memref<32x32xbf16, #tpu.memory_space<vmem>>, %arg10: memref<1x32xf32, #tpu.memory_space<vmem>>, %arg11: memref<1x32xf32, #tpu.memory_space<vmem>>, %arg12: memref<1x32xf32, #tpu.memory_space<vmem>>, %arg13: memref<32x64xbf16, #tpu.memory_space<vmem>>, %arg14: memref<1x64xf32, #tpu.memory_space<vmem>>, %arg15: memref<64x32xbf16, #tpu.memory_space<vmem>>, %arg16: memref<1x32xf32, #tpu.memory_space<vmem>>, %arg17: memref<1x32xf32, #tpu.memory_space<vmem>>, %arg18: memref<1x32xf32, #tpu.memory_space<vmem>>, %arg19: memref<1x8x32xf32, #tpu.memory_space<vmem>>, %arg20: memref<1x4x8x8xf32, #tpu.memory_space<vmem>>, %arg21: memref<8x32xbf16, #tpu.memory_space<vmem>>) attributes {dimension_semantics = [#tpu.dimension_semantics<parallel>], iteration_bounds = array<i64: 2>, scalar_prefetch = 0 : i64, scratch_operands = 1 : i64, tpu.core_type = #tpu.core_type<tc>, window_params = [{transform_indices = @transform_0, window_bounds = array<i64: 1, 8, 32>}, {transform_indices = @transform_1, window_bounds = array<i64: 1, 1, 8>}, {pipeline_mode = #tpu.pipeline_mode<synchronous>, transform_indices = @transform_2, window_bounds = array<i64: 32, 32>}, {pipeline_mode = #tpu.pipeline_mode<synchronous>, transform_indices = @transform_3, window_bounds = array<i64: 1, 32>}, {pipeline_mode = #tpu.pipeline_mode<synchronous>, transform_indices = @transform_4, window_bounds = array<i64: 32, 32>}, {pipeline_mode = #tpu.pipeline_mode<synchronous>, transform_indices = @transform_5, window_bounds = array<i64: 1, 32>}, {pipeline_mode = #tpu.pipeline_mode<synchronous>, transform_indices = @transform_6, window_bounds = array<i64: 32, 32>}, {pipeline_mode = #tpu.pipeline_mode<synchronous>, transform_indices = @transform_7, window_bounds = array<i64: 1, 32>}, {pipeline_mode = #tpu.pipeline_mode<synchronous>, transform_indices = @transform_8, window_bounds = array<i64: 32, 32>}, {pipeline_mode = #tpu.pipeline_mode<synchronous>, transform_indices = @transform_9, window_bounds = array<i64: 1, 32>}, {pipeline_mode = #tpu.pipeline_mode<synchronous>, transform_indices = @transform_10, window_bounds = array<i64: 1, 32>}, {pipeline_mode = #tpu.pipeline_mode<synchronous>, transform_indices = @transform_11, window_bounds = array<i64: 1, 32>}, {pipeline_mode = #tpu.pipeline_mode<synchronous>, transform_indices = @transform_12, window_bounds = array<i64: 32, 64>}, {pipeline_mode = #tpu.pipeline_mode<synchronous>, transform_indices = @transform_13, window_bounds = array<i64: 1, 64>}, {pipeline_mode = #tpu.pipeline_mode<synchronous>, transform_indices = @transform_14, window_bounds = array<i64: 64, 32>}, {pipeline_mode = #tpu.pipeline_mode<synchronous>, transform_indices = @transform_15, window_bounds = array<i64: 1, 32>}, {pipeline_mode = #tpu.pipeline_mode<synchronous>, transform_indices = @transform_16, window_bounds = array<i64: 1, 32>}, {pipeline_mode = #tpu.pipeline_mode<synchronous>, transform_indices = @transform_17, window_bounds = array<i64: 1, 32>}, {transform_indices = @transform_18, window_bounds = array<i64: 1, 8, 32>}, {transform_indices = @transform_19, window_bounds = array<i64: 1, 4, 8, 8>}]} {
    %c0 = arith.constant 0 : index
    %c0_0 = arith.constant 0 : index
    %c0_1 = arith.constant 0 : index
    %0 = vector.load %arg1[%c0, %c0_0, %c0_1] : memref<1x8x32xf32, #tpu.memory_space<vmem>>, vector<1x8x32xf32>
    %1 = vector.shape_cast %0 : vector<1x8x32xf32> to vector<8x32xf32>
    %2 = arith.truncf %1 : vector<8x32xf32> to vector<8x32xbf16>
    %c0_2 = arith.constant 0 : index
    %c0_3 = arith.constant 0 : index
    %3 = vector.load %arg3[%c0_2, %c0_3] : memref<32x32xbf16, #tpu.memory_space<vmem>>, vector<32x32xbf16>
    %cst = arith.constant dense<0.000000e+00> : vector<8x32xf32>
    %4 = tpu.matmul %2, %3, %cst {dimension_numbers = #tpu.dot_dimension_numbers<[1], [0], [0], [1], [0, 0, 1, 1], [], []>} : vector<8x32xbf16>, vector<32x32xbf16>, vector<8x32xf32> -> vector<8x32xf32>
    %c0_4 = arith.constant 0 : index
    %c0_5 = arith.constant 0 : index
    %5 = vector.load %arg4[%c0_4, %c0_5] : memref<1x32xf32, #tpu.memory_space<vmem>>, vector<1x32xf32>
    %6 = vector.broadcast %5 : vector<1x32xf32> to vector<8x32xf32>
    %7 = arith.addf %4, %6 : vector<8x32xf32>
    %c0_6 = arith.constant 0 : index
    %c0_7 = arith.constant 0 : index
    %8 = vector.load %arg5[%c0_6, %c0_7] : memref<32x32xbf16, #tpu.memory_space<vmem>>, vector<32x32xbf16>
    %cst_8 = arith.constant dense<0.000000e+00> : vector<8x32xf32>
    %9 = tpu.matmul %2, %8, %cst_8 {dimension_numbers = #tpu.dot_dimension_numbers<[1], [0], [0], [1], [0, 0, 1, 1], [], []>} : vector<8x32xbf16>, vector<32x32xbf16>, vector<8x32xf32> -> vector<8x32xf32>
    %c0_9 = arith.constant 0 : index
    %c0_10 = arith.constant 0 : index
    %10 = vector.load %arg6[%c0_9, %c0_10] : memref<1x32xf32, #tpu.memory_space<vmem>>, vector<1x32xf32>
    %11 = vector.broadcast %10 : vector<1x32xf32> to vector<8x32xf32>
    %12 = arith.addf %9, %11 : vector<8x32xf32>
    %c0_11 = arith.constant 0 : index
    %c0_12 = arith.constant 0 : index
    %13 = vector.load %arg7[%c0_11, %c0_12] : memref<32x32xbf16, #tpu.memory_space<vmem>>, vector<32x32xbf16>
    %cst_13 = arith.constant dense<0.000000e+00> : vector<8x32xf32>
    %14 = tpu.matmul %2, %13, %cst_13 {dimension_numbers = #tpu.dot_dimension_numbers<[1], [0], [0], [1], [0, 0, 1, 1], [], []>} : vector<8x32xbf16>, vector<32x32xbf16>, vector<8x32xf32> -> vector<8x32xf32>
    %c0_14 = arith.constant 0 : index
    %c0_15 = arith.constant 0 : index
    %15 = vector.load %arg8[%c0_14, %c0_15] : memref<1x32xf32, #tpu.memory_space<vmem>>, vector<1x32xf32>
    %16 = vector.broadcast %15 : vector<1x32xf32> to vector<8x32xf32>
    %17 = arith.addf %14, %16 : vector<8x32xf32>
    %cst_16 = arith.constant 0.353553385 : f32
    %18 = vector.broadcast %cst_16 : f32 to vector<8x32xf32>
    %19 = arith.mulf %7, %18 : vector<8x32xf32>
    %20 = arith.truncf %19 : vector<8x32xf32> to vector<8x32xbf16>
    %21 = arith.truncf %12 : vector<8x32xf32> to vector<8x32xbf16>
    %22 = arith.truncf %17 : vector<8x32xf32> to vector<8x32xbf16>
    %c0_17 = arith.constant 0 : index
    %c0_18 = arith.constant 0 : index
    %c0_19 = arith.constant 0 : index
    %23 = vector.load %arg2[%c0_17, %c0_18, %c0_19] : memref<1x1x8xf32, #tpu.memory_space<vmem>>, vector<1x1x8xf32>
    %24 = vector.shape_cast %23 : vector<1x1x8xf32> to vector<1x8xf32>
    %cst_20 = arith.constant 1.000000e+09 : f32
    %25 = vector.broadcast %cst_20 : f32 to vector<1x8xf32>
    %26 = arith.mulf %24, %25 : vector<1x8xf32>
    %27 = vector.extract_strided_slice %20 {offsets = [0, 0], sizes = [8, 8], strides = [1, 1]} : vector<8x32xbf16> to vector<8x8xbf16>
    %28 = vector.extract_strided_slice %21 {offsets = [0, 0], sizes = [8, 8], strides = [1, 1]} : vector<8x32xbf16> to vector<8x8xbf16>
    %29 = vector.extract_strided_slice %22 {offsets = [0, 0], sizes = [8, 8], strides = [1, 1]} : vector<8x32xbf16> to vector<8x8xbf16>
    %cst_21 = arith.constant dense<0.000000e+00> : vector<8x8xf32>
    %30 = tpu.matmul %27, %28, %cst_21 {dimension_numbers = #tpu.dot_dimension_numbers<[1], [1], [0], [0], [0, 0, 1, 0], [], []>} : vector<8x8xbf16>, vector<8x8xbf16>, vector<8x8xf32> -> vector<8x8xf32>
    %31 = vector.broadcast %26 : vector<1x8xf32> to vector<8x8xf32>
    %32 = arith.subf %30, %31 : vector<8x8xf32>
    %cst_22 = arith.constant dense<0xFF800000> : vector<8xf32>
    %33 = vector.multi_reduction <maximumf>, %32, %cst_22 [1] : vector<8x8xf32> to vector<8xf32>
    %34 = vector.shape_cast %33 : vector<8xf32> to vector<8x1xf32>
    %35 = vector.broadcast %34 : vector<8x1xf32> to vector<8x8xf32>
    %36 = arith.subf %32, %35 : vector<8x8xf32>
    %37 = math.exp %36 : vector<8x8xf32>
    %cst_23 = arith.constant dense<0.000000e+00> : vector<8xf32>
    %38 = vector.multi_reduction <add>, %37, %cst_23 [1] : vector<8x8xf32> to vector<8xf32>
    %39 = vector.shape_cast %38 : vector<8xf32> to vector<8x1xf32>
    %40 = tpu.reciprocal %39 {approx = true} : vector<8x1xf32> -> vector<8x1xf32>
    %41 = vector.broadcast %40 : vector<8x1xf32> to vector<8x8xf32>
    %42 = arith.mulf %37, %41 : vector<8x8xf32>
    %c0_24 = arith.constant 0 : index
    %c0_25 = arith.constant 0 : index
    %c0_26 = arith.constant 0 : index
    %c0_27 = arith.constant 0 : index
    %43 = vector.load %arg20[%c0_24, %c0_25, %c0_26, %c0_27] : memref<1x4x8x8xf32, #tpu.memory_space<vmem>>, vector<1x1x8x8xf32>
    %44 = vector.shape_cast %43 : vector<1x1x8x8xf32> to vector<8x8xf32>
    %45 = vector.shape_cast %42 : vector<8x8xf32> to vector<1x1x8x8xf32>
    tpu.vector_store %arg20[%c0_24, %c0_25, %c0_26, %c0_27], %45 {strides = array<i32>} : memref<1x4x8x8xf32, #tpu.memory_space<vmem>>, vector<1x1x8x8xf32>,
    %46 = arith.truncf %42 : vector<8x8xf32> to vector<8x8xbf16>
    %cst_28 = arith.constant dense<0.000000e+00> : vector<8x8xf32>
    %47 = tpu.matmul %46, %29, %cst_28 {dimension_numbers = #tpu.dot_dimension_numbers<[1], [0], [0], [1], [0, 0, 1, 1], [], []>} : vector<8x8xbf16>, vector<8x8xbf16>, vector<8x8xf32> -> vector<8x8xf32>
    %48 = arith.truncf %47 : vector<8x8xf32> to vector<8x8xbf16>
    %c0_29 = arith.constant 0 : index
    %c0_30 = arith.constant 0 : index
    %49 = vector.load %arg21[%c0_29, %c0_30] : memref<8x32xbf16, #tpu.memory_space<vmem>>, vector<8x8xbf16>
    tpu.vector_store %arg21[%c0_29, %c0_30], %48 {strides = array<i32>} : memref<8x32xbf16, #tpu.memory_space<vmem>>, vector<8x8xbf16>,
    %50 = vector.extract_strided_slice %20 {offsets = [0, 8], sizes = [8, 8], strides = [1, 1]} : vector<8x32xbf16> to vector<8x8xbf16>
    %51 = vector.extract_strided_slice %21 {offsets = [0, 8], sizes = [8, 8], strides = [1, 1]} : vector<8x32xbf16> to vector<8x8xbf16>
    %52 = vector.extract_strided_slice %22 {offsets = [0, 8], sizes = [8, 8], strides = [1, 1]} : vector<8x32xbf16> to vector<8x8xbf16>
    %cst_31 = arith.constant dense<0.000000e+00> : vector<8x8xf32>
    %53 = tpu.matmul %50, %51, %cst_31 {dimension_numbers = #tpu.dot_dimension_numbers<[1], [1], [0], [0], [0, 0, 1, 0], [], []>} : vector<8x8xbf16>, vector<8x8xbf16>, vector<8x8xf32> -> vector<8x8xf32>
    %54 = vector.broadcast %26 : vector<1x8xf32> to vector<8x8xf32>
    %55 = arith.subf %53, %54 : vector<8x8xf32>
    %cst_32 = arith.constant dense<0xFF800000> : vector<8xf32>
    %56 = vector.multi_reduction <maximumf>, %55, %cst_32 [1] : vector<8x8xf32> to vector<8xf32>
    %57 = vector.shape_cast %56 : vector<8xf32> to vector<8x1xf32>
    %58 = vector.broadcast %57 : vector<8x1xf32> to vector<8x8xf32>
    %59 = arith.subf %55, %58 : vector<8x8xf32>
    %60 = math.exp %59 : vector<8x8xf32>
    %cst_33 = arith.constant dense<0.000000e+00> : vector<8xf32>
    %61 = vector.multi_reduction <add>, %60, %cst_33 [1] : vector<8x8xf32> to vector<8xf32>
    %62 = vector.shape_cast %61 : vector<8xf32> to vector<8x1xf32>
    %63 = tpu.reciprocal %62 {approx = true} : vector<8x1xf32> -> vector<8x1xf32>
    %64 = vector.broadcast %63 : vector<8x1xf32> to vector<8x8xf32>
    %65 = arith.mulf %60, %64 : vector<8x8xf32>
    %c0_34 = arith.constant 0 : index
    %c1 = arith.constant 1 : index
    %c0_35 = arith.constant 0 : index
    %c0_36 = arith.constant 0 : index
    %66 = vector.load %arg20[%c0_34, %c1, %c0_35, %c0_36] : memref<1x4x8x8xf32, #tpu.memory_space<vmem>>, vector<1x1x8x8xf32>
    %67 = vector.shape_cast %66 : vector<1x1x8x8xf32> to vector<8x8xf32>
    %68 = vector.shape_cast %65 : vector<8x8xf32> to vector<1x1x8x8xf32>
    tpu.vector_store %arg20[%c0_34, %c1, %c0_35, %c0_36], %68 {strides = array<i32>} : memref<1x4x8x8xf32, #tpu.memory_space<vmem>>, vector<1x1x8x8xf32>,
    %69 = arith.truncf %65 : vector<8x8xf32> to vector<8x8xbf16>
    %cst_37 = arith.constant dense<0.000000e+00> : vector<8x8xf32>
    %70 = tpu.matmul %69, %52, %cst_37 {dimension_numbers = #tpu.dot_dimension_numbers<[1], [0], [0], [1], [0, 0, 1, 1], [], []>} : vector<8x8xbf16>, vector<8x8xbf16>, vector<8x8xf32> -> vector<8x8xf32>
    %71 = arith.truncf %70 : vector<8x8xf32> to vector<8x8xbf16>
    %c0_38 = arith.constant 0 : index
    %c8 = arith.constant 8 : index
    %72 = vector.load %arg21[%c0_38, %c8] : memref<8x32xbf16, #tpu.memory_space<vmem>>, vector<8x8xbf16>
    tpu.vector_store %arg21[%c0_38, %c8], %71 {strides = array<i32>} : memref<8x32xbf16, #tpu.memory_space<vmem>>, vector<8x8xbf16>,
    %73 = vector.extract_strided_slice %20 {offsets = [0, 16], sizes = [8, 8], strides = [1, 1]} : vector<8x32xbf16> to vector<8x8xbf16>
    %74 = vector.extract_strided_slice %21 {offsets = [0, 16], sizes = [8, 8], strides = [1, 1]} : vector<8x32xbf16> to vector<8x8xbf16>
    %75 = vector.extract_strided_slice %22 {offsets = [0, 16], sizes = [8, 8], strides = [1, 1]} : vector<8x32xbf16> to vector<8x8xbf16>
    %cst_39 = arith.constant dense<0.000000e+00> : vector<8x8xf32>
    %76 = tpu.matmul %73, %74, %cst_39 {dimension_numbers = #tpu.dot_dimension_numbers<[1], [1], [0], [0], [0, 0, 1, 0], [], []>} : vector<8x8xbf16>, vector<8x8xbf16>, vector<8x8xf32> -> vector<8x8xf32>
    %77 = vector.broadcast %26 : vector<1x8xf32> to vector<8x8xf32>
    %78 = arith.subf %76, %77 : vector<8x8xf32>
    %cst_40 = arith.constant dense<0xFF800000> : vector<8xf32>
    %79 = vector.multi_reduction <maximumf>, %78, %cst_40 [1] : vector<8x8xf32> to vector<8xf32>
    %80 = vector.shape_cast %79 : vector<8xf32> to vector<8x1xf32>
    %81 = vector.broadcast %80 : vector<8x1xf32> to vector<8x8xf32>
    %82 = arith.subf %78, %81 : vector<8x8xf32>
    %83 = math.exp %82 : vector<8x8xf32>
    %cst_41 = arith.constant dense<0.000000e+00> : vector<8xf32>
    %84 = vector.multi_reduction <add>, %83, %cst_41 [1] : vector<8x8xf32> to vector<8xf32>
    %85 = vector.shape_cast %84 : vector<8xf32> to vector<8x1xf32>
    %86 = tpu.reciprocal %85 {approx = true} : vector<8x1xf32> -> vector<8x1xf32>
    %87 = vector.broadcast %86 : vector<8x1xf32> to vector<8x8xf32>
    %88 = arith.mulf %83, %87 : vector<8x8xf32>
    %c0_42 = arith.constant 0 : index
    %c2 = arith.constant 2 : index
    %c0_43 = arith.constant 0 : index
    %c0_44 = arith.constant 0 : index
    %89 = vector.load %arg20[%c0_42, %c2, %c0_43, %c0_44] : memref<1x4x8x8xf32, #tpu.memory_space<vmem>>, vector<1x1x8x8xf32>
    %90 = vector.shape_cast %89 : vector<1x1x8x8xf32> to vector<8x8xf32>
    %91 = vector.shape_cast %88 : vector<8x8xf32> to vector<1x1x8x8xf32>
    tpu.vector_store %arg20[%c0_42, %c2, %c0_43, %c0_44], %91 {strides = array<i32>} : memref<1x4x8x8xf32, #tpu.memory_space<vmem>>, vector<1x1x8x8xf32>,
    %92 = arith.truncf %88 : vector<8x8xf32> to vector<8x8xbf16>
    %cst_45 = arith.constant dense<0.000000e+00> : vector<8x8xf32>
    %93 = tpu.matmul %92, %75, %cst_45 {dimension_numbers = #tpu.dot_dimension_numbers<[1], [0], [0], [1], [0, 0, 1, 1], [], []>} : vector<8x8xbf16>, vector<8x8xbf16>, vector<8x8xf32> -> vector<8x8xf32>
    %94 = arith.truncf %93 : vector<8x8xf32> to vector<8x8xbf16>
    %c0_46 = arith.constant 0 : index
    %c16 = arith.constant 16 : index
    %95 = vector.load %arg21[%c0_46, %c16] : memref<8x32xbf16, #tpu.memory_space<vmem>>, vector<8x8xbf16>
    tpu.vector_store %arg21[%c0_46, %c16], %94 {strides = array<i32>} : memref<8x32xbf16, #tpu.memory_space<vmem>>, vector<8x8xbf16>,
    %96 = vector.extract_strided_slice %20 {offsets = [0, 24], sizes = [8, 8], strides = [1, 1]} : vector<8x32xbf16> to vector<8x8xbf16>
    %97 = vector.extract_strided_slice %21 {offsets = [0, 24], sizes = [8, 8], strides = [1, 1]} : vector<8x32xbf16> to vector<8x8xbf16>
    %98 = vector.extract_strided_slice %22 {offsets = [0, 24], sizes = [8, 8], strides = [1, 1]} : vector<8x32xbf16> to vector<8x8xbf16>
    %cst_47 = arith.constant dense<0.000000e+00> : vector<8x8xf32>
    %99 = tpu.matmul %96, %97, %cst_47 {dimension_numbers = #tpu.dot_dimension_numbers<[1], [1], [0], [0], [0, 0, 1, 0], [], []>} : vector<8x8xbf16>, vector<8x8xbf16>, vector<8x8xf32> -> vector<8x8xf32>
    %100 = vector.broadcast %26 : vector<1x8xf32> to vector<8x8xf32>
    %101 = arith.subf %99, %100 : vector<8x8xf32>
    %cst_48 = arith.constant dense<0xFF800000> : vector<8xf32>
    %102 = vector.multi_reduction <maximumf>, %101, %cst_48 [1] : vector<8x8xf32> to vector<8xf32>
    %103 = vector.shape_cast %102 : vector<8xf32> to vector<8x1xf32>
    %104 = vector.broadcast %103 : vector<8x1xf32> to vector<8x8xf32>
    %105 = arith.subf %101, %104 : vector<8x8xf32>
    %106 = math.exp %105 : vector<8x8xf32>
    %cst_49 = arith.constant dense<0.000000e+00> : vector<8xf32>
    %107 = vector.multi_reduction <add>, %106, %cst_49 [1] : vector<8x8xf32> to vector<8xf32>
    %108 = vector.shape_cast %107 : vector<8xf32> to vector<8x1xf32>
    %109 = tpu.reciprocal %108 {approx = true} : vector<8x1xf32> -> vector<8x1xf32>
    %110 = vector.broadcast %109 : vector<8x1xf32> to vector<8x8xf32>
    %111 = arith.mulf %106, %110 : vector<8x8xf32>
    %c0_50 = arith.constant 0 : index
    %c3 = arith.constant 3 : index
    %c0_51 = arith.constant 0 : index
    %c0_52 = arith.constant 0 : index
    %112 = vector.load %arg20[%c0_50, %c3, %c0_51, %c0_52] : memref<1x4x8x8xf32, #tpu.memory_space<vmem>>, vector<1x1x8x8xf32>
    %113 = vector.shape_cast %112 : vector<1x1x8x8xf32> to vector<8x8xf32>
    %114 = vector.shape_cast %111 : vector<8x8xf32> to vector<1x1x8x8xf32>
    tpu.vector_store %arg20[%c0_50, %c3, %c0_51, %c0_52], %114 {strides = array<i32>} : memref<1x4x8x8xf32, #tpu.memory_space<vmem>>, vector<1x1x8x8xf32>,
    %115 = arith.truncf %111 : vector<8x8xf32> to vector<8x8xbf16>
    %cst_53 = arith.constant dense<0.000000e+00> : vector<8x8xf32>
    %116 = tpu.matmul %115, %98, %cst_53 {dimension_numbers = #tpu.dot_dimension_numbers<[1], [0], [0], [1], [0, 0, 1, 1], [], []>} : vector<8x8xbf16>, vector<8x8xbf16>, vector<8x8xf32> -> vector<8x8xf32>
    %117 = arith.truncf %116 : vector<8x8xf32> to vector<8x8xbf16>
    %c0_54 = arith.constant 0 : index
    %c24 = arith.constant 24 : index
    %118 = vector.load %arg21[%c0_54, %c24] : memref<8x32xbf16, #tpu.memory_space<vmem>>, vector<8x8xbf16>
    tpu.vector_store %arg21[%c0_54, %c24], %117 {strides = array<i32>} : memref<8x32xbf16, #tpu.memory_space<vmem>>, vector<8x8xbf16>,
    %c0_55 = arith.constant 0 : index
    %c0_56 = arith.constant 0 : index
    %119 = vector.load %arg21[%c0_55, %c0_56] : memref<8x32xbf16, #tpu.memory_space<vmem>>, vector<8x32xbf16>
    %c0_57 = arith.constant 0 : index
    %c0_58 = arith.constant 0 : index
    %120 = vector.load %arg9[%c0_57, %c0_58] : memref<32x32xbf16, #tpu.memory_space<vmem>>, vector<32x32xbf16>
    %cst_59 = arith.constant dense<0.000000e+00> : vector<8x32xf32>
    %121 = tpu.matmul %119, %120, %cst_59 {dimension_numbers = #tpu.dot_dimension_numbers<[1], [0], [0], [1], [0, 0, 1, 1], [], []>} : vector<8x32xbf16>, vector<32x32xbf16>, vector<8x32xf32> -> vector<8x32xf32>
    %c0_60 = arith.constant 0 : index
    %c0_61 = arith.constant 0 : index
    %122 = vector.load %arg10[%c0_60, %c0_61] : memref<1x32xf32, #tpu.memory_space<vmem>>, vector<1x32xf32>
    %123 = vector.broadcast %122 : vector<1x32xf32> to vector<8x32xf32>
    %124 = arith.addf %121, %123 : vector<8x32xf32>
    %125 = arith.addf %1, %124 : vector<8x32xf32>
    %c0_62 = arith.constant 0 : index
    %c0_63 = arith.constant 0 : index
    %126 = vector.load %arg11[%c0_62, %c0_63] : memref<1x32xf32, #tpu.memory_space<vmem>>, vector<1x32xf32>
    %c0_64 = arith.constant 0 : index
    %c0_65 = arith.constant 0 : index
    %127 = vector.load %arg12[%c0_64, %c0_65] : memref<1x32xf32, #tpu.memory_space<vmem>>, vector<1x32xf32>
    %cst_66 = arith.constant dense<0.000000e+00> : vector<8xf32>
    %128 = vector.multi_reduction <add>, %125, %cst_66 [1] : vector<8x32xf32> to vector<8xf32>
    %129 = vector.shape_cast %128 : vector<8xf32> to vector<8x1xf32>
    %cst_67 = arith.constant 3.200000e+01 : f32
    %130 = vector.broadcast %cst_67 : f32 to vector<8x1xf32>
    %131 = arith.divf %129, %130 : vector<8x1xf32>
    %132 = vector.broadcast %131 : vector<8x1xf32> to vector<8x32xf32>
    %133 = arith.subf %125, %132 : vector<8x32xf32>
    %134 = arith.mulf %133, %133 : vector<8x32xf32>
    %cst_68 = arith.constant dense<0.000000e+00> : vector<8xf32>
    %135 = vector.multi_reduction <add>, %134, %cst_68 [1] : vector<8x32xf32> to vector<8xf32>
    %136 = vector.shape_cast %135 : vector<8xf32> to vector<8x1xf32>
    %cst_69 = arith.constant 3.200000e+01 : f32
    %137 = vector.broadcast %cst_69 : f32 to vector<8x1xf32>
    %138 = arith.divf %136, %137 : vector<8x1xf32>
    %139 = vector.broadcast %131 : vector<8x1xf32> to vector<8x32xf32>
    %140 = arith.subf %125, %139 : vector<8x32xf32>
    %cst_70 = arith.constant 9.99999997E-7 : f32
    %141 = vector.broadcast %cst_70 : f32 to vector<8x1xf32>
    %142 = arith.addf %138, %141 : vector<8x1xf32>
    %143 = math.rsqrt %142 : vector<8x1xf32>
    %144 = vector.broadcast %143 : vector<8x1xf32> to vector<8x32xf32>
    %145 = arith.mulf %140, %144 : vector<8x32xf32>
    %146 = vector.broadcast %126 : vector<1x32xf32> to vector<8x32xf32>
    %147 = arith.mulf %145, %146 : vector<8x32xf32>
    %148 = vector.broadcast %127 : vector<1x32xf32> to vector<8x32xf32>
    %149 = arith.addf %147, %148 : vector<8x32xf32>
    %150 = arith.truncf %149 : vector<8x32xf32> to vector<8x32xbf16>
    %c0_71 = arith.constant 0 : index
    %c0_72 = arith.constant 0 : index
    %151 = vector.load %arg13[%c0_71, %c0_72] : memref<32x64xbf16, #tpu.memory_space<vmem>>, vector<32x64xbf16>
    %cst_73 = arith.constant dense<0.000000e+00> : vector<8x64xf32>
    %152 = tpu.matmul %150, %151, %cst_73 {dimension_numbers = #tpu.dot_dimension_numbers<[1], [0], [0], [1], [0, 0, 1, 1], [], []>} : vector<8x32xbf16>, vector<32x64xbf16>, vector<8x64xf32> -> vector<8x64xf32>
    %c0_74 = arith.constant 0 : index
    %c0_75 = arith.constant 0 : index
    %153 = vector.load %arg14[%c0_74, %c0_75] : memref<1x64xf32, #tpu.memory_space<vmem>>, vector<1x64xf32>
    %154 = vector.broadcast %153 : vector<1x64xf32> to vector<8x64xf32>
    %155 = arith.addf %152, %154 : vector<8x64xf32>
    %cst_76 = arith.constant 0.000000e+00 : f32
    %156 = vector.broadcast %cst_76 : f32 to vector<8x64xf32>
    %157 = arith.maximumf %155, %156 : vector<8x64xf32>
    %158 = arith.truncf %157 : vector<8x64xf32> to vector<8x64xbf16>
    %c0_77 = arith.constant 0 : index
    %c0_78 = arith.constant 0 : index
    %159 = vector.load %arg15[%c0_77, %c0_78] : memref<64x32xbf16, #tpu.memory_space<vmem>>, vector<64x32xbf16>
    %cst_79 = arith.constant dense<0.000000e+00> : vector<8x32xf32>
    %160 = tpu.matmul %158, %159, %cst_79 {dimension_numbers = #tpu.dot_dimension_numbers<[1], [0], [0], [1], [0, 0, 1, 1], [], []>} : vector<8x64xbf16>, vector<64x32xbf16>, vector<8x32xf32> -> vector<8x32xf32>
    %c0_80 = arith.constant 0 : index
    %c0_81 = arith.constant 0 : index
    %161 = vector.load %arg16[%c0_80, %c0_81] : memref<1x32xf32, #tpu.memory_space<vmem>>, vector<1x32xf32>
    %162 = vector.broadcast %161 : vector<1x32xf32> to vector<8x32xf32>
    %163 = arith.addf %160, %162 : vector<8x32xf32>
    %164 = arith.addf %163, %149 : vector<8x32xf32>
    %c0_82 = arith.constant 0 : index
    %c0_83 = arith.constant 0 : index
    %165 = vector.load %arg17[%c0_82, %c0_83] : memref<1x32xf32, #tpu.memory_space<vmem>>, vector<1x32xf32>
    %c0_84 = arith.constant 0 : index
    %c0_85 = arith.constant 0 : index
    %166 = vector.load %arg18[%c0_84, %c0_85] : memref<1x32xf32, #tpu.memory_space<vmem>>, vector<1x32xf32>
    %cst_86 = arith.constant dense<0.000000e+00> : vector<8xf32>
    %167 = vector.multi_reduction <add>, %164, %cst_86 [1] : vector<8x32xf32> to vector<8xf32>
    %168 = vector.shape_cast %167 : vector<8xf32> to vector<8x1xf32>
    %cst_87 = arith.constant 3.200000e+01 : f32
    %169 = vector.broadcast %cst_87 : f32 to vector<8x1xf32>
    %170 = arith.divf %168, %169 : vector<8x1xf32>
    %171 = vector.broadcast %170 : vector<8x1xf32> to vector<8x32xf32>
    %172 = arith.subf %164, %171 : vector<8x32xf32>
    %173 = arith.mulf %172, %172 : vector<8x32xf32>
    %cst_88 = arith.constant dense<0.000000e+00> : vector<8xf32>
    %174 = vector.multi_reduction <add>, %173, %cst_88 [1] : vector<8x32xf32> to vector<8xf32>
    %175 = vector.shape_cast %174 : vector<8xf32> to vector<8x1xf32>
    %cst_89 = arith.constant 3.200000e+01 : f32
    %176 = vector.broadcast %cst_89 : f32 to vector<8x1xf32>
    %177 = arith.divf %175, %176 : vector<8x1xf32>
    %178 = vector.broadcast %170 : vector<8x1xf32> to vector<8x32xf32>
    %179 = arith.subf %164, %178 : vector<8x32xf32>
    %cst_90 = arith.constant 9.99999997E-7 : f32
    %180 = vector.broadcast %cst_90 : f32 to vector<8x1xf32>
    %181 = arith.addf %177, %180 : vector<8x1xf32>
    %182 = math.rsqrt %181 : vector<8x1xf32>
    %183 = vector.broadcast %182 : vector<8x1xf32> to vector<8x32xf32>
    %184 = arith.mulf %179, %183 : vector<8x32xf32>
    %185 = vector.broadcast %165 : vector<1x32xf32> to vector<8x32xf32>
    %186 = arith.mulf %184, %185 : vector<8x32xf32>
    %187 = vector.broadcast %166 : vector<1x32xf32> to vector<8x32xf32>
    %188 = arith.addf %186, %187 : vector<8x32xf32>
    %c0_91 = arith.constant 0 : index
    %c0_92 = arith.constant 0 : index
    %c0_93 = arith.constant 0 : index
    %189 = vector.load %arg19[%c0_91, %c0_92, %c0_93] : memref<1x8x32xf32, #tpu.memory_space<vmem>>, vector<1x8x32xf32>
    %190 = vector.shape_cast %189 : vector<1x8x32xf32> to vector<8x32xf32>
    %191 = vector.shape_cast %188 : vector<8x32xf32> to vector<1x8x32xf32>
    tpu.vector_store %arg19[%c0_91, %c0_92, %c0_93], %191 {strides = array<i32>} : memref<1x8x32xf32, #tpu.memory_space<vmem>>, vector<1x8x32xf32>,
    return
  }
  func.func @transform_0(%arg0: i32) -> (i32, i32, i32) {
    %c0_i32 = arith.constant 0 : i32
    %c0_i32_0 = arith.constant 0 : i32
    %c0_i32_1 = arith.constant 0 : i32
    return %arg0, %c0_i32, %c0_i32_0 : i32, i32, i32
  }
  func.func @transform_1(%arg0: i32) -> (i32, i32, i32) {
    %c0_i32 = arith.constant 0 : i32
    %c0_i32_0 = arith.constant 0 : i32
    %c0_i32_1 = arith.constant 0 : i32
    return %arg0, %c0_i32, %c0_i32_0 : i32, i32, i32
  }
  func.func @transform_2(%arg0: i32) -> (i32, i32) {
    %c0_i32 = arith.constant 0 : i32
    %c0_i32_0 = arith.constant 0 : i32
    %c0_i32_1 = arith.constant 0 : i32
    return %c0_i32, %c0_i32_0 : i32, i32
  }
  func.func @transform_3(%arg0: i32) -> (i32, i32) {
    %c0_i32 = arith.constant 0 : i32
    %c0_i32_0 = arith.constant 0 : i32
    %c0_i32_1 = arith.constant 0 : i32
    return %c0_i32, %c0_i32_0 : i32, i32
  }
  func.func @transform_4(%arg0: i32) -> (i32, i32) {
    %c0_i32 = arith.constant 0 : i32
    %c0_i32_0 = arith.constant 0 : i32
    %c0_i32_1 = arith.constant 0 : i32
    return %c0_i32, %c0_i32_0 : i32, i32
  }
  func.func @transform_5(%arg0: i32) -> (i32, i32) {
    %c0_i32 = arith.constant 0 : i32
    %c0_i32_0 = arith.constant 0 : i32
    %c0_i32_1 = arith.constant 0 : i32
    return %c0_i32, %c0_i32_0 : i32, i32
  }
  func.func @transform_6(%arg0: i32) -> (i32, i32) {
    %c0_i32 = arith.constant 0 : i32
    %c0_i32_0 = arith.constant 0 : i32
    %c0_i32_1 = arith.constant 0 : i32
    return %c0_i32, %c0_i32_0 : i32, i32
  }
  func.func @transform_7(%arg0: i32) -> (i32, i32) {
    %c0_i32 = arith.constant 0 : i32
    %c0_i32_0 = arith.constant 0 : i32
    %c0_i32_1 = arith.constant 0 : i32
    return %c0_i32, %c0_i32_0 : i32, i32
  }
  func.func @transform_8(%arg0: i32) -> (i32, i32) {
    %c0_i32 = arith.constant 0 : i32
    %c0_i32_0 = arith.constant 0 : i32
    %c0_i32_1 = arith.constant 0 : i32
    return %c0_i32, %c0_i32_0 : i32, i32
  }
  func.func @transform_9(%arg0: i32) -> (i32, i32) {
    %c0_i32 = arith.constant 0 : i32
    %c0_i32_0 = arith.constant 0 : i32
    %c0_i32_1 = arith.constant 0 : i32
    return %c0_i32, %c0_i32_0 : i32, i32
  }
  func.func @transform_10(%arg0: i32) -> (i32, i32) {
    %c0_i32 = arith.constant 0 : i32
    %c0_i32_0 = arith.constant 0 : i32
    %c0_i32_1 = arith.constant 0 : i32
    return %c0_i32, %c0_i32_0 : i32, i32
  }
  func.func @transform_11(%arg0: i32) -> (i32, i32) {
    %c0_i32 = arith.constant 0 : i32
    %c0_i32_0 = arith.constant 0 : i32
    %c0_i32_1 = arith.constant 0 : i32
    return %c0_i32, %c0_i32_0 : i32, i32
  }
  func.func @transform_12(%arg0: i32) -> (i32, i32) {
    %c0_i32 = arith.constant 0 : i32
    %c0_i32_0 = arith.constant 0 : i32
    %c0_i32_1 = arith.constant 0 : i32
    return %c0_i32, %c0_i32_0 : i32, i32
  }
  func.func @transform_13(%arg0: i32) -> (i32, i32) {
    %c0_i32 = arith.constant 0 : i32
    %c0_i32_0 = arith.constant 0 : i32
    %c0_i32_1 = arith.constant 0 : i32
    return %c0_i32, %c0_i32_0 : i32, i32
  }
  func.func @transform_14(%arg0: i32) -> (i32, i32) {
    %c0_i32 = arith.constant 0 : i32
    %c0_i32_0 = arith.constant 0 : i32
    %c0_i32_1 = arith.constant 0 : i32
    return %c0_i32, %c0_i32_0 : i32, i32
  }
  func.func @transform_15(%arg0: i32) -> (i32, i32) {
    %c0_i32 = arith.constant 0 : i32
    %c0_i32_0 = arith.constant 0 : i32
    %c0_i32_1 = arith.constant 0 : i32
    return %c0_i32, %c0_i32_0 : i32, i32
  }
  func.func @transform_16(%arg0: i32) -> (i32, i32) {
    %c0_i32 = arith.constant 0 : i32
    %c0_i32_0 = arith.constant 0 : i32
    %c0_i32_1 = arith.constant 0 : i32
    return %c0_i32, %c0_i32_0 : i32, i32
  }
  func.func @transform_17(%arg0: i32) -> (i32, i32) {
    %c0_i32 = arith.constant 0 : i32
    %c0_i32_0 = arith.constant 0 : i32
    %c0_i32_1 = arith.constant 0 : i32
    return %c0_i32, %c0_i32_0 : i32, i32
  }
  func.func @transform_18(%arg0: i32) -> (i32, i32, i32) {
    %c0_i32 = arith.constant 0 : i32
    %c0_i32_0 = arith.constant 0 : i32
    %c0_i32_1 = arith.constant 0 : i32
    return %arg0, %c0_i32, %c0_i32_0 : i32, i32, i32
  }
  func.func @transform_19(%arg0: i32) -> (i32, i32, i32, i32) {
    %c0_i32 = arith.constant 0 : i32
    %c0_i32_0 = arith.constant 0 : i32
    %c0_i32_1 = arith.constant 0 : i32
    %c0_i32_2 = arith.constant 0 : i32
    return %arg0, %c0_i32, %c0_i32_0, %c0_i32_1 : i32, i32, i32, i32
  }
}

module attributes {stable_mosaic.version = 11 : i64} {
  func.func @encoder_layer_kernel(%arg0: i32, %arg1: memref<1x8x32xf32, #tpu.memory_space<vmem>>, %arg2: memref<1x1x8xf32, #tpu.memory_space<vmem>>, %arg3: memref<32x32xbf16, #tpu.memory_space<vmem>>, %arg4: memref<1x32xf32, #tpu.memory_space<vmem>>, %arg5: memref<32x32xbf16, #tpu.memory_space<vmem>>, %arg6: memref<1x32xf32, #tpu.memory_space<vmem>>, %arg7: memref<32x32xbf16, #tpu.memory_space<vmem>>, %arg8: memref<1x32xf32, #tpu.memory_space<vmem>>, %arg9: memref<32x32xbf16, #tpu.memory_space<vmem>>, %arg10: memref<1x32xf32, #tpu.memory_space<vmem>>, %arg11: memref<1x32xf32, #tpu.memory_space<vmem>>, %arg12: memref<1x32xf32, #tpu.memory_space<vmem>>, %arg13: memref<32x64xbf16, #tpu.memory_space<vmem>>, %arg14: memref<1x64xf32, #tpu.memory_space<vmem>>, %arg15: memref<64x32xbf16, #tpu.memory_space<vmem>>, %arg16: memref<1x32xf32, #tpu.memory_space<vmem>>, %arg17: memref<1x32xf32, #tpu.memory_space<vmem>>, %arg18: memref<1x32xf32, #tpu.memory_space<vmem>>, %arg19: memref<1x8x32xf32, #tpu.memory_space<vmem>>, %arg20: memref<1x4x8x8xf32, #tpu.memory_space<vmem>>, %arg21: memref<8x32xbf16, #tpu.memory_space<vmem>>) attributes {dimension_semantics = [#tpu.dimension_semantics<parallel>], iteration_bounds = array<i64: 2>, scalar_prefetch = 0 : i64, scratch_operands = 1 : i64, tpu.core_type = #tpu.core_type<tc>, window_params = [{transform_indices = @transform_0, window_bounds = array<i64: 1, 8, 32>}, {transform_indices = @transform_1, window_bounds = array<i64: 1, 1, 8>}, {pipeline_mode = #tpu.pipeline_mode<synchronous>, transform_indices = @transform_2, window_bounds = array<i64: 32, 32>}, {pipeline_mode = #tpu.pipeline_mode<synchronous>, transform_indices = @transform_3, window_bounds = array<i64: 1, 32>}, {pipeline_mode = #tpu.pipeline_mode<synchronous>, transform_indices = @transform_4, window_bounds = array<i64: 32, 32>}, {pipeline_mode = #tpu.pipeline_mode<synchronous>, transform_indices = @transform_5, window_bounds = array<i64: 1, 32>}, {pipeline_mode = #tpu.pipeline_mode<synchronous>, transform_indices = @transform_6, window_bounds = array<i64: 32, 32>}, {pipeline_mode = #tpu.pipeline_mode<synchronous>, transform_indices = @transform_7, window_bounds = array<i64: 1, 32>}, {pipeline_mode = #tpu.pipeline_mode<synchronous>, transform_indices = @transform_8, window_bounds = array<i64: 32, 32>}, {pipeline_mode = #tpu.pipeline_mode<synchronous>, transform_indices = @transform_9, window_bounds = array<i64: 1, 32>}, {pipeline_mode = #tpu.pipeline_mode<synchronous>, transform_indices = @transform_10, window_bounds = array<i64: 1, 32>}, {pipeline_mode = #tpu.pipeline_mode<synchronous>, transform_indices = @transform_11, window_bounds = array<i64: 1, 32>}, {pipeline_mode = #tpu.pipeline_mode<synchronous>, transform_indices = @transform_12, window_bounds = array<i64: 32, 64>}, {pipeline_mode = #tpu.pipeline_mode<synchronous>, transform_indices = @transform_13, window_bounds = array<i64: 1, 64>}, {pipeline_mode = #tpu.pipeline_mode<synchronous>, transform_indices = @transform_14, window_bounds = array<i64: 64, 32>}, {pipeline_mode = #tpu.pipeline_mode<synchronous>, transform_indices = @transform_15, window_bounds = array<i64: 1, 32>}, {pipeline_mode = #tpu.pipeline_mode<synchronous>, transform_indices = @transform_16, window_bounds = array<i64: 1, 32>}, {pipeline_mode = #tpu.pipeline_mode<synchronous>, transform_indices = @transform_17, window_bounds = array<i64: 1, 32>}, {transform_indices = @transform_18, window_bounds = array<i64: 1, 8, 32>}, {transform_indices = @transform_19, window_bounds = array<i64: 1, 4, 8, 8>}]} {
    %c0 = arith.constant 0 : index
    %c0_0 = arith.constant 0 : index
    %c0_1 = arith.constant 0 : index
    %0 = vector.load %arg1[%c0, %c0_0, %c0_1] : memref<1x8x32xf32, #tpu.memory_space<vmem>>, vector<1x8x32xf32>
    %1 = vector.shape_cast %0 : vector<1x8x32xf32> to vector<8x32xf32>
    %2 = arith.truncf %1 : vector<8x32xf32> to vector<8x32xbf16>
    %c0_2 = arith.constant 0 : index
    %c0_3 = arith.constant 0 : index
    %3 = vector.load %arg3[%c0_2, %c0_3] : memref<32x32xbf16, #tpu.memory_space<vmem>>, vector<32x32xbf16>
    %cst = arith.constant dense<0.000000e+00> : vector<8x32xf32>
    %4 = tpu.matmul %2, %3, %cst {dimension_numbers = #tpu.dot_dimension_numbers<[1], [0], [0], [1], [0, 0, 1, 1], [], []>} : vector<8x32xbf16>, vector<32x32xbf16>, vector<8x32xf32> -> vector<8x32xf32>
    %c0_4 = arith.constant 0 : index
    %c0_5 = arith.constant 0 : index
    %5 = vector.load %arg4[%c0_4, %c0_5] : memref<1x32xf32, #tpu.memory_space<vmem>>, vector<1x32xf32>
    %6 = vector.broadcast %5 : vector<1x32xf32> to vector<8x32xf32>
    %7 = arith.addf %4, %6 : vector<8x32xf32>
    %c0_6 = arith.constant 0 : index
    %c0_7 = arith.constant 0 : index
    %8 = vector.load %arg5[%c0_6, %c0_7] : memref<32x32xbf16, #tpu.memory_space<vmem>>, vector<32x32xbf16>
    %cst_8 = arith.constant dense<0.000000e+00> : vector<8x32xf32>
    %9 = tpu.matmul %2, %8, %cst_8 {dimension_numbers = #tpu.dot_dimension_numbers<[1], [0], [0], [1], [0, 0, 1, 1], [], []>} : vector<8x32xbf16>, vector<32x32xbf16>, vector<8x32xf32> -> vector<8x32xf32>
    %c0_9 = arith.constant 0 : index
    %c0_10 = arith.constant 0 : index
    %10 = vector.load %arg6[%c0_9, %c0_10] : memref<1x32xf32, #tpu.memory_space<vmem>>, vector<1x32xf32>
    %11 = vector.broadcast %10 : vector<1x32xf32> to vector<8x32xf32>
    %12 = arith.addf %9, %11 : vector<8x32xf32>
    %c0_11 = arith.constant 0 : index
    %c0_12 = arith.constant 0 : index
    %13 = vector.load %arg7[%c0_11, %c0_12] : memref<32x32xbf16, #tpu.memory_space<vmem>>, vector<32x32xbf16>
    %cst_13 = arith.constant dense<0.000000e+00> : vector<8x32xf32>
    %14 = tpu.matmul %2, %13, %cst_13 {dimension_numbers = #tpu.dot_dimension_numbers<[1], [0], [0], [1], [0, 0, 1, 1], [], []>} : vector<8x32xbf16>, vector<32x32xbf16>, vector<8x32xf32> -> vector<8x32xf32>
    %c0_14 = arith.constant 0 : index
    %c0_15 = arith.constant 0 : index
    %15 = vector.load %arg8[%c0_14, %c0_15] : memref<1x32xf32, #tpu.memory_space<vmem>>, vector<1x32xf32>
    %16 = vector.broadcast %15 : vector<1x32xf32> to vector<8x32xf32>
    %17 = arith.addf %14, %16 : vector<8x32xf32>
    %cst_16 = arith.constant 0.353553385 : f32
    %18 = vector.broadcast %cst_16 : f32 to vector<8x32xf32>
    %19 = arith.mulf %7, %18 : vector<8x32xf32>
    %20 = arith.truncf %19 : vector<8x32xf32> to vector<8x32xbf16>
    %21 = arith.truncf %12 : vector<8x32xf32> to vector<8x32xbf16>
    %22 = arith.truncf %17 : vector<8x32xf32> to vector<8x32xbf16>
    %c0_17 = arith.constant 0 : index
    %c0_18 = arith.constant 0 : index
    %c0_19 = arith.constant 0 : index
    %23 = vector.load %arg2[%c0_17, %c0_18, %c0_19] : memref<1x1x8xf32, #tpu.memory_space<vmem>>, vector<1x1x8xf32>
    %24 = vector.shape_cast %23 : vector<1x1x8xf32> to vector<1x8xf32>
    %cst_20 = arith.constant 1.000000e+09 : f32
    %25 = vector.broadcast %cst_20 : f32 to vector<1x8xf32>
    %26 = arith.mulf %24, %25 : vector<1x8xf32>
    %27 = vector.extract_strided_slice %20 {offsets = [0, 0], sizes = [8, 8], strides = [1, 1]} : vector<8x32xbf16> to vector<8x8xbf16>
    %28 = vector.extract_strided_slice %21 {offsets = [0, 0], sizes = [8, 8], strides = [1, 1]} : vector<8x32xbf16> to vector<8x8xbf16>
    %29 = vector.extract_strided_slice %22 {offsets = [0, 0], sizes = [8, 8], strides = [1, 1]} : vector<8x32xbf16> to vector<8x8xbf16>
    %cst_21 = arith.constant dense<0.000000e+00> : vector<8x8xf32>
    %30 = tpu.matmul %27, %28, %cst_21 {dimension_numbers = #tpu.dot_dimension_numbers<[1], [1], [0], [0], [0, 0, 1, 0], [], []>} : vector<8x8xbf16>, vector<8x8xbf16>, vector<8x8xf32> -> vector<8x8xf32>
    %31 = vector.broadcast %26 : vector<1x8xf32> to vector<8x8xf32>
    %32 = arith.subf %30, %31 : vector<8x8xf32>
    %cst_22 = arith.constant dense<0xFF800000> : vector<8xf32>
    %33 = vector.multi_reduction <maximumf>, %32, %cst_22 [1] : vector<8x8xf32> to vector<8xf32>
    %34 = vector.shape_cast %33 : vector<8xf32> to vector<8x1xf32>
    %35 = vector.broadcast %34 : vector<8x1xf32> to vector<8x8xf32>
    %36 = arith.subf %32, %35 : vector<8x8xf32>
    %37 = math.exp %36 : vector<8x8xf32>
    %cst_23 = arith.constant dense<0.000000e+00> : vector<8xf32>
    %38 = vector.multi_reduction <add>, %37, %cst_23 [1] : vector<8x8xf32> to vector<8xf32>
    %39 = vector.shape_cast %38 : vector<8xf32> to vector<8x1xf32>
    %40 = tpu.reciprocal %39 {approx = true} : vector<8x1xf32> -> vector<8x1xf32>
    %41 = vector.broadcast %40 : vector<8x1xf32> to vector<8x8xf32>
    %42 = arith.mulf %37, %41 : vector<8x8xf32>
    %c0_24 = arith.constant 0 : index
    %c0_25 = arith.constant 0 : index
    %c0_26 = arith.constant 0 : index
    %c0_27 = arith.constant 0 : index
    %43 = vector.load %arg20[%c0_24, %c0_25, %c0_26, %c0_27] : memref<1x4x8x8xf32, #tpu.memory_space<vmem>>, vector<1x1x8x8xf32>
    %44 = vector.shape_cast %43 : vector<1x1x8x8xf32> to vector<8x8xf32>
    %45 = vector.shape_cast %42 : vector<8x8xf32> to vector<1x1x8x8xf32>
    tpu.vector_store %arg20[%c0_24, %c0_25, %c0_26, %c0_27], %45 {strides = array<i32>} : memref<1x4x8x8xf32, #tpu.memory_space<vmem>>, vector<1x1x8x8xf32>,
    %46 = arith.truncf %42 : vector<8x8xf32> to vector<8x8xbf16>
    %cst_28 = arith.constant dense<0.000000e+00> : vector<8x8xf32>
    %47 = tpu.matmul %46, %29, %cst_28 {dimension_numbers = #tpu.dot_dimension_numbers<[1], [0], [0], [1], [0, 0, 1, 1], [], []>} : vector<8x8xbf16>, vector<8x8xbf16>, vector<8x8xf32> -> vector<8x8xf32>
    %48 = arith.truncf %47 : vector<8x8xf32> to vector<8x8xbf16>
    %c0_29 = arith.constant 0 : index
    %c0_30 = arith.constant 0 : index
    %49 = vector.load %arg21[%c0_29, %c0_30] : memref<8x32xbf16, #tpu.memory_space<vmem>>, vector<8x8xbf16>
    tpu.vector_store %arg21[%c0_29, %c0_30], %48 {strides = array<i32>} : memref<8x32xbf16, #tpu.memory_space<vmem>>, vector<8x8xbf16>,
    %50 = vector.extract_strided_slice %20 {offsets = [0, 8], sizes = [8, 8], strides = [1, 1]} : vector<8x32xbf16> to vector<8x8xbf16>
    %51 = vector.extract_strided_slice %21 {offsets = [0, 8], sizes = [8, 8], strides = [1, 1]} : vector<8x32xbf16> to vector<8x8xbf16>
    %52 = vector.extract_strided_slice %22 {offsets = [0, 8], sizes = [8, 8], strides = [1, 1]} : vector<8x32xbf16> to vector<8x8xbf16>
    %cst_31 = arith.constant dense<0.000000e+00> : vector<8x8xf32>
    %53 = tpu.matmul %50, %51, %cst_31 {dimension_numbers = #tpu.dot_dimension_numbers<[1], [1], [0], [0], [0, 0, 1, 0], [], []>} : vector<8x8xbf16>, vector<8x8xbf16>, vector<8x8xf32> -> vector<8x8xf32>
    %54 = vector.broadcast %26 : vector<1x8xf32> to vector<8x8xf32>
    %55 = arith.subf %53, %54 : vector<8x8xf32>
    %cst_32 = arith.constant dense<0xFF800000> : vector<8xf32>
    %56 = vector.multi_reduction <maximumf>, %55, %cst_32 [1] : vector<8x8xf32> to vector<8xf32>
    %57 = vector.shape_cast %56 : vector<8xf32> to vector<8x1xf32>
    %58 = vector.broadcast %57 : vector<8x1xf32> to vector<8x8xf32>
    %59 = arith.subf %55, %58 : vector<8x8xf32>
    %60 = math.exp %59 : vector<8x8xf32>
    %cst_33 = arith.constant dense<0.000000e+00> : vector<8xf32>
    %61 = vector.multi_reduction <add>, %60, %cst_33 [1] : vector<8x8xf32> to vector<8xf32>
    %62 = vector.shape_cast %61 : vector<8xf32> to vector<8x1xf32>
    %63 = tpu.reciprocal %62 {approx = true} : vector<8x1xf32> -> vector<8x1xf32>
    %64 = vector.broadcast %63 : vector<8x1xf32> to vector<8x8xf32>
    %65 = arith.mulf %60, %64 : vector<8x8xf32>
    %c0_34 = arith.constant 0 : index
    %c1 = arith.constant 1 : index
    %c0_35 = arith.constant 0 : index
    %c0_36 = arith.constant 0 : index
    %66 = vector.load %arg20[%c0_34, %c1, %c0_35, %c0_36] : memref<1x4x8x8xf32, #tpu.memory_space<vmem>>, vector<1x1x8x8xf32>
    %67 = vector.shape_cast %66 : vector<1x1x8x8xf32> to vector<8x8xf32>
    %68 = vector.shape_cast %65 : vector<8x8xf32> to vector<1x1x8x8xf32>
    tpu.vector_store %arg20[%c0_34, %c1, %c0_35, %c0_36], %68 {strides = array<i32>} : memref<1x4x8x8xf32, #tpu.memory_space<vmem>>, vector<1x1x8x8xf32>,
    %69 = arith.truncf %65 : vector<8x8xf32> to vector<8x8xbf16>
    %cst_37 = arith.constant dense<0.000000e+00> : vector<8x8xf32>
    %70 = tpu.matmul %69, %52, %cst_37 {dimension_numbers = #tpu.dot_dimension_numbers<[1], [0], [0], [1], [0, 0, 1, 1], [], []>} : vector<8x8xbf16>, vector<8x8xbf16>, vector<8x8xf32> -> vector<8x8xf32>
    %71 = arith.truncf %70 : vector<8x8xf32> to vector<8x8xbf16>
    %c0_38 = arith.constant 0 : index
    %c8 = arith.constant 8 : index
    %72 = vector.load %arg21[%c0_38, %c8] : memref<8x32xbf16, #tpu.memory_space<vmem>>, vector<8x8xbf16>
    tpu.vector_store %arg21[%c0_38, %c8], %71 {strides = array<i32>} : memref<8x32xbf16, #tpu.memory_space<vmem>>, vector<8x8xbf16>,
    %73 = vector.extract_strided_slice %20 {offsets = [0, 16], sizes = [8, 8], strides = [1, 1]} : vector<8x32xbf16> to vector<8x8xbf16>
    %74 = vector.extract_strided_slice %21 {offsets = [0, 16], sizes = [8, 8], strides = [1, 1]} : vector<8x32xbf16> to vector<8x8xbf16>
    %75 = vector.extract_strided_slice %22 {offsets = [0, 16], sizes = [8, 8], strides = [1, 1]} : vector<8x32xbf16> to vector<8x8xbf16>
    %cst_39 = arith.constant dense<0.000000e+00> : vector<8x8xf32>
    %76 = tpu.matmul %73, %74, %cst_39 {dimension_numbers = #tpu.dot_dimension_numbers<[1], [1], [0], [0], [0, 0, 1, 0], [], []>} : vector<8x8xbf16>, vector<8x8xbf16>, vector<8x8xf32> -> vector<8x8xf32>
    %77 = vector.broadcast %26 : vector<1x8xf32> to vector<8x8xf32>
    %78 = arith.subf %76, %77 : vector<8x8xf32>
    %cst_40 = arith.constant dense<0xFF800000> : vector<8xf32>
    %79 = vector.multi_reduction <maximumf>, %78, %cst_40 [1] : vector<8x8xf32> to vector<8xf32>
    %80 = vector.shape_cast %79 : vector<8xf32> to vector<8x1xf32>
    %81 = vector.broadcast %80 : vector<8x1xf32> to vector<8x8xf32>
    %82 = arith.subf %78, %81 : vector<8x8xf32>
    %83 = math.exp %82 : vector<8x8xf32>
    %cst_41 = arith.constant dense<0.000000e+00> : vector<8xf32>
    %84 = vector.multi_reduction <add>, %83, %cst_41 [1] : vector<8x8xf32> to vector<8xf32>
    %85 = vector.shape_cast %84 : vector<8xf32> to vector<8x1xf32>
    %86 = tpu.reciprocal %85 {approx = true} : vector<8x1xf32> -> vector<8x1xf32>
    %87 = vector.broadcast %86 : vector<8x1xf32> to vector<8x8xf32>
    %88 = arith.mulf %83, %87 : vector<8x8xf32>
    %c0_42 = arith.constant 0 : index
    %c2 = arith.constant 2 : index
    %c0_43 = arith.constant 0 : index
    %c0_44 = arith.constant 0 : index
    %89 = vector.load %arg20[%c0_42, %c2, %c0_43, %c0_44] : memref<1x4x8x8xf32, #tpu.memory_space<vmem>>, vector<1x1x8x8xf32>
    %90 = vector.shape_cast %89 : vector<1x1x8x8xf32> to vector<8x8xf32>
    %91 = vector.shape_cast %88 : vector<8x8xf32> to vector<1x1x8x8xf32>
    tpu.vector_store %arg20[%c0_42, %c2, %c0_43, %c0_44], %91 {strides = array<i32>} : memref<1x4x8x8xf32, #tpu.memory_space<vmem>>, vector<1x1x8x8xf32>,
    %92 = arith.truncf %88 : vector<8x8xf32> to vector<8x8xbf16>
    %cst_45 = arith.constant dense<0.000000e+00> : vector<8x8xf32>
    %93 = tpu.matmul %92, %75, %cst_45 {dimension_numbers = #tpu.dot_dimension_numbers<[1], [0], [0], [1], [0, 0, 1, 1], [], []>} : vector<8x8xbf16>, vector<8x8xbf16>, vector<8x8xf32> -> vector<8x8xf32>
    %94 = arith.truncf %93 : vector<8x8xf32> to vector<8x8xbf16>
    %c0_46 = arith.constant 0 : index
    %c16 = arith.constant 16 : index
    %95 = vector.load %arg21[%c0_46, %c16] : memref<8x32xbf16, #tpu.memory_space<vmem>>, vector<8x8xbf16>
    tpu.vector_store %arg21[%c0_46, %c16], %94 {strides = array<i32>} : memref<8x32xbf16, #tpu.memory_space<vmem>>, vector<8x8xbf16>,
    %96 = vector.extract_strided_slice %20 {offsets = [0, 24], sizes = [8, 8], strides = [1, 1]} : vector<8x32xbf16> to vector<8x8xbf16>
    %97 = vector.extract_strided_slice %21 {offsets = [0, 24], sizes = [8, 8], strides = [1, 1]} : vector<8x32xbf16> to vector<8x8xbf16>
    %98 = vector.extract_strided_slice %22 {offsets = [0, 24], sizes = [8, 8], strides = [1, 1]} : vector<8x32xbf16> to vector<8x8xbf16>
    %cst_47 = arith.constant dense<0.000000e+00> : vector<8x8xf32>
    %99 = tpu.matmul %96, %97, %cst_47 {dimension_numbers = #tpu.dot_dimension_numbers<[1], [1], [0], [0], [0, 0, 1, 0], [], []>} : vector<8x8xbf16>, vector<8x8xbf16>, vector<8x8xf32> -> vector<8x8xf32>
    %100 = vector.broadcast %26 : vector<1x8xf32> to vector<8x8xf32>
    %101 = arith.subf %99, %100 : vector<8x8xf32>
    %cst_48 = arith.constant dense<0xFF800000> : vector<8xf32>
    %102 = vector.multi_reduction <maximumf>, %101, %cst_48 [1] : vector<8x8xf32> to vector<8xf32>
    %103 = vector.shape_cast %102 : vector<8xf32> to vector<8x1xf32>
    %104 = vector.broadcast %103 : vector<8x1xf32> to vector<8x8xf32>
    %105 = arith.subf %101, %104 : vector<8x8xf32>
    %106 = math.exp %105 : vector<8x8xf32>
    %cst_49 = arith.constant dense<0.000000e+00> : vector<8xf32>
    %107 = vector.multi_reduction <add>, %106, %cst_49 [1] : vector<8x8xf32> to vector<8xf32>
    %108 = vector.shape_cast %107 : vector<8xf32> to vector<8x1xf32>
    %109 = tpu.reciprocal %108 {approx = true} : vector<8x1xf32> -> vector<8x1xf32>
    %110 = vector.broadcast %109 : vector<8x1xf32> to vector<8x8xf32>
    %111 = arith.mulf %106, %110 : vector<8x8xf32>
    %c0_50 = arith.constant 0 : index
    %c3 = arith.constant 3 : index
    %c0_51 = arith.constant 0 : index
    %c0_52 = arith.constant 0 : index
    %112 = vector.load %arg20[%c0_50, %c3, %c0_51, %c0_52] : memref<1x4x8x8xf32, #tpu.memory_space<vmem>>, vector<1x1x8x8xf32>
    %113 = vector.shape_cast %112 : vector<1x1x8x8xf32> to vector<8x8xf32>
    %114 = vector.shape_cast %111 : vector<8x8xf32> to vector<1x1x8x8xf32>
    tpu.vector_store %arg20[%c0_50, %c3, %c0_51, %c0_52], %114 {strides = array<i32>} : memref<1x4x8x8xf32, #tpu.memory_space<vmem>>, vector<1x1x8x8xf32>,
    %115 = arith.truncf %111 : vector<8x8xf32> to vector<8x8xbf16>
    %cst_53 = arith.constant dense<0.000000e+00> : vector<8x8xf32>
    %116 = tpu.matmul %115, %98, %cst_53 {dimension_numbers = #tpu.dot_dimension_numbers<[1], [0], [0], [1], [0, 0, 1, 1], [], []>} : vector<8x8xbf16>, vector<8x8xbf16>, vector<8x8xf32> -> vector<8x8xf32>
    %117 = arith.truncf %116 : vector<8x8xf32> to vector<8x8xbf16>
    %c0_54 = arith.constant 0 : index
    %c24 = arith.constant 24 : index
    %118 = vector.load %arg21[%c0_54, %c24] : memref<8x32xbf16, #tpu.memory_space<vmem>>, vector<8x8xbf16>
    tpu.vector_store %arg21[%c0_54, %c24], %117 {strides = array<i32>} : memref<8x32xbf16, #tpu.memory_space<vmem>>, vector<8x8xbf16>,
    %c0_55 = arith.constant 0 : index
    %c0_56 = arith.constant 0 : index
    %119 = vector.load %arg21[%c0_55, %c0_56] : memref<8x32xbf16, #tpu.memory_space<vmem>>, vector<8x32xbf16>
    %c0_57 = arith.constant 0 : index
    %c0_58 = arith.constant 0 : index
    %120 = vector.load %arg9[%c0_57, %c0_58] : memref<32x32xbf16, #tpu.memory_space<vmem>>, vector<32x32xbf16>
    %cst_59 = arith.constant dense<0.000000e+00> : vector<8x32xf32>
    %121 = tpu.matmul %119, %120, %cst_59 {dimension_numbers = #tpu.dot_dimension_numbers<[1], [0], [0], [1], [0, 0, 1, 1], [], []>} : vector<8x32xbf16>, vector<32x32xbf16>, vector<8x32xf32> -> vector<8x32xf32>
    %c0_60 = arith.constant 0 : index
    %c0_61 = arith.constant 0 : index
    %122 = vector.load %arg10[%c0_60, %c0_61] : memref<1x32xf32, #tpu.memory_space<vmem>>, vector<1x32xf32>
    %123 = vector.broadcast %122 : vector<1x32xf32> to vector<8x32xf32>
    %124 = arith.addf %121, %123 : vector<8x32xf32>
    %125 = arith.addf %1, %124 : vector<8x32xf32>
    %c0_62 = arith.constant 0 : index
    %c0_63 = arith.constant 0 : index
    %126 = vector.load %arg11[%c0_62, %c0_63] : memref<1x32xf32, #tpu.memory_space<vmem>>, vector<1x32xf32>
    %c0_64 = arith.constant 0 : index
    %c0_65 = arith.constant 0 : index
    %127 = vector.load %arg12[%c0_64, %c0_65] : memref<1x32xf32, #tpu.memory_space<vmem>>, vector<1x32xf32>
    %cst_66 = arith.constant dense<0.000000e+00> : vector<8xf32>
    %128 = vector.multi_reduction <add>, %125, %cst_66 [1] : vector<8x32xf32> to vector<8xf32>
    %129 = vector.shape_cast %128 : vector<8xf32> to vector<8x1xf32>
    %cst_67 = arith.constant 3.200000e+01 : f32
    %130 = vector.broadcast %cst_67 : f32 to vector<8x1xf32>
    %131 = arith.divf %129, %130 : vector<8x1xf32>
    %132 = vector.broadcast %131 : vector<8x1xf32> to vector<8x32xf32>
    %133 = arith.subf %125, %132 : vector<8x32xf32>
    %134 = arith.mulf %133, %133 : vector<8x32xf32>
    %cst_68 = arith.constant dense<0.000000e+00> : vector<8xf32>
    %135 = vector.multi_reduction <add>, %134, %cst_68 [1] : vector<8x32xf32> to vector<8xf32>
    %136 = vector.shape_cast %135 : vector<8xf32> to vector<8x1xf32>
    %cst_69 = arith.constant 3.200000e+01 : f32
    %137 = vector.broadcast %cst_69 : f32 to vector<8x1xf32>
    %138 = arith.divf %136, %137 : vector<8x1xf32>
    %139 = vector.broadcast %131 : vector<8x1xf32> to vector<8x32xf32>
    %140 = arith.subf %125, %139 : vector<8x32xf32>
    %cst_70 = arith.constant 9.99999997E-7 : f32
    %141 = vector.broadcast %cst_70 : f32 to vector<8x1xf32>
    %142 = arith.addf %138, %141 : vector<8x1xf32>
    %143 = math.rsqrt %142 : vector<8x1xf32>
    %144 = vector.broadcast %143 : vector<8x1xf32> to vector<8x32xf32>
    %145 = arith.mulf %140, %144 : vector<8x32xf32>
    %146 = vector.broadcast %126 : vector<1x32xf32> to vector<8x32xf32>
    %147 = arith.mulf %145, %146 : vector<8x32xf32>
    %148 = vector.broadcast %127 : vector<1x32xf32> to vector<8x32xf32>
    %149 = arith.addf %147, %148 : vector<8x32xf32>
    %150 = arith.truncf %149 : vector<8x32xf32> to vector<8x32xbf16>
    %c0_71 = arith.constant 0 : index
    %c0_72 = arith.constant 0 : index
    %151 = vector.load %arg13[%c0_71, %c0_72] : memref<32x64xbf16, #tpu.memory_space<vmem>>, vector<32x64xbf16>
    %cst_73 = arith.constant dense<0.000000e+00> : vector<8x64xf32>
    %152 = tpu.matmul %150, %151, %cst_73 {dimension_numbers = #tpu.dot_dimension_numbers<[1], [0], [0], [1], [0, 0, 1, 1], [], []>} : vector<8x32xbf16>, vector<32x64xbf16>, vector<8x64xf32> -> vector<8x64xf32>
    %c0_74 = arith.constant 0 : index
    %c0_75 = arith.constant 0 : index
    %153 = vector.load %arg14[%c0_74, %c0_75] : memref<1x64xf32, #tpu.memory_space<vmem>>, vector<1x64xf32>
    %154 = vector.broadcast %153 : vector<1x64xf32> to vector<8x64xf32>
    %155 = arith.addf %152, %154 : vector<8x64xf32>
    %cst_76 = arith.constant 0.000000e+00 : f32
    %156 = vector.broadcast %cst_76 : f32 to vector<8x64xf32>
    %157 = arith.maximumf %155, %156 : vector<8x64xf32>
    %158 = arith.truncf %157 : vector<8x64xf32> to vector<8x64xbf16>
    %c0_77 = arith.constant 0 : index
    %c0_78 = arith.constant 0 : index
    %159 = vector.load %arg15[%c0_77, %c0_78] : memref<64x32xbf16, #tpu.memory_space<vmem>>, vector<64x32xbf16>
    %cst_79 = arith.constant dense<0.000000e+00> : vector<8x32xf32>
    %160 = tpu.matmul %158, %159, %cst_79 {dimension_numbers = #tpu.dot_dimension_numbers<[1], [0], [0], [1], [0, 0, 1, 1], [], []>} : vector<8x64xbf16>, vector<64x32xbf16>, vector<8x32xf32> -> vector<8x32xf32>
    %c0_80 = arith.constant 0 : index
    %c0_81 = arith.constant 0 : index
    %161 = vector.load %arg16[%c0_80, %c0_81] : memref<1x32xf32, #tpu.memory_space<vmem>>, vector<1x32xf32>
    %162 = vector.broadcast %161 : vector<1x32xf32> to vector<8x32xf32>
    %163 = arith.addf %160, %162 : vector<8x32xf32>
    %164 = arith.addf %163, %149 : vector<8x32xf32>
    %c0_82 = arith.constant 0 : index
    %c0_83 = arith.constant 0 : index
    %165 = vector.load %arg17[%c0_82, %c0_83] : memref<1x32xf32, #tpu.memory_space<vmem>>, vector<1x32xf32>
    %c0_84 = arith.constant 0 : index
    %c0_85 = arith.constant 0 : index
    %166 = vector.load %arg18[%c0_84, %c0_85] : memref<1x32xf32, #tpu.memory_space<vmem>>, vector<1x32xf32>
    %cst_86 = arith.constant dense<0.000000e+00> : vector<8xf32>
    %167 = vector.multi_reduction <add>, %164, %cst_86 [1] : vector<8x32xf32> to vector<8xf32>
    %168 = vector.shape_cast %167 : vector<8xf32> to vector<8x1xf32>
    %cst_87 = arith.constant 3.200000e+01 : f32
    %169 = vector.broadcast %cst_87 : f32 to vector<8x1xf32>
    %170 = arith.divf %168, %169 : vector<8x1xf32>
    %171 = vector.broadcast %170 : vector<8x1xf32> to vector<8x32xf32>
    %172 = arith.subf %164, %171 : vector<8x32xf32>
    %173 = arith.mulf %172, %172 : vector<8x32xf32>
    %cst_88 = arith.constant dense<0.000000e+00> : vector<8xf32>
    %174 = vector.multi_reduction <add>, %173, %cst_88 [1] : vector<8x32xf32> to vector<8xf32>
    %175 = vector.shape_cast %174 : vector<8xf32> to vector<8x1xf32>
    %cst_89 = arith.constant 3.200000e+01 : f32
    %176 = vector.broadcast %cst_89 : f32 to vector<8x1xf32>
    %177 = arith.divf %175, %176 : vector<8x1xf32>
    %178 = vector.broadcast %170 : vector<8x1xf32> to vector<8x32xf32>
    %179 = arith.subf %164, %178 : vector<8x32xf32>
    %cst_90 = arith.constant 9.99999997E-7 : f32
    %180 = vector.broadcast %cst_90 : f32 to vector<8x1xf32>
    %181 = arith.addf %177, %180 : vector<8x1xf32>
    %182 = math.rsqrt %181 : vector<8x1xf32>
    %183 = vector.broadcast %182 : vector<8x1xf32> to vector<8x32xf32>
    %184 = arith.mulf %179, %183 : vector<8x32xf32>
    %185 = vector.broadcast %165 : vector<1x32xf32> to vector<8x32xf32>
    %186 = arith.mulf %184, %185 : vector<8x32xf32>
    %187 = vector.broadcast %166 : vector<1x32xf32> to vector<8x32xf32>
    %188 = arith.addf %186, %187 : vector<8x32xf32>
    %c0_91 = arith.constant 0 : index
    %c0_92 = arith.constant 0 : index
    %c0_93 = arith.constant 0 : index
    %189 = vector.load %arg19[%c0_91, %c0_92, %c0_93] : memref<1x8x32xf32, #tpu.memory_space<vmem>>, vector<1x8x32xf32>
    %190 = vector.shape_cast %189 : vector<1x8x32xf32> to vector<8x32xf32>
    %191 = vector.shape_cast %188 : vector<8x32xf32> to vector<1x8x32xf32>
    tpu.vector_store %arg19[%c0_91, %c0_92, %c0_93], %191 {strides = array<i32>} : memref<1x8x32xf32, #tpu.memory_space<vmem>>, vector<1x8x32xf32>,
    return
  }
  func.func @transform_0(%arg0: i32) -> (i32, i32, i32) {
    %c0_i32 = arith.constant 0 : i32
    %c0_i32_0 = arith.constant 0 : i32
    %c0_i32_1 = arith.constant 0 : i32
    return %arg0, %c0_i32, %c0_i32_0 : i32, i32, i32
  }
  func.func @transform_1(%arg0: i32) -> (i32, i32, i32) {
    %c0_i32 = arith.constant 0 : i32
    %c0_i32_0 = arith.constant 0 : i32
    %c0_i32_1 = arith.constant 0 : i32
    return %arg0, %c0_i32, %c0_i32_0 : i32, i32, i32
  }
  func.func @transform_2(%arg0: i32) -> (i32, i32) {
    %c0_i32 = arith.constant 0 : i32
    %c0_i32_0 = arith.constant 0 : i32
    %c0_i32_1 = arith.constant 0 : i32
    return %c0_i32, %c0_i32_0 : i32, i32
  }
  func.func @transform_3(%arg0: i32) -> (i32, i32) {
    %c0_i32 = arith.constant 0 : i32
    %c0_i32_0 = arith.constant 0 : i32
    %c0_i32_1 = arith.constant 0 : i32
    return %c0_i32, %c0_i32_0 : i32, i32
  }
  func.func @transform_4(%arg0: i32) -> (i32, i32) {
    %c0_i32 = arith.constant 0 : i32
    %c0_i32_0 = arith.constant 0 : i32
    %c0_i32_1 = arith.constant 0 : i32
    return %c0_i32, %c0_i32_0 : i32, i32
  }
  func.func @transform_5(%arg0: i32) -> (i32, i32) {
    %c0_i32 = arith.constant 0 : i32
    %c0_i32_0 = arith.constant 0 : i32
    %c0_i32_1 = arith.constant 0 : i32
    return %c0_i32, %c0_i32_0 : i32, i32
  }
  func.func @transform_6(%arg0: i32) -> (i32, i32) {
    %c0_i32 = arith.constant 0 : i32
    %c0_i32_0 = arith.constant 0 : i32
    %c0_i32_1 = arith.constant 0 : i32
    return %c0_i32, %c0_i32_0 : i32, i32
  }
  func.func @transform_7(%arg0: i32) -> (i32, i32) {
    %c0_i32 = arith.constant 0 : i32
    %c0_i32_0 = arith.constant 0 : i32
    %c0_i32_1 = arith.constant 0 : i32
    return %c0_i32, %c0_i32_0 : i32, i32
  }
  func.func @transform_8(%arg0: i32) -> (i32, i32) {
    %c0_i32 = arith.constant 0 : i32
    %c0_i32_0 = arith.constant 0 : i32
    %c0_i32_1 = arith.constant 0 : i32
    return %c0_i32, %c0_i32_0 : i32, i32
  }
  func.func @transform_9(%arg0: i32) -> (i32, i32) {
    %c0_i32 = arith.constant 0 : i32
    %c0_i32_0 = arith.constant 0 : i32
    %c0_i32_1 = arith.constant 0 : i32
    return %c0_i32, %c0_i32_0 : i32, i32
  }
  func.func @transform_10(%arg0: i32) -> (i32, i32) {
    %c0_i32 = arith.constant 0 : i32
    %c0_i32_0 = arith.constant 0 : i32
    %c0_i32_1 = arith.constant 0 : i32
    return %c0_i32, %c0_i32_0 : i32, i32
  }
  func.func @transform_11(%arg0: i32) -> (i32, i32) {
    %c0_i32 = arith.constant 0 : i32
    %c0_i32_0 = arith.constant 0 : i32
    %c0_i32_1 = arith.constant 0 : i32
    return %c0_i32, %c0_i32_0 : i32, i32
  }
  func.func @transform_12(%arg0: i32) -> (i32, i32) {
    %c0_i32 = arith.constant 0 : i32
    %c0_i32_0 = arith.constant 0 : i32
    %c0_i32_1 = arith.constant 0 : i32
    return %c0_i32, %c0_i32_0 : i32, i32
  }
  func.func @transform_13(%arg0: i32) -> (i32, i32) {
    %c0_i32 = arith.constant 0 : i32
    %c0_i32_0 = arith.constant 0 : i32
    %c0_i32_1 = arith.constant 0 : i32
    return %c0_i32, %c0_i32_0 : i32, i32
  }
  func.func @transform_14(%arg0: i32) -> (i32, i32) {
    %c0_i32 = arith.constant 0 : i32
    %c0_i32_0 = arith.constant 0 : i32
    %c0_i32_1 = arith.constant 0 : i32
    return %c0_i32, %c0_i32_0 : i32, i32
  }
  func.func @transform_15(%arg0: i32) -> (i32, i32) {
    %c0_i32 = arith.constant 0 : i32
    %c0_i32_0 = arith.constant 0 : i32
    %c0_i32_1 = arith.constant 0 : i32
    return %c0_i32, %c0_i32_0 : i32, i32
  }
  func.func @transform_16(%arg0: i32) -> (i32, i32) {
    %c0_i32 = arith.constant 0 : i32
    %c0_i32_0 = arith.constant 0 : i32
    %c0_i32_1 = arith.constant 0 : i32
    return %c0_i32, %c0_i32_0 : i32, i32
  }
  func.func @transform_17(%arg0: i32) -> (i32, i32) {
    %c0_i32 = arith.constant 0 : i32
    %c0_i32_0 = arith.constant 0 : i32
    %c0_i32_1 = arith.constant 0 : i32
    return %c0_i32, %c0_i32_0 : i32, i32
  }
  func.func @transform_18(%arg0: i32) -> (i32, i32, i32) {
    %c0_i32 = arith.constant 0 : i32
    %c0_i32_0 = arith.constant 0 : i32
    %c0_i32_1 = arith.constant 0 : i32
    return %arg0, %c0_i32, %c0_i32_0 : i32, i32, i32
  }
  func.func @transform_19(%arg0: i32) -> (i32, i32, i32, i32) {
    %c0_i32 = arith.constant 0 : i32
    %c0_i32_0 = arith.constant 0 : i32
    %c0_i32_1 = arith.constant 0 : i32
    %c0_i32_2 = arith.constant 0 : i32
    return %arg0, %c0_i32, %c0_i32_0, %c0_i32_1 : i32, i32, i32, i32
  }
}

</mosaic_0001>

<bundles_post_ra>
// kernel: tpu_custom_call.1
= control target key start
LH: loop header
LB: loop body
LE: loop exit
PB: predicated region body
PF: predicated region fallthrough
CT: control target
= control target key end

     0   :  { %s4163_s0 = inlined_call_operand.hbm [shape: f32[2,8,32], index: 0, kind: input, shape index: {}]   ;;  %s4164_s1 = inlined_call_operand.hbm [shape: f32[2,1,8], index: 1, kind: input, shape index: {}]   ;;  %s4165_s2 = inlined_call_operand.hbm [shape: bf16[32,32], index: 2, kind: input, shape index: {}]   ;;  %s4166_s3 = inlined_call_operand.hbm [shape: f32[1,32], index: 3, kind: input, shape index: {}]   ;;  %s4167_s4 = inlined_call_operand.hbm [shape: bf16[32,32], index: 4, kind: input, shape index: {}]   ;;  %s4168_s5 = inlined_call_operand.hbm [shape: f32[1,32], index: 5, kind: input, shape index: {}]   ;;  %s4169_s6 = inlined_call_operand.hbm [shape: bf16[32,32], index: 6, kind: input, shape index: {}]   ;;  %s4170_s7 = inlined_call_operand.hbm [shape: f32[1,32], index: 7, kind: input, shape index: {}]   ;;  %s4171_s8 = inlined_call_operand.hbm [shape: bf16[32,32], index: 8, kind: input, shape index: {}]   ;;  %s4172_s9 = inlined_call_operand.hbm [shape: f32[1,32], index: 9, kind: input, shape index: {}]   ;;  %s4173_s10 = inlined_call_operand.hbm [shape: f32[1,32], index: 10, kind: input, shape index: {}]   ;;  %s4174_s11 = inlined_call_operand.hbm [shape: f32[1,32], index: 11, kind: input, shape index: {}]   ;;  %s4175_s12 = inlined_call_operand.hbm [shape: bf16[32,64], index: 12, kind: input, shape index: {}]   ;;  %s4176_s13 = inlined_call_operand.hbm [shape: f32[1,64], index: 13, kind: input, shape index: {}]   ;;  %s4177_s14 = inlined_call_operand.hbm [shape: bf16[64,32], index: 14, kind: input, shape index: {}]   ;;  %s4178_s15 = inlined_call_operand.hbm [shape: f32[1,32], index: 15, kind: input, shape index: {}]   ;;  %s4179_s16 = inlined_call_operand.hbm [shape: f32[1,32], index: 16, kind: input, shape index: {}]   ;;  %s4180_s17 = inlined_call_operand.hbm [shape: f32[1,32], index: 17, kind: input, shape index: {}]   ;;  %s4181_s18 = inlined_call_operand.hbm [shape: f32[2,8,32], index: 18, kind: output, shape index: {0}]   ;;  %s4182_s19 = inlined_call_operand.hbm [shape: f32[2,4,8,8], index: 19, kind: output, shape index: {1}]  }
   0x1   :  { %4205 = sst [smem:[#allocation54_spill]] %s4163_s0 }
   0x2   :  { %4206 = sst [smem:[#allocation55_spill]] %s4164_s1 }
   0x3   :  { %4207 = sst [smem:[#allocation56_spill]] %s4165_s2 }
   0x4   :  { %4208 = sst [smem:[#allocation57_spill]] %s4166_s3 }
   0x5   :  { %4209 = sst [smem:[#allocation58_spill]] %s4167_s4 }
   0x6   :  { %4210 = sst [smem:[#allocation59_spill]] %s4168_s5 }
   0x7   :  { %4211 = sst [smem:[#allocation60_spill]] %s4169_s6 }
   0x8   :  { %4212 = sst [smem:[#allocation61_spill]] %s4170_s7 }
   0x9   :  { %4213 = sst [smem:[#allocation62_spill]] %s4171_s8 }
   0xa   :  { %4214 = sst [smem:[#allocation63_spill]] %s4179_s16 }
   0xb   :  { %4215 = sst [smem:[#allocation64_spill]] %s4180_s17 }
   0xc   :  { %4216 = sst [smem:[#allocation65_spill]] %s4181_s18 }
   0xd   :  { %4217 = sst [smem:[#allocation66_spill]] %s4182_s19 }
   0xe   :  { %25 = vsyncpa [#allocation4], 0 }
   0xf   :  { %27 = vsyncpa [#allocation4 + $0x1], 0 }
  0x10   :  { %28 = vsyncpa [#allocation7], 0 }
  0x11   :  { %30 = vsyncpa [#allocation7 + $0x1], 0 }
  0x12   :  { %31 = vsyncpa [#allocation10], 0 }
  0x13   :  { %32 = vsyncpa [#allocation13], 0 }
  0x14   :  { %33 = vsyncpa [#allocation16], 0 }
  0x15   :  { %34 = vsyncpa [#allocation19], 0 }
  0x16   :  { %35 = vsyncpa [#allocation22], 0 }
  0x17   :  { %36 = vsyncpa [#allocation25], 0 }
  0x18   :  { %37 = vsyncpa [#allocation28], 0 }
  0x19   :  { %38 = vsyncpa [#allocation31], 0 }
  0x1a   :  { %39 = vsyncpa [#allocation5], 0 }
  0x1b   :  { %41 = vsyncpa [#allocation5 + $0x1], 0 }
  0x1c   :  { %42 = vsyncpa [#allocation34], 0 }
  0x1d   :  { %44 = vsyncpa [#allocation34 + $0x1], 0  ;;  %s3427_s0 = smov 0   ;;  %s3429_s30 = smov 0  }
  0x1e   :  { %s3431_s20 = smov 0   ;;  %s3433_s21 = smov 0  }
  0x1f LB: > { %4218 = sst [smem:[#allocation48_spill]] %s3282_s0  ;;  %s3296_s1 = smov [#allocation8]   ;;  %s3294_s21 = sphi %s3433_s21, %s4286_s21   ;;  %s3290_s20 = sphi %s3431_s20, %s4285_s20   ;;  %s3286_s30 = sphi %s3429_s30, %s4284_s30   ;;  %s3282_s0 = sphi %s3427_s0, %s4283_s0  }
  0x20   : > { %4219 = sst [smem:[#allocation49_spill]] %s3286_s30  ;;  %s507_s22 = sshll.u32 %s3296_s1, 4  ;;  %s3453_s22 = int_to_ptr.vmem [resolvable:$true] %s507_s22 }
  0x21   : > { %4220 = sst [smem:[#allocation50_spill]] %s3290_s20  ;;  %s3448_s2 = sadd.s32 4294967295, %s3294_s21  }
  0x22   : > { %4221 = sst [smem:[#allocation51_spill]] %s3294_s21  ;;  %p2154_p0 = scmp.ge.s32.totalorder %s3294_s21, 1 }
  0x23   : > { %4222 = sst [smem:[#allocation52_spill]] %s3448_s2  ;;  %p4199_p1 = scmp.eq.s32.totalorder %s3448_s2, 0 }
  0x24   : > { %p495_p2 = scmp.lt.s32.totalorder %s3294_s21, 3  ;;  %s3297_s24 = smov [#allocation9]  }
  0x25   : > { %s521_s25 = sshll.u32 %s3297_s24, 4  ;;  %s3298_s26 = smov [#allocation12]   ;;  %s3468_s25 = int_to_ptr.vmem [resolvable:$true] %s521_s25 }
  0x26   : > { %p3455_p3 = pnand %p2154_p0, %p495_p2  ;;  %s545_s27 = sshll.u32 %s3298_s26, 4  ;;  %s3470_s27 = int_to_ptr.vmem [resolvable:$true] %s545_s27 }
  0x27   : > { %s4226_s1 = sld [smem:[#allocation56_spill]] }
  0x28   : > { %s4223_s23 = scalar_select %p3455_p3, 1, 0 }
  0x29   : > { %p2458_p5 = pneg %p3455_p3 }
  0x2a   : > { %4224 = sst [smem:[#allocation53_spill]] %s4223_s23 }
  0x2b   : > { %p3464_p6 = pnand %p2458_p5, %p4199_p1 }
  0x2d   : > { %s2648_s18 = scalar_lea.hbm %s4226_s1, 256  ;;  %p3480_p8 = pneg %p3464_p6 }
  0x2e   : > { %p2649_p7 = scmp.ne.s32.totalorder %s4226_s1, %s2648_s18  ;;  %p2655_p11 = scmp.lt.u32.totalorder %s2648_s18, %s4226_s1 }
  0x30   : > { %p2651_p9 = pnand %p3480_p8, %p2649_p7 }
  0x32   : > { %p2652_p10 = pneg %p2651_p9 }
  0x34   : > { %p2657_p12 = pnand %p2655_p11, %p2652_p10 }
  0x36   : > { %2660 = shalt.err (!%p2657_p12)
}
  0x37   : > { %s2661_s19 = scalar_lea.vmem %s3453_s22, 256  ;;  %p2669_p5 = scmp.lt.s32.totalorder %s3453_s22, %s3453_s22 }
  0x38   : > { %p2662_p13 = scmp.ne.s32.totalorder %s3453_s22, %s2661_s19  ;;  %p2670_p4 = scmp.lt.s32.totalorder %s2661_s19, %s2661_s19 }
  0x3a   : > { %p2664_p0 = pnand %p2662_p13, %p3480_p8  ;;  %p2671_p7 = por %p2670_p4, %p2669_p5 }
  0x3c   : > { %p2665_p2 = pneg %p2664_p0 }
  0x3e   : > { %p2672_p9 = pnand %p2671_p7, %p2665_p2 }
  0x40   : > { %2675 = shalt.err (!%p2672_p9)
}
  0x41   : > { %s3299_s23 = smov 64   ;;  %s3300_s18 = smov 4  }
  0x42   : > { %2461 = dma.hbm_to_vmem [thread:$0]  (!%p3464_p6), %s4226_s1, 256, %s3453_s22, [#allocation7], %s3299_s23, %s3299_s23, %s3300_s18  }
  0x43   : > { %s4228_s0 = sld [smem:[#allocation57_spill]] }
  0x49   : > { %s4229_s17 = smov %s4228_s0  ;;  %s2676_s19 = scalar_lea.hbm %s4228_s0, 16 }
  0x4a   : > { %p2677_p4 = scmp.ne.s32.totalorder %s4229_s17, %s2676_s19  ;;  %p2683_p12 = scmp.lt.u32.totalorder %s2676_s19, %s4229_s17 }
  0x4c   : > { %p2679_p10 = pnand %p2677_p4, %p3480_p8 }
  0x4e   : > { %p2680_p11 = pneg %p2679_p10 }
  0x50   : > { %p2685_p13 = pnand %p2683_p12, %p2680_p11 }
  0x52   : > { %2688 = shalt.err (!%p2685_p13)
}
  0x53   : > { %s2689_s22 = scalar_lea.vmem %s3468_s25, 16  ;;  %s2696_s0 = scalar_lea.vmem %s3468_s25, 32 }
  0x54   : > { %p2690_p0 = scmp.ne.s32.totalorder %s3468_s25, %s2689_s22  ;;  %p2697_p7 = scmp.lt.s32.totalorder %s3468_s25, %s3468_s25 }
  0x55   : > { %p2698_p9 = scmp.lt.s32.totalorder %s2696_s0, %s2689_s22 }
  0x56   : > { %p2692_p2 = pnand %p2690_p0, %p3480_p8 }
  0x57   : > { %p2699_p4 = por %p2698_p9, %p2697_p7 }
  0x58   : > { %p2693_p5 = pneg %p2692_p2 }
  0x5a   : > { %p2700_p10 = pnand %p2699_p4, %p2693_p5 }
  0x5c   : > { %2703 = shalt.err (!%p2700_p10)
}
  0x5d   : > { %2464 = dma.hbm_to_vmem [thread:$0]  (!%p3464_p6), %s4229_s17, 16, %s3468_s25, [#allocation10]  }
  0x5e   : > { %s4230_s5 = sld [smem:[#allocation59_spill]] }
  0x64   : > { %s2704_s2 = scalar_lea.hbm %s4230_s5, 16 }
  0x65   : > { %p2705_p11 = scmp.ne.s32.totalorder %s4230_s5, %s2704_s2  ;;  %p2711_p0 = scmp.lt.u32.totalorder %s2704_s2, %s4230_s5 }
  0x67   : > { %p2707_p12 = pnand %p2705_p11, %p3480_p8 }
  0x69   : > { %p2708_p13 = pneg %p2707_p12 }
  0x6b   : > { %p2713_p2 = pnand %p2711_p0, %p2708_p13 }
  0x6d   : > { %2716 = shalt.err (!%p2713_p2)
}
  0x6e   : > { %s2717_s25 = scalar_lea.vmem %s3470_s27, 16  ;;  %s2724_s22 = scalar_lea.vmem %s3470_s27, 32 }
  0x6f   : > { %p2718_p5 = scmp.ne.s32.totalorder %s3470_s27, %s2717_s25  ;;  %p2725_p4 = scmp.lt.s32.totalorder %s3470_s27, %s3470_s27 }
  0x70   : > { %p2726_p10 = scmp.lt.s32.totalorder %s2724_s22, %s2717_s25 }
  0x71   : > { %p2720_p7 = pnand %p2718_p5, %p3480_p8 }
  0x72   : > { %p2727_p11 = por %p2726_p10, %p2725_p4 }
  0x73   : > { %p2721_p9 = pneg %p2720_p7 }
  0x75   : > { %p2728_p12 = pnand %p2727_p11, %p2721_p9 }
  0x77   : > { %2731 = shalt.err (!%p2728_p12)
}
  0x78   : > { %2470 = dma.hbm_to_vmem [thread:$0]  (!%p3464_p6), %s4230_s5, 16, %s3470_s27, [#allocation13]  }
  0x79   : > { %s3301_s30 = smov [#allocation15]   ;;  %s3302_s21 = smov [#allocation18]  }
  0x7a   : > { %s569_s20 = sshll.u32 %s3301_s30, 4  ;;  %s593_s2 = sshll.u32 %s3302_s21, 4  ;;  %s570_s20 = int_to_ptr.vmem [resolvable:$true] %s569_s20  ;;  %s594_s2 = int_to_ptr.vmem [resolvable:$true] %s593_s2 }
  0x7b   : > { %s4231_s7 = sld [smem:[#allocation61_spill]] }
  0x81   : > { %s2732_s26 = scalar_lea.hbm %s4231_s7, 16 }
  0x82   : > { %p2733_p13 = scmp.ne.s32.totalorder %s4231_s7, %s2732_s26  ;;  %p2739_p5 = scmp.lt.u32.totalorder %s2732_s26, %s4231_s7 }
  0x84   : > { %p2735_p0 = pnand %p2733_p13, %p3480_p8 }
  0x86   : > { %p2736_p2 = pneg %p2735_p0 }
  0x88   : > { %p2741_p7 = pnand %p2739_p5, %p2736_p2 }
  0x8a   : > { %2744 = shalt.err (!%p2741_p7)
}
  0x8b   : > { %s2745_s27 = scalar_lea.vmem %s570_s20, 16  ;;  %s2752_s16 = scalar_lea.vmem %s570_s20, 32 }
  0x8c   : > { %p2746_p9 = scmp.ne.s32.totalorder %s570_s20, %s2745_s27  ;;  %p2753_p11 = scmp.lt.s32.totalorder %s570_s20, %s570_s20 }
  0x8d   : > { %p2754_p12 = scmp.lt.s32.totalorder %s2752_s16, %s2745_s27 }
  0x8e   : > { %p2748_p4 = pnand %p2746_p9, %p3480_p8 }
  0x8f   : > { %p2755_p1 = por %p2754_p12, %p2753_p11 }
  0x90   : > { %p2749_p10 = pneg %p2748_p4 }
  0x92   : > { %p2756_p3 = pnand %p2755_p1, %p2749_p10 }
  0x94   : > { %2759 = shalt.err (!%p2756_p3)
}
  0x95   : > { %2476 = dma.hbm_to_vmem [thread:$0]  (!%p3464_p6), %s4231_s7, 16, %s570_s20, [#allocation16]  }
  0x96   : > { %s2760_s26 = scalar_lea.hbm %s4172_s9, 16 }
  0x97   : > { %p2761_p13 = scmp.ne.s32.totalorder %s4172_s9, %s2760_s26  ;;  %p2767_p3 = scmp.lt.u32.totalorder %s2760_s26, %s4172_s9 }
  0x99   : > { %p2763_p0 = pnand %p2761_p13, %p3480_p8 }
  0x9b   : > { %p2764_p1 = pneg %p2763_p0 }
  0x9d   : > { %p2769_p2 = pnand %p2767_p3, %p2764_p1 }
  0x9f   : > { %2772 = shalt.err (!%p2769_p2)
}
  0xa0   : > { %s2773_s27 = scalar_lea.vmem %s594_s2, 16  ;;  %s2780_s20 = scalar_lea.vmem %s594_s2, 32 }
  0xa1   : > { %p2774_p5 = scmp.ne.s32.totalorder %s594_s2, %s2773_s27  ;;  %p2781_p4 = scmp.lt.s32.totalorder %s594_s2, %s594_s2 }
  0xa2   : > { %p2782_p10 = scmp.lt.s32.totalorder %s2780_s20, %s2773_s27 }
  0xa3   : > { %p2776_p7 = pnand %p2774_p5, %p3480_p8 }
  0xa4   : > { %p2783_p11 = por %p2782_p10, %p2781_p4 }
  0xa5   : > { %p2777_p9 = pneg %p2776_p7 }
  0xa7   : > { %p2784_p12 = pnand %p2783_p11, %p2777_p9 }
  0xa9   : > { %2787 = shalt.err (!%p2784_p12)
}
  0xaa   : > { %2482 = dma.hbm_to_vmem [thread:$0]  (!%p3464_p6), %s4172_s9, 16, %s594_s2, [#allocation19]  }
  0xab   : > { %s3303_s21 = smov [#allocation21]   ;;  %s3304_s29 = smov [#allocation24]  }
  0xac   : > { %s615_s28 = sshll.u32 %s3303_s21, 4  ;;  %s639_s26 = sshll.u32 %s3304_s29, 4  ;;  %s616_s28 = int_to_ptr.vmem [resolvable:$true] %s615_s28  ;;  %s640_s26 = int_to_ptr.vmem [resolvable:$true] %s639_s26 }
  0xad   : > { %s2788_s22 = scalar_lea.hbm %s4174_s11, 16 }
  0xae   : > { %p2789_p13 = scmp.ne.s32.totalorder %s4174_s11, %s2788_s22  ;;  %p2795_p3 = scmp.lt.u32.totalorder %s2788_s22, %s4174_s11 }
  0xb0   : > { %p2791_p0 = pnand %p2789_p13, %p3480_p8 }
  0xb2   : > { %p2792_p1 = pneg %p2791_p0 }
  0xb4   : > { %p2797_p2 = pnand %p2795_p3, %p2792_p1 }
  0xb6   : > { %2800 = shalt.err (!%p2797_p2)
}
  0xb7   : > { %s2801_s2 = scalar_lea.vmem %s616_s28, 16  ;;  %s2808_s30 = scalar_lea.vmem %s616_s28, 32 }
  0xb8   : > { %p2802_p5 = scmp.ne.s32.totalorder %s616_s28, %s2801_s2  ;;  %p2809_p4 = scmp.lt.s32.totalorder %s616_s28, %s616_s28 }
  0xb9   : > { %p2810_p10 = scmp.lt.s32.totalorder %s2808_s30, %s2801_s2 }
  0xba   : > { %p2804_p7 = pnand %p2802_p5, %p3480_p8 }
  0xbb   : > { %p2811_p11 = por %p2810_p10, %p2809_p4 }
  0xbc   : > { %p2805_p9 = pneg %p2804_p7 }
  0xbe   : > { %p2812_p12 = pnand %p2811_p11, %p2805_p9 }
  0xc0   : > { %2815 = shalt.err (!%p2812_p12)
}
  0xc1   : > { %2488 = dma.hbm_to_vmem [thread:$0]  (!%p3464_p6), %s4174_s11, 16, %s616_s28, [#allocation22]  }
  0xc2   : > { %s2816_s22 = scalar_lea.hbm %s4176_s13, 16 }
  0xc3   : > { %p2817_p13 = scmp.ne.s32.totalorder %s4176_s13, %s2816_s22  ;;  %p2823_p3 = scmp.lt.u32.totalorder %s2816_s22, %s4176_s13 }
  0xc5   : > { %p2819_p0 = pnand %p2817_p13, %p3480_p8 }
  0xc7   : > { %p2820_p1 = pneg %p2819_p0 }
  0xc9   : > { %p2825_p2 = pnand %p2823_p3, %p2820_p1 }
  0xcb   : > { %2828 = shalt.err (!%p2825_p2)
}
  0xcc   : > { %s2829_s2 = scalar_lea.vmem %s640_s26, 16  ;;  %s2836_s28 = scalar_lea.vmem %s640_s26, 32 }
  0xcd   : > { %p2830_p5 = scmp.ne.s32.totalorder %s640_s26, %s2829_s2  ;;  %p2837_p4 = scmp.lt.s32.totalorder %s640_s26, %s640_s26 }
  0xce   : > { %p2838_p10 = scmp.lt.s32.totalorder %s2836_s28, %s2829_s2 }
  0xcf   : > { %p2832_p7 = pnand %p2830_p5, %p3480_p8 }
  0xd0   : > { %p2839_p11 = por %p2838_p10, %p2837_p4 }
  0xd1   : > { %p2833_p9 = pneg %p2832_p7 }
  0xd3   : > { %p2840_p12 = pnand %p2839_p11, %p2833_p9 }
  0xd5   : > { %2843 = shalt.err (!%p2840_p12)
}
  0xd6   : > { %2494 = dma.hbm_to_vmem [thread:$0]  (!%p3464_p6), %s4176_s13, 16, %s640_s26, [#allocation25]  }
  0xd7   : > { %s3305_s29 = smov [#allocation27]   ;;  %s3306_s25 = smov [#allocation11]  }
  0xd8   : > { %s663_s19 = sshll.u32 %s3305_s29, 4  ;;  %s531_s22 = sshll.u32 %s3306_s25, 4  ;;  %s664_s19 = int_to_ptr.vmem [resolvable:$true] %s663_s19  ;;  %s532_s22 = int_to_ptr.vmem [resolvable:$true] %s531_s22 }
  0xd9   : > { %s2844_s20 = scalar_lea.hbm %s4178_s15, 16 }
  0xda   : > { %p2845_p13 = scmp.ne.s32.totalorder %s4178_s15, %s2844_s20  ;;  %p2851_p3 = scmp.lt.u32.totalorder %s2844_s20, %s4178_s15 }
  0xdc   : > { %p2847_p0 = pnand %p2845_p13, %p3480_p8 }
  0xde   : > { %p2848_p1 = pneg %p2847_p0 }
  0xe0   : > { %p2853_p2 = pnand %p2851_p3, %p2848_p1 }
  0xe2   : > { %2856 = shalt.err (!%p2853_p2)
}
  0xe3   : > { %s2857_s26 = scalar_lea.vmem %s664_s19, 16  ;;  %s2864_s21 = scalar_lea.vmem %s664_s19, 32 }
  0xe4   : > { %p2858_p5 = scmp.ne.s32.totalorder %s664_s19, %s2857_s26  ;;  %p2865_p4 = scmp.lt.s32.totalorder %s664_s19, %s664_s19 }
  0xe5   : > { %p2866_p10 = scmp.lt.s32.totalorder %s2864_s21, %s2857_s26 }
  0xe6   : > { %p2860_p7 = pnand %p2858_p5, %p3480_p8 }
  0xe7   : > { %p2867_p11 = por %p2866_p10, %p2865_p4 }
  0xe8   : > { %p2861_p9 = pneg %p2860_p7 }
  0xea   : > { %p2868_p12 = pnand %p2867_p11, %p2861_p9 }
  0xec   : > { %2871 = shalt.err (!%p2868_p12)
}
  0xed   : > { %2500 = dma.hbm_to_vmem [thread:$0]  (!%p3464_p6), %s4178_s15, 16, %s664_s19, [#allocation28]  }
  0xee   : > { %s4232_s4 = sld [smem:[#allocation58_spill]] }
  0xf4   : > { %s2872_s20 = scalar_lea.hbm %s4232_s4, 256 }
  0xf5   : > { %p2873_p13 = scmp.ne.s32.totalorder %s4232_s4, %s2872_s20  ;;  %p2879_p3 = scmp.lt.u32.totalorder %s2872_s20, %s4232_s4 }
  0xf7   : > { %p2875_p0 = pnand %p2873_p13, %p3480_p8 }
  0xf9   : > { %p2876_p1 = pneg %p2875_p0 }
  0xfb   : > { %p2881_p2 = pnand %p2879_p3, %p2876_p1 }
  0xfd   : > { %2884 = shalt.err (!%p2881_p2)
}
  0xfe   : > { %s2885_s26 = scalar_lea.vmem %s532_s22, 256  ;;  %p2893_p4 = scmp.lt.s32.totalorder %s532_s22, %s532_s22 }
  0xff   : > { %p2886_p5 = scmp.ne.s32.totalorder %s532_s22, %s2885_s26  ;;  %p2894_p10 = scmp.lt.s32.totalorder %s2885_s26, %s2885_s26 }
 0x101   : > { %p2888_p7 = pnand %p2886_p5, %p3480_p8  ;;  %p2895_p11 = por %p2894_p10, %p2893_p4 }
 0x103   : > { %p2889_p9 = pneg %p2888_p7 }
 0x105   : > { %p2896_p12 = pnand %p2895_p11, %p2889_p9 }
 0x107   : > { %2899 = shalt.err (!%p2896_p12)
}
 0x108   : > { %2467 = dma.hbm_to_vmem [thread:$0]  (!%p3464_p6), %s4232_s4, 256, %s532_s22, [#allocation10], %s3299_s23, %s3299_s23, %s3300_s18  }
 0x109   : > { %s3307_s29 = smov [#allocation14]   ;;  %s3308_s0 = smov [#allocation17]  }
 0x10a   : > { %s555_s25 = sshll.u32 %s3307_s29, 4  ;;  %s579_s27 = sshll.u32 %s3308_s0, 4  ;;  %s556_s25 = int_to_ptr.vmem [resolvable:$true] %s555_s25  ;;  %s580_s27 = int_to_ptr.vmem [resolvable:$true] %s579_s27 }
 0x10b   : > { %s4233_s6 = sld [smem:[#allocation60_spill]] }
 0x111   : > { %s2900_s2 = scalar_lea.hbm %s4233_s6, 256 }
 0x112   : > { %p2901_p13 = scmp.ne.s32.totalorder %s4233_s6, %s2900_s2  ;;  %p2907_p3 = scmp.lt.u32.totalorder %s2900_s2, %s4233_s6 }
 0x114   : > { %p2903_p0 = pnand %p2901_p13, %p3480_p8 }
 0x116   : > { %p2904_p1 = pneg %p2903_p0 }
 0x118   : > { %p2909_p2 = pnand %p2907_p3, %p2904_p1 }
 0x11a   : > { %2912 = shalt.err (!%p2909_p2)
}
 0x11b   : > { %s2913_s22 = scalar_lea.vmem %s556_s25, 256  ;;  %p2921_p4 = scmp.lt.s32.totalorder %s556_s25, %s556_s25 }
 0x11c   : > { %p2914_p5 = scmp.ne.s32.totalorder %s556_s25, %s2913_s22  ;;  %p2922_p10 = scmp.lt.s32.totalorder %s2913_s22, %s2913_s22 }
 0x11e   : > { %p2916_p7 = pnand %p2914_p5, %p3480_p8  ;;  %p2923_p11 = por %p2922_p10, %p2921_p4 }
 0x120   : > { %p2917_p9 = pneg %p2916_p7 }
 0x122   : > { %p2924_p12 = pnand %p2923_p11, %p2917_p9 }
 0x124   : > { %2927 = shalt.err (!%p2924_p12)
}
 0x125   : > { %2473 = dma.hbm_to_vmem [thread:$0]  (!%p3464_p6), %s4233_s6, 256, %s556_s25, [#allocation13], %s3299_s23, %s3299_s23, %s3300_s18  }
 0x126   : > { %s4234_s8 = sld [smem:[#allocation62_spill]] }
 0x12c   : > { %s2928_s16 = scalar_lea.hbm %s4234_s8, 256 }
 0x12d   : > { %p2929_p13 = scmp.ne.s32.totalorder %s4234_s8, %s2928_s16  ;;  %p2935_p3 = scmp.lt.u32.totalorder %s2928_s16, %s4234_s8 }
 0x12f   : > { %p2931_p0 = pnand %p2929_p13, %p3480_p8 }
 0x131   : > { %p2932_p1 = pneg %p2931_p0 }
 0x133   : > { %p2937_p2 = pnand %p2935_p3, %p2932_p1 }
 0x135   : > { %2940 = shalt.err (!%p2937_p2)
}
 0x136   : > { %s2941_s19 = scalar_lea.vmem %s580_s27, 256  ;;  %p2949_p4 = scmp.lt.s32.totalorder %s580_s27, %s580_s27 }
 0x137   : > { %p2942_p5 = scmp.ne.s32.totalorder %s580_s27, %s2941_s19  ;;  %p2950_p10 = scmp.lt.s32.totalorder %s2941_s19, %s2941_s19 }
 0x139   : > { %p2944_p7 = pnand %p2942_p5, %p3480_p8  ;;  %p2951_p11 = por %p2950_p10, %p2949_p4 }
 0x13b   : > { %p2945_p9 = pneg %p2944_p7 }
 0x13d   : > { %p2952_p12 = pnand %p2951_p11, %p2945_p9 }
 0x13f   : > { %2955 = shalt.err (!%p2952_p12)
}
 0x140   : > { %2479 = dma.hbm_to_vmem [thread:$0]  (!%p3464_p6), %s4234_s8, 256, %s580_s27, [#allocation16], %s3299_s23, %s3299_s23, %s3300_s18  }
 0x141   : > { %s3309_s21 = smov [#allocation20]   ;;  %s3310_s0 = smov [#allocation23]  }
 0x142   : > { %s604_s29 = sshll.u32 %s3309_s21, 4  ;;  %s625_s20 = sshll.u32 %s3310_s0, 4  ;;  %s605_s29 = int_to_ptr.vmem [resolvable:$true] %s604_s29  ;;  %s626_s20 = int_to_ptr.vmem [resolvable:$true] %s625_s20 }
 0x143   : > { %s2956_s28 = scalar_lea.hbm %s4173_s10, 16 }
 0x144   : > { %p2957_p13 = scmp.ne.s32.totalorder %s4173_s10, %s2956_s28  ;;  %p2963_p3 = scmp.lt.u32.totalorder %s2956_s28, %s4173_s10 }
 0x146   : > { %p2959_p0 = pnand %p2957_p13, %p3480_p8 }
 0x148   : > { %p2960_p1 = pneg %p2959_p0 }
 0x14a   : > { %p2965_p2 = pnand %p2963_p3, %p2960_p1 }
 0x14c   : > { %2968 = shalt.err (!%p2965_p2)
}
 0x14d   : > { %s2969_s27 = scalar_lea.vmem %s605_s29, 16  ;;  %s2976_s22 = scalar_lea.vmem %s605_s29, 32 }
 0x14e   : > { %p2970_p5 = scmp.ne.s32.totalorder %s605_s29, %s2969_s27  ;;  %p2977_p4 = scmp.lt.s32.totalorder %s605_s29, %s605_s29 }
 0x14f   : > { %p2978_p10 = scmp.lt.s32.totalorder %s2976_s22, %s2969_s27 }
 0x150   : > { %p2972_p7 = pnand %p2970_p5, %p3480_p8 }
 0x151   : > { %p2979_p11 = por %p2978_p10, %p2977_p4 }
 0x152   : > { %p2973_p9 = pneg %p2972_p7 }
 0x154   : > { %p2980_p12 = pnand %p2979_p11, %p2973_p9 }
 0x156   : > { %2983 = shalt.err (!%p2980_p12)
}
 0x157   : > { %2485 = dma.hbm_to_vmem [thread:$0]  (!%p3464_p6), %s4173_s10, 16, %s605_s29, [#allocation19]  }
 0x158   : > { %s2984_s28 = scalar_lea.hbm %s4175_s12, 256 }
 0x159   : > { %p2985_p13 = scmp.ne.s32.totalorder %s4175_s12, %s2984_s28  ;;  %p2991_p3 = scmp.lt.u32.totalorder %s2984_s28, %s4175_s12 }
 0x15b   : > { %p2987_p0 = pnand %p2985_p13, %p3480_p8 }
 0x15d   : > { %p2988_p1 = pneg %p2987_p0 }
 0x15f   : > { %p2993_p2 = pnand %p2991_p3, %p2988_p1 }
 0x161   : > { %2996 = shalt.err (!%p2993_p2)
}
 0x162   : > { %s2997_s27 = scalar_lea.vmem %s626_s20, 256  ;;  %p3005_p4 = scmp.lt.s32.totalorder %s626_s20, %s626_s20 }
 0x163   : > { %p2998_p5 = scmp.ne.s32.totalorder %s626_s20, %s2997_s27  ;;  %p3006_p10 = scmp.lt.s32.totalorder %s2997_s27, %s2997_s27 }
 0x165   : > { %p3000_p7 = pnand %p2998_p5, %p3480_p8  ;;  %p3007_p11 = por %p3006_p10, %p3005_p4 }
 0x167   : > { %p3001_p9 = pneg %p3000_p7 }
 0x169   : > { %p3008_p12 = pnand %p3007_p11, %p3001_p9 }
 0x16b   : > { %3011 = shalt.err (!%p3008_p12)
}
 0x16c   : > { %2491 = dma.hbm_to_vmem [thread:$0]  (!%p3464_p6), %s4175_s12, 256, %s626_s20, [#allocation22], %s3299_s23, %s3299_s23, %s3300_s18  }
 0x16d   : > { %s3311_s21 = smov [#allocation26]   ;;  %s3312_s16 = smov [#allocation29]  }
 0x16e   : > { %s649_s0 = sshll.u32 %s3311_s21, 4  ;;  %s674_s2 = sshll.u32 %s3312_s16, 4  ;;  %s650_s0 = int_to_ptr.vmem [resolvable:$true] %s649_s0  ;;  %s675_s2 = int_to_ptr.vmem [resolvable:$true] %s674_s2 }
 0x16f   : > { %s3012_s26 = scalar_lea.hbm %s4177_s14, 512 }
 0x170   : > { %p3013_p13 = scmp.ne.s32.totalorder %s4177_s14, %s3012_s26  ;;  %p3019_p3 = scmp.lt.u32.totalorder %s3012_s26, %s4177_s14 }
 0x172   : > { %p3015_p0 = pnand %p3013_p13, %p3480_p8 }
 0x174   : > { %p3016_p1 = pneg %p3015_p0 }
 0x176   : > { %p3021_p2 = pnand %p3019_p3, %p3016_p1 }
 0x178   : > { %3024 = shalt.err (!%p3021_p2)
}
 0x179   : > { %s3025_s20 = scalar_lea.vmem %s650_s0, 512  ;;  %p3033_p4 = scmp.lt.s32.totalorder %s650_s0, %s650_s0 }
 0x17a   : > { %p3026_p5 = scmp.ne.s32.totalorder %s650_s0, %s3025_s20  ;;  %p3034_p10 = scmp.lt.s32.totalorder %s3025_s20, %s3025_s20 }
 0x17c   : > { %p3028_p7 = pnand %p3026_p5, %p3480_p8  ;;  %p3035_p11 = por %p3034_p10, %p3033_p4 }
 0x17e   : > { %p3029_p9 = pneg %p3028_p7 }
 0x180   : > { %p3036_p12 = pnand %p3035_p11, %p3029_p9 }
 0x182   : > { %3039 = shalt.err (!%p3036_p12)
}
 0x183   : > { %2497 = dma.hbm_to_vmem [thread:$0]  (!%p3464_p6), %s4177_s14, 512, %s650_s0, [#allocation25], %s3299_s23, %s3299_s23, %s3300_s18  }
 0x184   : > { %s4235_s30 = sld [smem:[#allocation63_spill]] }
 0x18a   : > { %s4236_s26 = smov %s4235_s30  ;;  %s3040_s19 = scalar_lea.hbm %s4235_s30, 16 }
 0x18b   : > { %p3041_p13 = scmp.ne.s32.totalorder %s4236_s26, %s3040_s19  ;;  %p3047_p3 = scmp.lt.u32.totalorder %s3040_s19, %s4236_s26 }
 0x18d   : > { %p3043_p0 = pnand %p3041_p13, %p3480_p8 }
 0x18f   : > { %p3044_p1 = pneg %p3043_p0 }
 0x191   : > { %p3049_p2 = pnand %p3047_p3, %p3044_p1 }
 0x193   : > { %3052 = shalt.err (!%p3049_p2)
}
 0x194   : > { %s3053_s22 = scalar_lea.vmem %s675_s2, 16  ;;  %s3060_s23 = scalar_lea.vmem %s675_s2, 32 }
 0x195   : > { %p3054_p5 = scmp.ne.s32.totalorder %s675_s2, %s3053_s22  ;;  %p3061_p4 = scmp.lt.s32.totalorder %s675_s2, %s675_s2 }
 0x196   : > { %p3062_p10 = scmp.lt.s32.totalorder %s3060_s23, %s3053_s22 }
 0x197   : > { %p3056_p7 = pnand %p3054_p5, %p3480_p8 }
 0x198   : > { %p3063_p11 = por %p3062_p10, %p3061_p4 }
 0x199   : > { %p3057_p9 = pneg %p3056_p7 }
 0x19b   : > { %p3064_p12 = pnand %p3063_p11, %p3057_p9 }
 0x19d   : > { %3067 = shalt.err (!%p3064_p12)
}
 0x19e   : > { %2503 = dma.hbm_to_vmem [thread:$0]  (!%p3464_p6), %s4236_s26, 16, %s675_s2, [#allocation28]  }
 0x19f   : > { %s3313_s21 = smov [#allocation30]   ;;  %s4237_s19 = sld [smem:[#allocation64_spill]] }
 0x1a0   : > { %s685_s16 = sshll.u32 %s3313_s21, 4  ;;  %s686_s16 = int_to_ptr.vmem [resolvable:$true] %s685_s16 }
 0x1a5   : > { %s3068_s25 = scalar_lea.hbm %s4237_s19, 16 }
 0x1a6   : > { %p3069_p13 = scmp.ne.s32.totalorder %s4237_s19, %s3068_s25  ;;  %p3075_p3 = scmp.lt.u32.totalorder %s3068_s25, %s4237_s19 }
 0x1a8   : > { %p3071_p0 = pnand %p3069_p13, %p3480_p8 }
 0x1aa   : > { %p3072_p1 = pneg %p3071_p0 }
 0x1ac   : > { %p3077_p2 = pnand %p3075_p3, %p3072_p1 }
 0x1ae   : > { %3080 = shalt.err (!%p3077_p2)
}
 0x1af   : > { %s3081_s2 = scalar_lea.vmem %s686_s16, 16  ;;  %s3088_s23 = scalar_lea.vmem %s686_s16, 32 }
 0x1b0   : > { %p3082_p5 = scmp.ne.s32.totalorder %s686_s16, %s3081_s2  ;;  %p3089_p4 = scmp.lt.s32.totalorder %s686_s16, %s686_s16 }
 0x1b1   : > { %p3090_p10 = scmp.lt.s32.totalorder %s3088_s23, %s3081_s2 }
 0x1b2   : > { %p3084_p7 = pnand %p3082_p5, %p3480_p8 }
 0x1b3   : > { %p3091_p11 = por %p3090_p10, %p3089_p4 }
 0x1b4   : > { %p3085_p9 = pneg %p3084_p7 }
 0x1b6   : > { %p3092_p12 = pnand %p3091_p11, %p3085_p9 }
 0x1b8   : > { %3095 = shalt.err (!%p3092_p12)
}
 0x1b9   : > { %s4238_s21 = sld [smem:[#allocation51_spill]]  ;;  %s4239_s28 = sld [smem:[#allocation50_spill]] }
 0x1ba   : > { %s4240_s30 = sld [smem:[#allocation49_spill]]  ;;  %s4241_s24 = sld [smem:[#allocation48_spill]] }
 0x1bb   : > { %s4242_s25 = sld [smem:[#allocation52_spill]]  ;;  %s4248_s1 = sld [smem:[#allocation54_spill]] }
 0x1bc   : > { %2506 = dma.hbm_to_vmem [thread:$0]  (!%p3464_p6), %s4237_s19, 16, %s686_s16, [#allocation31]  }
 0x1bf   : > { %s2153_s27 = sadd.s32 4294967294, %s4238_s21   ;;  %s3803_s3 = sadd.s32 1, %s4238_s21  }
 0x1c0   : > { %s54_s29 = ssub.s32 %s4238_s21, %s3803_s3  ;;  %s57_s20 = sadd.s32 1, %s4239_s28 }
 0x1c1   : > { %p55_p8 = scmp.eq.s32.totalorder %s54_s29, 0  ;;  %p64_p13 = scmp.ne.s32.totalorder %s4239_s28, %s4240_s30 }
 0x1c2   : > { %p65_p0 = scmp.eq.s32.totalorder %s4238_s21, 0  ;;  %p70_p1 = scmp.ne.s32.totalorder %s4240_s30, %s4241_s24 }
 0x1c3   : > { %s3814_s22 = scalar_select %p55_p8, %s4239_s28, %s57_s20  }
 0x1c4   : > { %p3816_p3 = por %p65_p0, %p64_p13  ;;  %p4244_p2 = scmp.eq.s32.totalorder %s4242_s25, 0 }
 0x1c5   : > { %p456_p5 = scmp.eq.s32.totalorder %s4242_s25, 1  ;;  %p462_p7 = scmp.eq.s32.totalorder %s2153_s27, 1 }
 0x1c6   : > { %p3822_p6 = por %p4244_p2, %p70_p1  ;;  %p2537_p9 = scmp.lt.s32.totalorder %s4238_s21, 2 }
 0x1c7   : > { %s3829_s23 = sand.u32 1, %s4239_s28   ;;  %p3831_p4 = por %p456_p5, %p64_p13 }
 0x1c8   : > { %s4245_s16 = scalar_select %p3822_p6, 1, 0 }
 0x1c9   : > { %s4246_s18 = scalar_select %p3831_p4, 1, 0 }
 0x1ca   : > { %p3835_p10 = por %p462_p7, %p70_p1  ;;  %s2172_s30 = sshll.u32 %s3829_s23, 3 }
 0x1cb   : > { %s2173_s24 = sshll.u32 %s4238_s21, 7  ;;  %s700_s28 = scalar_lea.vmem [#allocation3], %s2172_s30 }
 0x1cc   : > { %s4247_s0 = scalar_select %p3835_p10, 1, 0 }
 0x1cd   : > { %s3844_s25 = scalar_lea.hbm %s4248_s1, %s2173_s24  ;;  %s707_s27 = sshll.u32 %s700_s28, 4  ;;  %s3846_s27 = int_to_ptr.vmem [resolvable:$true] %s707_s27 }
 0x1ce   : > { %p3850_p11 = pnand %p2537_p9, %p3816_p3  ;;  %s697_s6 = scalar_lea.sflag [#allocation4], %s3829_s23 }
 0x1cf   : > { %s3096_s29 = scalar_lea.hbm %s3844_s25, 128  ;;  %s3101_s2 = scalar_lea.hbm %s4248_s1, 256 }
 0x1d0   : > { %p3097_p12 = scmp.ne.s32.totalorder %s3844_s25, %s3096_s29  ;;  %p3098_p8 = pneg %p3850_p11 }
 0x1d1   : > { %p3102_p1 = scmp.lt.u32.totalorder %s3844_s25, %s4248_s1  ;;  %p3103_p3 = scmp.lt.u32.totalorder %s3101_s2, %s3096_s29 }
 0x1d2   : > { %p3099_p13 = pnand %p3098_p8, %p3097_p12  ;;  %p3105_p5 = scmp.lt.u32.totalorder %s3096_s29, %s3844_s25 }
 0x1d3   : > { %p3104_p2 = por %p3103_p3, %p3102_p1 }
 0x1d4   : > { %p3100_p0 = pneg %p3099_p13 }
 0x1d5   : > { %p3106_p7 = por %p3105_p5, %p3104_p2 }
 0x1d7   : > { %p3107_p9 = pnand %p3106_p7, %p3100_p0 }
 0x1d9   : > { %3110 = shalt.err (!%p3107_p9)
}
 0x1da   : > { %s3111_s5 = scalar_lea.vmem %s3846_s27, 128  ;;  %s3314_s30 = smov [#allocation3]  }
 0x1db   : > { %p3112_p12 = scmp.ne.s32.totalorder %s3846_s27, %s3111_s5  ;;  %s3116_s24 = sshll.u32 %s3314_s30, 4  ;;  %s3117_s24 = int_to_ptr.vmem [resolvable:$false] %s3116_s24 }
 0x1dc   : > { %s3118_s20 = scalar_lea.vmem %s3117_s24, 256  ;;  %p3119_p4 = scmp.lt.s32.totalorder %s3846_s27, %s3117_s24 }
 0x1dd   : > { %p3114_p13 = pnand %p3112_p12, %p3098_p8  ;;  %p3120_p1 = scmp.lt.s32.totalorder %s3118_s20, %s3111_s5 }
 0x1df   : > { %p3115_p10 = pneg %p3114_p13  ;;  %p3121_p3 = por %p3120_p1, %p3119_p4 }
 0x1e1   : > { %p3122_p2 = pnand %p3121_p3, %p3115_p10 }
 0x1e3   : > { %3125 = shalt.err (!%p3122_p2)
}
 0x1e4   : > { %2510 = dma.hbm_to_vmem [thread:$0]  (!%p3850_p11), %s3844_s25, 128, %s3846_s27, %s697_s6  }
 0x1e5   : > { %s2174_s29 = sshll.u32 %s4238_s21, 4  ;;  %s717_s2 = scalar_lea.vmem [#allocation6], %s3829_s23 }
 0x1e6   : > { %s724_s28 = sshll.u32 %s717_s2, 4  ;;  %s4250_s7 = sld [smem:[#allocation55_spill]]  ;;  %s725_s28 = int_to_ptr.vmem [resolvable:$true] %s724_s28 }
 0x1e7   : > { %s4251_s5 = sand.u32 1, %s4238_s21  }
 0x1e8   : > { %s715_s20 = scalar_lea.sflag [#allocation7], %s4251_s5 }
 0x1ec   : > { %s3886_s24 = scalar_lea.hbm %s4250_s7, %s2174_s29  ;;  %s3131_s25 = scalar_lea.hbm %s4250_s7, 32 }
 0x1ed   : > { %s3126_s8 = scalar_lea.hbm %s3886_s24, 16  ;;  %p3132_p5 = scmp.lt.u32.totalorder %s3886_s24, %s4250_s7 }
 0x1ee   : > { %p3127_p4 = scmp.ne.s32.totalorder %s3886_s24, %s3126_s8  ;;  %p3133_p7 = scmp.lt.u32.totalorder %s3131_s25, %s3126_s8 }
 0x1ef   : > { %p3135_p12 = scmp.lt.u32.totalorder %s3126_s8, %s3886_s24 }
 0x1f0   : > { %p3129_p10 = pnand %p3127_p4, %p3098_p8  ;;  %p3134_p9 = por %p3133_p7, %p3132_p5 }
 0x1f2   : > { %p3130_p0 = pneg %p3129_p10  ;;  %p3136_p13 = por %p3135_p12, %p3134_p9 }
 0x1f4   : > { %p3137_p1 = pnand %p3136_p13, %p3130_p0 }
 0x1f6   : > { %3140 = shalt.err (!%p3137_p1)
}
 0x1f7   : > { %s3141_s21 = scalar_lea.vmem %s725_s28, 16  ;;  %s3315_s29 = smov [#allocation6]  }
 0x1f8   : > { %p3142_p3 = scmp.ne.s32.totalorder %s725_s28, %s3141_s21  ;;  %s3146_s2 = sshll.u32 %s3315_s29, 4  ;;  %s3147_s2 = int_to_ptr.vmem [resolvable:$false] %s3146_s2 }
 0x1f9   : > { %s3148_s30 = scalar_lea.vmem %s3147_s2, 32  ;;  %p3149_p10 = scmp.lt.s32.totalorder %s725_s28, %s3147_s2 }
 0x1fa   : > { %p3144_p2 = pnand %p3142_p3, %p3098_p8  ;;  %p3150_p6 = scmp.lt.s32.totalorder %s3148_s30, %s3141_s21 }
 0x1fc   : > { %p3145_p4 = pneg %p3144_p2  ;;  %p3151_p5 = por %p3150_p6, %p3149_p10 }
 0x1fe   : > { %p3152_p7 = pnand %p3151_p5, %p3145_p4 }
 0x200   : > { %3155 = shalt.err (!%p3152_p7)
}
 0x201   : > { %2513 = dma.hbm_to_vmem [thread:$0]  (!%p3850_p11), %s3886_s24, 16, %s725_s28, %s715_s20  }
 0x202   : > { %s4252_s8 = sld [smem:[#allocation53_spill]] }
 0x208   : > { %p4253_p0 = scmp.ne.s32.totalorder %s4252_s8, 0 }
 0x209   : > { %s4254_s5 = sld [smem:[#allocation49_spill]] (!%p4253_p0)  ;;  %p4255_p6 = scmp.ne.s32.totalorder (!%p4253_p0), %s4245_s16, 0 }
 0x20a   : > { %733 = sbr.rel (%p4253_p0) target bundleno = 3093 (0xc15), region = 92 }
 0x20f   : > { %s3912_s6 = sand.u32 (!%p4253_p0), 1, %s4254_s5  }
 0x210   : > { %s2176_s23 = sshll.u32 (!%p4253_p0), %s3912_s6, 3  ;;  %s736_s25 = scalar_lea.sflag (!%p4253_p0), [#allocation4], %s3912_s6 }
 0x211   : > { %s3918_s1 = scalar_lea.vmem [#allocation3], %s2176_s23 }
 0x212   : > { %3229 = dma.done.wait (%p4255_p6), %s736_s25, 128  }
 0x213   : > { %3231 = vsyncadd (%p4255_p6), %s736_s25, 4294967168  ;;  %s4256_s4 = sld [smem:[#allocation52_spill]]  ;;  %s747_s20 = scalar_lea.vmem [#allocation6], %s3912_s6 }
 0x219   : > { %s744_s28 = sand.u32 1, %s4256_s4  }
 0x21a   : > { %s745_s24 = scalar_lea.sflag [#allocation7], %s744_s28 }
 0x21b   : > { %3233 = dma.done.wait (%p4255_p6), %s745_s24, 16  }
 0x21c   : > { %3235 = vsyncadd (%p4255_p6), %s745_s24, 4294967280  ;;  %p4257_p11 = scmp.eq.s32.totalorder %s4256_s4, 0 }
 0x21e   : > { %3237 = dma.done.wait (%p4257_p11), [#allocation7], 256   ;;  %p4258_p8 = pmov %p4257_p11 }
 0x220   : > { %3239 = vsyncadd (%p4258_p8), [#allocation7], 4294967040  ;;  %p4259_p9 = pmov %p4258_p8 }
 0x221   : > { %p4260_p12 = pmov %p4258_p8 }
 0x222   : > { %3241 = dma.done.wait (%p4259_p9), [#allocation10], 272  }
 0x223   : > { %3243 = vsyncadd (%p4260_p12), [#allocation10], 4294967024  ;;  %p4261_p13 = pmov %p4258_p8 }
 0x224   : > { %p4262_p1 = pmov %p4258_p8 }
 0x225   : > { %3245 = dma.done.wait (%p4261_p13), [#allocation13], 272  }
 0x226   : > { %3247 = vsyncadd (%p4262_p1), [#allocation13], 4294967024  ;;  %p4263_p3 = pmov %p4262_p1 }
 0x227   : > { %p4264_p2 = pmov %p4262_p1 }
 0x228   : > { %3249 = dma.done.wait (%p4263_p3), [#allocation16], 272  }
 0x229   : > { %3251 = vsyncadd (%p4264_p2), [#allocation16], 4294967024  ;;  %p4265_p4 = pmov %p4262_p1 }
 0x22a   : > { %p4266_p10 = pmov %p4262_p1 }
 0x22b   : > { %3253 = dma.done.wait (%p4265_p4), [#allocation19], 32  }
 0x22c   : > { %3255 = vsyncadd (%p4266_p10), [#allocation19], 4294967264  ;;  %p4267_p5 = pmov %p4262_p1 }
 0x22d   : > { %p4268_p7 = pmov %p4262_p1 }
 0x22e   : > { %3257 = dma.done.wait (%p4267_p5), [#allocation22], 272  }
 0x22f   : > { %3259 = vsyncadd (%p4268_p7), [#allocation22], 4294967024  ;;  %p4269_p0 = pmov %p4262_p1 }
 0x231   : > { %3261 = dma.done.wait (%p4269_p0), [#allocation25], 528   ;;  %p4270_p6 = pmov %p4269_p0 }
 0x232   : > { %p4271_p11 = pmov %p4269_p0 }
 0x233   : > { %3263 = vsyncadd (%p4270_p6), [#allocation25], 4294966768 }
 0x234   : > { %3265 = dma.done.wait (%p4271_p11), [#allocation28], 32   ;;  %p4272_p8 = pmov %p4269_p0 }
 0x235   : > { %p4273_p9 = pmov %p4269_p0 }
 0x236   : > { %3267 = vsyncadd (%p4272_p8), [#allocation28], 4294967264 }
 0x237   : > { %3269 = dma.done.wait (%p4273_p9), [#allocation31], 16   ;;  %p4274_p12 = pmov %p4269_p0 }
 0x238   : > { %v3316_v0 = vmov 0.0   ;;  %vm3317_vm0 = vmmov 0   ;;  %v2614_v1 = vld [vmem:[#allocation11] sm:$0xff]   ;;  %v2615_v2 = vld [vmem:[#allocation8] sm:$0xff]   ;;  %v2617_v4 = vld [vmem:[#allocation8 + $0x8] sm:$0xff]   ;;  %vm901_vm1 = vcmask 261120   ;;  %v1125_v34 = vlaneseq }
 0x239   : > { %3271 = vsyncadd (%p4274_p12), [#allocation31], 4294967280  ;;  %2294 = vmatprep.subr.bf16.mxu1 %v3316_v0  ;;  %2286 = vmatprep.subr.bf16.mxu0 %v3316_v0  ;;  %v2616_v3 = vld [vmem:[#allocation11 + $0x8] sm:$0xff]   ;;  %v2199_v7 = vld [vmem:[#allocation12] ss:$0 sm:$0xff]  ;;  %vm1077_vm2 = vcmask 64512  }
 0x23a   : > { %2298 = vmatprep.mubr.msk.bf16.mxu1 %vm3317_vm0, %v3316_v0  ;;  %2290 = vmatprep.mubr.msk.bf16.mxu0 %vm3317_vm0, %v3316_v0  ;;  %v3975_v5 = vld [vmem:[%s3918_s1] sm:$0xff]  ;;  %s3318_s16 = smov 112   ;;  %s3319_s27 = smov 120   ;;  %v2618_v23 = vld [vmem:[#allocation14] sm:$0xff]   ;;  %v1126_v35 = vshrl.u32 %v1125_v34, 7  ;;  %vm1147_vm3 = vcmask 1043456  }
 0x23b   : > { %2295 = vmatpush3.bf16.msra.mxu1 %v2614_v1  ;;  %2287 = vmatpush3.bf16.msra.mxu0 %v2615_v2  ;;  %v877_v6 = vpack.c.bf16 %v3975_v5, %v3975_v5  ;;  %v2195_v8 = vld [vmem:[#allocation9] ss:$0 sm:$0xff]  ;;  %s3320_s21 = smov 104   ;;  %v1075_v36 = vld [vmem:[%s747_s20] sm:$0x1]  ;;  %s2194_s29 = sshll.u32 %s3912_s6, 5 }
 0x23c   : > { %2296 = vmatprep.subr.bf16.mxu1 %v3316_v0  ;;  %2288 = vmatprep.subr.bf16.mxu0 %v3316_v0  ;;  %v2619_v24 = vld [vmem:[#allocation14 + $0x8] sm:$0xff]   ;;  %v1076_v37 = vmul.f32 1e+09, %v1075_v36  ;;  %v1127_v38 = vsub.s32 0, %v1126_v35  ;;  %v2203_v46 = vld [vmem:[#allocation15] ss:$0 sm:$0xff] }
 0x23d   : > { %s4034_s2 = scalar_lea.vmem [#allocation33], %s2194_s29  ;;  %vm1192_vm4 = vcmask 60416   ;;  %s3321_s30 = smov 8   ;;  %vm1317_vm5 = vcmask 126016   ;;  %vm1439_vm6 = vcmask 191616   ;;  %vm1561_vm7 = vcmask 257216  }
 0x23e   : > { %v1128_v39 = vrot.slane %v1076_v37, %v1127_v38  ;;  %s3322_s8 = smov 16   ;;  %s3323_s5 = smov 24   ;;  %vm1769_vm8 = vcmask 523264  }
 0x23f   : > { %2297 = vmatpush3.bf16.msra.mxu1 %v2616_v3  ;;  %2289 = vmatpush3.bf16.msra.mxu0 %v2617_v4  ;;  %s2249_s25 = sshll.u32 %s4256_s4, 9  ;;  %s1876_s1 = sshll.u32 %s4034_s2, 4  ;;  %s4085_s1 = int_to_ptr.vmem [resolvable:$true] %s1876_s1 }
 0x240   : > { %2310 = vmatprep.subr.bf16.mxu1 %v3316_v0  ;;  %2302 = vmatprep.subr.bf16.mxu0 %v3316_v0  ;;  %s4275_s20 = sld [smem:[#allocation66_spill]]  ;;  %s3156_s29 = scalar_lea.vmem %s4085_s1, 512 }
 0x241   : > { %p3157_p13 = scmp.ne.s32.totalorder %s4085_s1, %s3156_s29  ;;  %p4277_p1 = scmp.ne.s32.totalorder %s4246_s18, 0 }
 0x242   : > { %2299 = vmatmul.mubr.msk.bf16.vlgmr.msra.gmra.mrb[0].mxu1 %vm901_vm1, %v877_v6  ;;  %2291 = vmatmul.mubr.msk.bf16.vlgmr.msra.gmra.mrb[0].mxu0 %vm901_vm1, %v877_v6 }
 0x243   : > { %2312 = vmatprep.mubr.msk.bf16.mxu1 %vm3317_vm0, %v3316_v0  ;;  %2306 = vmatprep.mubr.msk.bf16.mxu0 %vm3317_vm0, %v3316_v0  ;;  %p3158_p3 = pnand %p3157_p13, %p4277_p1 }
 0x244   : > { %2303 = vmatpush3.bf16.msra.mxu0 %v2618_v23 }
 0x245   : > { %2304 = vmatprep.subr.bf16.mxu0 %v3316_v0  ;;  %p3159_p2 = pneg %p3158_p3 }
 0x248   : > { %2305 = vmatpush3.bf16.msra.mxu0 %v2619_v24 }
 0x249   : > { %2316 = vmatprep.subr.bf16.mxu0 %v3316_v0 }
 0x24b   : > { %2307 = vmatmul.mubr.msk.bf16.vlgmr.msra.gmra.mrb[4].mxu0 %vm901_vm1, %v877_v6 }
 0x24c   : > { %2318 = vmatprep.mubr.msk.bf16.mxu0 %vm3317_vm0, %v3316_v0 }
 0x315   : > { %v1002_v9 = vpop.f32.mrb[0].mxu1  ;;  %v939_v12 = vpop.f32.mrb[0].mxu0 }
 0x316   : > { %v1003_v10 = vadd.f32 %v2199_v7, %v1002_v9  ;;  %v2300_v11 = vpop.f32.mrb[1].mxu1  ;;  %v940_v13 = vadd.f32 %v2195_v8, %v939_v12  ;;  %v2292_v15 = vpop.f32.mrb[1].mxu0 }
 0x317   : > { %v1005_v14 = vpop.f32.mrb[2].mxu1  ;;  %v942_v18 = vpop.f32.mrb[2].mxu0 }
 0x318   : > { %v1073_v16 = vpack.c.bf16 %v1003_v10, %v1003_v10  ;;  %v2301_v17 = vpop.f32.mrb[3].mxu1  ;;  %v1071_v19 = vmul.f32 0.35355338, %v940_v13  ;;  %v2293_v20 = vpop.f32.mrb[3].mxu0 }
 0x31a   : > { %1321 = vrot.lane.b32.xlu1 %v1073_v16, %s3318_s16  ;;  %1198 = vrot.lane.b32.xlu0 %v1073_v16, %s3319_s27  ;;  %v1082_v21 = vsel %vm1077_vm2, %v1073_v16, 0  ;;  %v1072_v22 = vpack.c.bf16 %v1071_v19, %v1071_v19 }
 0x31b   : > { %2311 = vmatpush3.bf16.xpose.msra.mxu1 %v1082_v21 }
 0x31c   : > { %2322 = vmatprep.subr.bf16.mxu1 %v3316_v0 }
 0x31e   : > { %1319 = vrot.lane.b32.xlu1 %v1072_v22, %s3318_s16  ;;  %1195 = vrot.lane.b32.xlu0 %v1072_v22, %s3319_s27  ;;  %v1065_v47 = vpop.f32.mrb[4].mxu0 }
 0x31f   : > { %v1066_v48 = vadd.f32 %v2203_v46, %v1065_v47  ;;  %v2308_v49 = vpop.f32.mrb[5].mxu0 }
 0x320   : > { %v1068_v50 = vpop.f32.mrb[6].mxu0 }
 0x321   : > { %v1074_v51 = vpack.c.bf16 %v1066_v48, %v1066_v48  ;;  %v2309_v52 = vpop.f32.mrb[7].mxu0 }
 0x322   : > { %1441 = vrot.lane.b32.xlu1 %v1072_v22, %s3320_s21  ;;  %1443 = vrot.lane.b32.xlu0 %v1073_v16, %s3320_s21 }
 0x323   : > { %2313 = vmatmul.mubr.msk.bf16.vlgmr.msra.gmra.mrb[4].mxu1 %vm1077_vm2, %v1072_v22  ;;  %v1149_v53 = vsel %vm1147_vm3, %v1074_v51, 0 }
 0x324   : > { %2324 = vmatprep.mubr.msk.bf16.mxu1 %vm3317_vm0, %v3316_v0  ;;  %2317 = vmatpush3.bf16.msra.mxu0 %v1149_v53 }
 0x325   : > { %2328 = vmatprep.subr.bf16.mxu0 %v3316_v0 }
 0x38c   : > { %v1199_v25 = vpop.permute.xlu0 %1198  ;;  %v1322_v27 = vpop.permute.xlu1 %1321 }
 0x38d   : > { %v1204_v26 = vsel %vm1077_vm2, %v1199_v25, 0  ;;  %v1327_v29 = vsel %vm1077_vm2, %v1322_v27, 0 }
 0x38e   : > { %2323 = vmatpush3.bf16.xpose.msra.mxu1 %v1204_v26 }
 0x38f   : > { %2334 = vmatprep.subr.bf16.mxu1 %v3316_v0 }
 0x390   : > { %v1196_v28 = vpop.permute.xlu0 %1195  ;;  %v1320_v31 = vpop.permute.xlu1 %1319 }
 0x394   : > { %v1444_v30 = vpop.permute.xlu0 %1443  ;;  %v1442_v33 = vpop.permute.xlu1 %1441 }
 0x395   : > { %2325 = vmatmul.mubr.msk.bf16.vlgmr.msra.gmra.mrb[8].mxu1 %vm1077_vm2, %v1196_v28  ;;  %v1449_v32 = vsel %vm1077_vm2, %v1444_v30, 0 }
 0x396   : > { %2335 = vmatpush3.bf16.xpose.msra.mxu1 %v1327_v29  ;;  %2336 = vmatprep.mubr.msk.bf16.mxu1 %vm3317_vm0, %v3316_v0 }
 0x397   : > { %2346 = vmatprep.subr.bf16.mxu1 %v3316_v0 }
 0x39d   : > { %2337 = vmatmul.mubr.msk.bf16.vlgmr.msra.gmra.mrb[12].mxu1 %vm1077_vm2, %v1320_v31 }
 0x39e   : > { %2347 = vmatpush3.bf16.xpose.msra.mxu1 %v1449_v32  ;;  %2348 = vmatprep.mubr.msk.bf16.mxu1 %vm3317_vm0, %v3316_v0 }
 0x39f   : > { %2358 = vmatprep.subr.bf16.mxu1 %v3316_v0 }
 0x3a5   : > { %2349 = vmatmul.mubr.msk.bf16.vlgmr.msra.gmra.mrb[16].mxu1 %vm1077_vm2, %v1442_v33 }
 0x3a6   : > { %2362 = vmatprep.mubr.msk.bf16.mxu1 %vm3317_vm0, %v3316_v0 }
 0x3f6   : > { %v1118_v40 = vpop.f32.mrb[4].mxu1 }
 0x3f7   : > { %v1130_v41 = vsub.f32 %v1118_v40, %v1128_v39  ;;  %v2314_v42 = vpop.f32.mrb[5].mxu1 }
 0x3f8   : > { %v1121_v43 = vpop.f32.mrb[6].mxu1 }
 0x3f9   : > { %v2315_v44 = vpop.f32.mrb[7].mxu1  ;;  %v1131_v45 = vsel %vm1077_vm2, %v1130_v41, -inf }
 0x3fa   : > { %1132 = vmax.xlane.f32.xlu0 %v1131_v45 }
 0x468   : > { %v1240_v54 = vpop.f32.mrb[8].mxu1 }
 0x469   : > { %v1246_v55 = vsub.f32 %v1240_v54, %v1128_v39  ;;  %v2326_v56 = vpop.f32.mrb[9].mxu1 }
 0x46a   : > { %v1243_v57 = vpop.f32.mrb[10].mxu1 }
 0x46b   : > { %v2327_v58 = vpop.f32.mrb[11].mxu1  ;;  %v1247_v59 = vsel %vm1077_vm2, %v1246_v55, -inf }
 0x46c   : > { %1248 = vmax.xlane.f32.xlu1 %v1247_v59 }
 0x470   : > { %v1363_v60 = vpop.f32.mrb[12].mxu1 }
 0x471   : > { %v1369_v61 = vsub.f32 %v1363_v60, %v1128_v39  ;;  %v2338_v62 = vpop.f32.mrb[13].mxu1 }
 0x472   : > { %v1366_v63 = vpop.f32.mrb[14].mxu1  ;;  %v2620_v62 = vld [vmem:[#allocation17] sm:$0xff]  }
 0x473   : > { %v2339_v1 = vpop.f32.mrb[15].mxu1  ;;  %v1370_v2 = vsel %vm1077_vm2, %v1369_v61, -inf  ;;  %2359 = vmatpush3.bf16.msra.mxu1 %v2620_v62 }
 0x474   : > { %1371 = vmax.xlane.f32.xlu0 %v1370_v2  ;;  %v2621_v1 = vld [vmem:[#allocation17 + $0x8] sm:$0xff]   ;;  %2360 = vmatprep.subr.bf16.mxu1 %v3316_v0 }
 0x477   : > { %2361 = vmatpush3.bf16.msra.mxu1 %v2621_v1 }
 0x478   : > { %v1485_v3 = vpop.f32.mrb[16].mxu1  ;;  %2374 = vmatprep.subr.bf16.mxu1 %v3316_v0 }
 0x479   : > { %v1491_v4 = vsub.f32 %v1485_v3, %v1128_v39  ;;  %v2350_v6 = vpop.f32.mrb[17].mxu1 }
 0x47a   : > { %v1488_v7 = vpop.f32.mrb[18].mxu1 }
 0x47b   : > { %v2351_v8 = vpop.f32.mrb[19].mxu1  ;;  %v1492_v9 = vsel %vm1077_vm2, %v1491_v4, -inf }
 0x47c   : > { %1493 = vmax.xlane.f32.xlu0 %v1492_v9 }
 0x487   : > { %v1133_v10 = vpop.xlane.xlu0 %1132 }
 0x488   : > { %v1134_v11 = vsub.f32 %v1130_v41, %v1133_v10 }
 0x48a   : > { %v1135_v12 = vmul.f32 1.442695, %v1134_v11 }
 0x48c   : > { %2628 = vpow2.f32 %v1135_v12 }
 0x496   : > { %v2629_v13 = vpop.eup %2628 }
 0x497   : > { %v1137_v14 = vsel %vm1077_vm2, %v2629_v13, 0.0 }
 0x498   : > { %1138 = vadd.xlane.f32.xlu1 %v1137_v14 }
 0x4a9   : > { %1262 = vrot.lane.b32.xlu1 %v1074_v51, %s3319_s27  ;;  %s4083_s27 = scalar_lea.hbm %s4275_s20, %s2249_s25 }
 0x4f9   : > { %v1249_v15 = vpop.xlane.xlu1 %1248 }
 0x4fa   : > { %v1250_v16 = vsub.f32 %v1246_v55, %v1249_v15 }
 0x4fc   : > { %v1251_v17 = vmul.f32 1.442695, %v1250_v16  ;;  %v2221_v16 = vld [vmem:[#allocation18] ss:$0 sm:$0xff] }
 0x4fe   : > { %2630 = vpow2.f32 %v1251_v17 }
 0x501   : > { %v1372_v18 = vpop.xlane.xlu0 %1371 }
 0x502   : > { %v1373_v19 = vsub.f32 %v1369_v61, %v1372_v18 }
 0x504   : > { %v1374_v20 = vmul.f32 1.442695, %v1373_v19 }
 0x506   : > { %2632 = vpow2.f32 %v1374_v20 }
 0x508   : > { %v2631_v21 = vpop.eup %2630 }
 0x509   : > { %v1494_v22 = vpop.xlane.xlu0 %1493  ;;  %v1253_v23 = vsel %vm1077_vm2, %v2631_v21, 0.0 }
 0x50a   : > { %v1495_v24 = vsub.f32 %v1491_v4, %v1494_v22  ;;  %1254 = vadd.xlane.f32.xlu0 %v1253_v23 }
 0x50c   : > { %v1496_v25 = vmul.f32 1.442695, %v1495_v24 }
 0x50e   : > { %2634 = vpow2.f32 %v1496_v25 }
 0x510   : > { %v2633_v26 = vpop.eup %2632 }
 0x511   : > { %v1376_v27 = vsel %vm1077_vm2, %v2633_v26, 0.0 }
 0x512   : > { %1377 = vadd.xlane.f32.xlu1 %v1376_v27 }
 0x518   : > { %v2635_v28 = vpop.eup %2634 }
 0x519   : > { %v1498_v29 = vsel %vm1077_vm2, %v2635_v28, 0.0 }
 0x51a   : > { %1499 = vadd.xlane.f32.xlu0 %v1498_v29  ;;  %v2622_v29 = vld [vmem:[#allocation23] sm:$0xff]  }
 0x523   : > { %1506 = vrot.lane.b32.xlu1 %v1074_v51, %s3320_s21  ;;  %s1850_s21 = scalar_lea.sflag [#allocation34], %s3912_s6 }
 0x525   : > { %v1139_v30 = vpop.xlane.xlu1 %1138 }
 0x526   : > { %2636 = vrcp.f32 %v1139_v30  ;;  %v2623_v30 = vld [vmem:[#allocation23 + $0x8] sm:$0xff]  }
 0x529   : > { %v1263_v32 = vpop.permute.xlu1 %1262 }
 0x52a   : > { %v1268_v35 = vsel %vm1147_vm3, %v1263_v32, 0  ;;  %v2625_v32 = vld [vmem:[#allocation26 + $0x8] sm:$0xff]  }
 0x530   : > { %v2637_v31 = vpop.eup %2636  ;;  %1384 = vrot.lane.b32.xlu0 %v1074_v51, %s3318_s16  ;;  %s4276_s16 = smov %s4275_s20 }
 0x531   : > { %v1141_v33 = vmul.f32 %v2637_v31, %v2629_v13  ;;  %v2624_v31 = vld [vmem:[#allocation26] sm:$0xff]  }
 0x533   : > { %1142 = vst.msk [vmem:[%s4034_s2] sm:$0xff] %vm1077_vm2, %v1141_v33  ;;  %v1143_v34 = vpack.c.bf16 %v1141_v33, %v1141_v33 }
 0x535   : > { %2319 = vmatmul.mubr.msk.bf16.vlgmr.msra.gmra.mrb[8].mxu0 %vm1077_vm2, %v1143_v34 }
 0x536   : > { %2329 = vmatpush3.bf16.msra.mxu0 %v1268_v35  ;;  %2330 = vmatprep.mubr.msk.bf16.mxu0 %vm3317_vm0, %v3316_v0 }
 0x537   : > { %2340 = vmatprep.subr.bf16.mxu0 %v3316_v0 }
 0x597   : > { %v1255_v36 = vpop.xlane.xlu0 %1254 }
 0x598   : > { %2638 = vrcp.f32 %v1255_v36  ;;  %v2225_v36 = vld [vmem:[#allocation20] ss:$0 sm:$0xff] }
 0x59f   : > { %v1378_v37 = vpop.xlane.xlu1 %1377 }
 0x5a0   : > { %2640 = vrcp.f32 %v1378_v37 }
 0x5a2   : > { %v2639_v38 = vpop.eup %2638 }
 0x5a3   : > { %v1257_v39 = vmul.f32 %v2639_v38, %v2631_v21  ;;  %v1507_v46 = vpop.permute.xlu1 %1506  ;;  %v2226_v38 = vld [vmem:[#allocation21] ss:$0 sm:$0xff] }
 0x5a4   : > { %v1512_v48 = vsel %vm1147_vm3, %v1507_v46, 0 }
 0x5a5   : > { %2210 = vst.msk [vmem:[%s4034_s2 + $0x8] sm:$0xff] %vm1077_vm2, %v1257_v39  ;;  %v1260_v40 = vpack.c.bf16 %v1257_v39, %v1257_v39 }
 0x5a7   : > { %v1500_v41 = vpop.xlane.xlu0 %1499  ;;  %2331 = vmatmul.mubr.msk.bf16.vlgmr.msra.gmra.mrb[12].mxu0 %vm1077_vm2, %v1260_v40 }
 0x5a8   : > { %2642 = vrcp.f32 %v1500_v41  ;;  %2342 = vmatprep.mubr.msk.bf16.mxu0 %vm3317_vm0, %v3316_v0 }
 0x5aa   : > { %v2641_v42 = vpop.eup %2640 }
 0x5ab   : > { %v1380_v43 = vmul.f32 %v2641_v42, %v2633_v26  ;;  %v1385_v44 = vpop.permute.xlu0 %1384  ;;  %v2626_v42 = vld [vmem:[#allocation26 + $0x10] sm:$0xff]  }
 0x5ac   : > { %v1390_v45 = vsel %vm1147_vm3, %v1385_v44, 0  ;;  %v2227_v44 = vld [vmem:[#allocation24] ss:$0 sm:$0xff] }
 0x5ad   : > { %2214 = vst.msk [vmem:[%s4034_s2 + $0x10] sm:$0xff] %vm1077_vm2, %v1380_v43  ;;  %2341 = vmatpush3.bf16.msra.mxu0 %v1390_v45  ;;  %v1383_v47 = vpack.c.bf16 %v1380_v43, %v1380_v43  ;;  %v2627_v43 = vld [vmem:[#allocation26 + $0x18] sm:$0xff]  }
 0x5ae   : > { %2352 = vmatprep.subr.bf16.mxu0 %v3316_v0 }
 0x5b0   : > { %2343 = vmatmul.mubr.msk.bf16.vlgmr.msra.gmra.mrb[16].mxu0 %vm1077_vm2, %v1383_v47 }
 0x5b1   : > { %2353 = vmatpush3.bf16.msra.mxu0 %v1512_v48  ;;  %2354 = vmatprep.mubr.msk.bf16.mxu0 %vm3317_vm0, %v3316_v0 }
 0x5b2   : > { %v2643_v49 = vpop.eup %2642  ;;  %2366 = vmatprep.subr.bf16.mxu0 %v3316_v0 }
 0x5b3   : > { %v1502_v50 = vmul.f32 %v2643_v49, %v2635_v28 }
 0x5b5   : > { %2218 = vst.msk [vmem:[%s4034_s2 + $0x18] sm:$0xff] %vm1077_vm2, %v1502_v50  ;;  %v1505_v51 = vpack.c.bf16 %v1502_v50, %v1502_v50 }
 0x5b8   : > { %2355 = vmatmul.mubr.msk.bf16.vlgmr.msra.gmra.mrb[20].mxu0 %vm1077_vm2, %v1505_v51 }
 0x5b9   : > { %2370 = vmatprep.mubr.msk.bf16.mxu0 %vm3317_vm0, %v3316_v0  ;;  %2367 = vmatpush3.bf16.msra.mxu0 %v2622_v29 }
 0x5ba   : > { %2368 = vmatprep.subr.bf16.mxu0 %v3316_v0 }
 0x5bd   : > { %2369 = vmatpush3.bf16.msra.mxu0 %v2623_v30 }
 0x608   : > { %v1185_v52 = vpop.f32.mrb[8].mxu0 }
 0x609   : > { %v1191_v53 = vpack.c.bf16 %v1185_v52, %v1185_v52  ;;  %v2320_v54 = vpop.f32.mrb[9].mxu0  ;;  %v2231_v52 = vld [vmem:[#allocation27] ss:$0 sm:$0xff] }
 0x60a   : > { %v1188_v55 = vpop.f32.mrb[10].mxu0 }
 0x60b   : > { %1193 = vst.msk [vmem:[#allocation2] sm:$0xf] %vm1192_vm4, %v1191_v53  ;;  %v2321_v56 = vpop.f32.mrb[11].mxu0 }
 0x67a   : > { %v1304_v57 = vpop.f32.mrb[12].mxu0 }
 0x67b   : > { %v2246_v58 = vpack.c.bf16 %v1304_v57, %v1304_v57  ;;  %v2332_v59 = vpop.f32.mrb[13].mxu0 }
 0x67c   : > { %v1307_v60 = vpop.f32.mrb[14].mxu0 }
 0x67d   : > { %1314 = vrot.lane.b32.xlu1 %v2246_v58, %s3321_s30  ;;  %v2333_v61 = vpop.f32.mrb[15].mxu0 }
 0x683   : > { %v1426_v63 = vpop.f32.mrb[16].mxu0 }
 0x684   : > { %v2247_v2 = vpack.c.bf16 %v1426_v63, %v1426_v63  ;;  %v2344_v3 = vpop.f32.mrb[17].mxu0 }
 0x685   : > { %v1429_v4 = vpop.f32.mrb[18].mxu0 }
 0x686   : > { %1436 = vrot.lane.b32.xlu0 %v2247_v2, %s3322_s8  ;;  %v2345_v6 = vpop.f32.mrb[19].mxu0  ;;  %s3324_s8 = smov [#allocation33]  }
 0x68b   : > { %v1548_v7 = vpop.f32.mrb[20].mxu0 }
 0x68c   : > { %v2248_v8 = vpack.c.bf16 %v1548_v7, %v1548_v7  ;;  %v2356_v9 = vpop.f32.mrb[21].mxu0 }
 0x68d   : > { %v1551_v10 = vpop.f32.mrb[22].mxu0 }
 0x68e   : > { %1558 = vrot.lane.b32.xlu1 %v2248_v8, %s3323_s5  ;;  %v2357_v11 = vpop.f32.mrb[23].mxu0  ;;  %s3160_s5 = sshll.u32 %s3324_s8, 4  ;;  %s3161_s5 = int_to_ptr.vmem [resolvable:$false] %s3160_s5 }
 0x68f   : > { %s3162_s2 = scalar_lea.vmem %s3161_s5, 1024  ;;  %p3163_p4 = scmp.lt.s32.totalorder %s4085_s1, %s3161_s5 }
 0x690   : > { %p3164_p10 = scmp.lt.s32.totalorder %s3162_s2, %s3156_s29 }
 0x692   : > { %p3165_p5 = por %p3164_p10, %p3163_p4 }
 0x694   : > { %p3166_p7 = pnand %p3165_p5, %p3159_p2 }
 0x6ef   : > { %v1315_v12 = vpop.permute.xlu1 %1314 }
 0x6f0   : > { %1318 = vst.msk [vmem:[#allocation2] sm:$0xf] %vm1317_vm5, %v1315_v12 }
 0x6f8   : > { %v1437_v13 = vpop.permute.xlu0 %1436 }
 0x6f9   : > { %1440 = vst.msk [vmem:[#allocation2] sm:$0xf] %vm1439_vm6, %v1437_v13 }
 0x700   : > { %v1559_v14 = vpop.permute.xlu1 %1558 }
 0x701   : > { %1562 = vst.msk [vmem:[#allocation2] sm:$0xf] %vm1561_vm7, %v1559_v14 }
 0x708   : > { %v1563_v15 = vld [vmem:[#allocation2] sm:$0xf] }
 0x709   : > { %2363 = vmatmul.mubr.msk.bf16.vlgmr.msra.gmra.mrb[20].mxu1 %vm901_vm1, %v1563_v15 }
 0x70a   : > { %2382 = vmatprep.mubr.msk.bf16.mxu1 %vm3317_vm0, %v3316_v0  ;;  %2375 = vmatpush3.bf16.msra.mxu1 %v2624_v31 }
 0x70b   : > { %2376 = vmatprep.subr.bf16.mxu1 %v3316_v0 }
 0x70e   : > { %2377 = vmatpush3.bf16.msra.mxu1 %v2625_v32 }
 0x70f   : > { %2378 = vmatprep.subr.bf16.mxu1 %v3316_v0 }
 0x712   : > { %2379 = vmatpush3.bf16.msra.mxu1 %v2626_v42 }
 0x713   : > { %2380 = vmatprep.subr.bf16.mxu1 %v3316_v0 }
 0x716   : > { %2381 = vmatpush3.bf16.msra.mxu1 %v2627_v43 }
 0x7dc   : > { %v1624_v17 = vpop.f32.mrb[20].mxu1 }
 0x7dd   : > { %v1625_v18 = vadd.f32 %v2221_v16, %v1624_v17  ;;  %v2364_v19 = vpop.f32.mrb[21].mxu1 }
 0x7de   : > { %v1627_v20 = vpop.f32.mrb[22].mxu1 }
 0x7df   : > { %v2365_v21 = vpop.f32.mrb[23].mxu1  ;;  %v1630_v22 = vadd.f32 %v1625_v18, %v3975_v5 }
 0x7e1   : > { %v1633_v23 = vsel %vm901_vm1, %v1630_v22, 0.0 }
 0x7e2   : > { %1634 = vadd.xlane.f32.xlu0 %v1633_v23 }
 0x86f   : > { %v1635_v24 = vpop.xlane.xlu0 %1634 }
 0x870   : > { %v1637_v25 = vmul.f32 0.03125, %v1635_v24 }
 0x872   : > { %v1638_v26 = vsub.f32 %v1630_v22, %v1637_v25 }
 0x874   : > { %v1639_v27 = vmul.f32 %v1638_v26, %v1638_v26 }
 0x876   : > { %v1640_v28 = vsel %vm901_vm1, %v1639_v27, 0.0 }
 0x877   : > { %1641 = vadd.xlane.f32.xlu1 %v1640_v28 }
 0x904   : > { %v1642_v5 = vpop.xlane.xlu1 %1641 }
 0x905   : > { %v1643_v33 = vmul.f32 0.03125, %v1642_v5 }
 0x907   : > { %v1644_v34 = vadd.f32 1e-06, %v1643_v33 }
 0x909   : > { %2644 = vrsqrt.f32 %v1644_v34 }
 0x913   : > { %v2645_v35 = vpop.eup %2644 }
 0x914   : > { %v1646_v37 = vmul.f32 %v2645_v35, %v1638_v26 }
 0x916   : > { %v1653_v39 = vmul.f32 %v2225_v36, %v1646_v37 }
 0x918   : > { %v1660_v40 = vadd.f32 %v2226_v38, %v1653_v39 }
 0x91a   : > { %v1661_v41 = vpack.c.bf16 %v1660_v40, %v1660_v40 }
 0x91c   : > { %2371 = vmatmul.mubr.msk.bf16.vlgmr.msra.gmra.mrb[24].mxu0 %vm901_vm1, %v1661_v41 }
 0x9ef   : > { %v1722_v45 = vpop.f32.mrb[24].mxu0 }
 0x9f0   : > { %v1723_v46 = vadd.f32 %v2227_v44, %v1722_v45  ;;  %v2372_v47 = vpop.f32.mrb[25].mxu0 }
 0x9f1   : > { %v1725_v48 = vpop.f32.mrb[26].mxu0 }
 0x9f2   : > { %v1728_v49 = vmax.f32 %v1723_v46, 0.0  ;;  %v2373_v50 = vpop.f32.mrb[27].mxu0 }
 0x9f4   : > { %v1729_v51 = vpack.c.bf16 %v1728_v49, %v1728_v49 }
 0x9f6   : > { %2383 = vmatmul.mubr.msk.bf16.vlgmr.msra.gmra.mrb[24].mxu1 %vm1769_vm8, %v1729_v51 }
 0xac9   : > { %v1807_v53 = vpop.f32.mrb[24].mxu1 }
 0xaca   : > { %v1808_v54 = vadd.f32 %v2231_v52, %v1807_v53  ;;  %v2384_v55 = vpop.f32.mrb[25].mxu1 }
 0xacb   : > { %v1810_v0 = vpop.f32.mrb[26].mxu1 }
 0xacc   : > { %v2385_v56 = vpop.f32.mrb[27].mxu1  ;;  %v1813_v57 = vadd.f32 %v1808_v54, %v1660_v40 }
 0xace   : > { %v1816_v58 = vsel %vm901_vm1, %v1813_v57, 0.0 }
 0xacf   : > { %1817 = vadd.xlane.f32.xlu0 %v1816_v58 }
 0xb5c   : > { %v1818_v59 = vpop.xlane.xlu0 %1817 }
 0xb5d   : > { %v1819_v60 = vmul.f32 0.03125, %v1818_v59 }
 0xb5f   : > { %v1820_v61 = vsub.f32 %v1813_v57, %v1819_v60 }
 0xb61   : > { %v1821_v62 = vmul.f32 %v1820_v61, %v1820_v61 }
 0xb63   : > { %v1822_v63 = vsel %vm901_vm1, %v1821_v62, 0.0 }
 0xb64   : > { %1823 = vadd.xlane.f32.xlu0 %v1822_v63 }
 0xb65   : > { %3169 = shalt.err (!%p3166_p7)
}
 0xb66   : > { %s3170_s25 = scalar_lea.hbm %s4083_s27, 512  ;;  %s3174_s20 = scalar_lea.hbm %s4276_s16, 1024 }
 0xb67   : > { %p3171_p0 = scmp.ne.s32.totalorder %s4083_s27, %s3170_s25  ;;  %p3175_p8 = scmp.lt.u32.totalorder %s4083_s27, %s4276_s16 }
 0xb68   : > { %p3176_p9 = scmp.lt.u32.totalorder %s3174_s20, %s3170_s25  ;;  %p3178_p13 = scmp.lt.u32.totalorder %s3170_s25, %s4083_s27 }
 0xb69   : > { %p3172_p6 = pnand %p3171_p0, %p4277_p1 }
 0xb6a   : > { %p3177_p12 = por %p3176_p9, %p3175_p8 }
 0xb6b   : > { %p3173_p11 = pneg %p3172_p6 }
 0xb6c   : > { %p3179_p3 = por %p3178_p13, %p3177_p12 }
 0xb6e   : > { %p3180_p2 = pnand %p3179_p3, %p3173_p11 }
 0xb70   : > { %3183 = shalt.err (!%p3180_p2)
}
 0xb71   : > { %s3325_s29 = smov 128   ;;  %v2237_v6 = vld [vmem:[#allocation29] ss:$0 sm:$0xff]  ;;  %v2238_v8 = vld [vmem:[#allocation30] ss:$0 sm:$0xff]  ;;  %s2241_s2 = sshll.u32 %s4256_s4, 7 }
 0xb72   : > { %2455 = dma.vmem_to_hbm [thread:$0]  (%p4277_p1), %s4085_s1, 512, %s4083_s27, %s1850_s21, %s3325_s29, %s3325_s29, %s3321_s30  }
 0xb73   : > { %s867_s25 = scalar_lea.vmem [#allocation32], %s2176_s23  ;;  %s4278_s8 = sld [smem:[#allocation65_spill]] }
 0xb74   : > { %s1863_s28 = sshll.u32 %s867_s25, 4  ;;  %s1845_s1 = scalar_lea.sflag [#allocation5], %s3912_s6  ;;  %s4120_s28 = int_to_ptr.vmem [resolvable:$true] %s1863_s28 }
 0xb75   : > { %s3184_s27 = scalar_lea.vmem %s4120_s28, 128  ;;  %s3326_s23 = smov [#allocation32]  }
 0xb76   : > { %p3185_p4 = scmp.ne.s32.totalorder %s4120_s28, %s3184_s27  ;;  %s3188_s4 = sshll.u32 %s3326_s23, 4  ;;  %s3189_s4 = int_to_ptr.vmem [resolvable:$false] %s3188_s4 }
 0xb77   : > { %s3190_s21 = scalar_lea.vmem %s3189_s4, 256  ;;  %p3191_p7 = scmp.lt.s32.totalorder %s4120_s28, %s3189_s4 }
 0xb78   : > { %p3186_p10 = pnand %p3185_p4, %p4277_p1  ;;  %p3192_p0 = scmp.lt.s32.totalorder %s3190_s21, %s3184_s27 }
 0xb79   : > { %s4118_s30 = scalar_lea.hbm %s4278_s8, %s2241_s2 }
 0xb7a   : > { %p3187_p5 = pneg %p3186_p10  ;;  %p3193_p6 = por %p3192_p0, %p3191_p7 }
 0xb7c   : > { %p3194_p11 = pnand %p3193_p6, %p3187_p5 }
 0xbf1   : > { %v1824_v1 = vpop.xlane.xlu0 %1823 }
 0xbf2   : > { %v1825_v2 = vmul.f32 0.03125, %v1824_v1 }
 0xbf4   : > { %v1826_v3 = vadd.f32 1e-06, %v1825_v2 }
 0xbf6   : > { %2646 = vrsqrt.f32 %v1826_v3 }
 0xc00   : > { %v2647_v4 = vpop.eup %2646 }
 0xc01   : > { %v1828_v7 = vmul.f32 %v2647_v4, %v1820_v61 }
 0xc03   : > { %v1835_v9 = vmul.f32 %v2237_v6, %v1828_v7 }
 0xc05   : > { %v1842_v10 = vadd.f32 %v2238_v8, %v1835_v9 }
 0xc07   : > { %1843 = vst.msk [vmem:[%s867_s25] sm:$0xff] %vm901_vm1, %v1842_v10 }
 0xc08   : > { %3197 = shalt.err (!%p3194_p11)
}
 0xc09   : > { %s3198_s6 = scalar_lea.hbm %s4118_s30, 128  ;;  %s3202_s2 = scalar_lea.hbm %s4278_s8, 256 }
 0xc0a   : > { %p3199_p8 = scmp.ne.s32.totalorder %s4118_s30, %s3198_s6  ;;  %p3203_p13 = scmp.lt.u32.totalorder %s4118_s30, %s4278_s8 }
 0xc0b   : > { %p3204_p3 = scmp.lt.u32.totalorder %s3202_s2, %s3198_s6  ;;  %p3206_p4 = scmp.lt.u32.totalorder %s3198_s6, %s4118_s30 }
 0xc0c   : > { %p3200_p9 = pnand %p3199_p8, %p4277_p1 }
 0xc0d   : > { %p3205_p2 = por %p3204_p3, %p3203_p13 }
 0xc0e   : > { %p3201_p12 = pneg %p3200_p9 }
 0xc0f   : > { %p3207_p10 = por %p3206_p4, %p3205_p2 }
 0xc11   : > { %p3208_p5 = pnand %p3207_p10, %p3201_p12 }
 0xc13   : > { %3211 = shalt.err (!%p3208_p5)
}
 0xc14   : > { %2454 = dma.vmem_to_hbm [thread:$0]  (%p4277_p1), %s4120_s28, 128, %s4118_s30, %s1845_s1  }
 0xc15 PF: > { %s4279_s20 = sld [smem:[#allocation48_spill]]  ;;  %s4280_s27 = sld [smem:[#allocation51_spill]] }
 0xc16   : > { %p4281_p7 = scmp.ne.s32.totalorder %s4247_s0, 0 }
 0xc1b   : > { %s1891_s23 = sand.u32 1, %s4279_s20   ;;  %p4282_p0 = scmp.ge.s32.totalorder %s4280_s27, 2 }
 0xc1c   : > { %s1892_s4 = scalar_lea.sflag [#allocation5], %s1891_s23 }
 0xc1d   : > { %p2515_p6 = pnand %p4282_p0, %p4281_p7 }
 0xc1f   : > { %3273 = dma.done.wait (!%p2515_p6), %s1892_s4, 128  }
 0xc20   : > { %3275 = vsyncadd (!%p2515_p6), %s1892_s4, 4294967168  ;;  %s1901_s21 = scalar_lea.sflag [#allocation34], %s1891_s23 }
 0xc21   : > { %3277 = dma.done.wait (!%p2515_p6), %s1901_s21, 512  }
 0xc22   : > { %3279 = vsyncadd (!%p2515_p6), %s1901_s21, 4294966784  ;;  %s4283_s0 = sld [smem:[#allocation49_spill]]  ;;  %s4284_s30 = sld [smem:[#allocation50_spill]] }
 0xc23   : > { %p47_p1 = scmp.ge.s32.totalorder %s3803_s3, 4   ;;  %s4285_s20 = smov %s3814_s22 }
 0xc24   : > { %s4286_s21 = smov %s3803_s3 }
 0xc25   :  { %49 = sbr.rel (!%p47_p1) target bundleno = 31 (0x1f), region = 234 }
 0xc2c   :  { %1906 = vsyncpa [#allocation4], 1 }
 0xc2d   :  { %1908 = vsyncpa [#allocation4 + $0x1], 1 }
 0xc2e   :  { %1909 = vsyncpa [#allocation7], 1 }
 0xc2f   :  { %1911 = vsyncpa [#allocation7 + $0x1], 1 }
 0xc30   :  { %1912 = vsyncpa [#allocation10], 1 }
 0xc31   :  { %1913 = vsyncpa [#allocation13], 1 }
 0xc32   :  { %1914 = vsyncpa [#allocation16], 1 }
 0xc33   :  { %1915 = vsyncpa [#allocation19], 1 }
 0xc34   :  { %1916 = vsyncpa [#allocation22], 1 }
 0xc35   :  { %1917 = vsyncpa [#allocation25], 1 }
 0xc36   :  { %1918 = vsyncpa [#allocation28], 1 }
 0xc37   :  { %1919 = vsyncpa [#allocation31], 1 }
 0xc38   :  { %1920 = vsyncpa [#allocation5], 1 }
 0xc39   :  { %1922 = vsyncpa [#allocation5 + $0x1], 1 }
 0xc3a   :  { %1923 = vsyncpa [#allocation34], 1 }
 0xc3b   :  { %1925 = vsyncpa [#allocation34 + $0x1], 1 }

// kernel: tpu_custom_call.1
= control target key start
LH: loop header
LB: loop body
LE: loop exit
PB: predicated region body
PF: predicated region fallthrough
CT: control target
= control target key end

     0   :  { %s4163_s0 = inlined_call_operand.hbm [shape: f32[2,8,32], index: 0, kind: input, shape index: {}]   ;;  %s4164_s1 = inlined_call_operand.hbm [shape: f32[2,1,8], index: 1, kind: input, shape index: {}]   ;;  %s4165_s2 = inlined_call_operand.hbm [shape: bf16[32,32], index: 2, kind: input, shape index: {}]   ;;  %s4166_s3 = inlined_call_operand.hbm [shape: f32[1,32], index: 3, kind: input, shape index: {}]   ;;  %s4167_s4 = inlined_call_operand.hbm [shape: bf16[32,32], index: 4, kind: input, shape index: {}]   ;;  %s4168_s5 = inlined_call_operand.hbm [shape: f32[1,32], index: 5, kind: input, shape index: {}]   ;;  %s4169_s6 = inlined_call_operand.hbm [shape: bf16[32,32], index: 6, kind: input, shape index: {}]   ;;  %s4170_s7 = inlined_call_operand.hbm [shape: f32[1,32], index: 7, kind: input, shape index: {}]   ;;  %s4171_s8 = inlined_call_operand.hbm [shape: bf16[32,32], index: 8, kind: input, shape index: {}]   ;;  %s4172_s9 = inlined_call_operand.hbm [shape: f32[1,32], index: 9, kind: input, shape index: {}]   ;;  %s4173_s10 = inlined_call_operand.hbm [shape: f32[1,32], index: 10, kind: input, shape index: {}]   ;;  %s4174_s11 = inlined_call_operand.hbm [shape: f32[1,32], index: 11, kind: input, shape index: {}]   ;;  %s4175_s12 = inlined_call_operand.hbm [shape: bf16[32,64], index: 12, kind: input, shape index: {}]   ;;  %s4176_s13 = inlined_call_operand.hbm [shape: f32[1,64], index: 13, kind: input, shape index: {}]   ;;  %s4177_s14 = inlined_call_operand.hbm [shape: bf16[64,32], index: 14, kind: input, shape index: {}]   ;;  %s4178_s15 = inlined_call_operand.hbm [shape: f32[1,32], index: 15, kind: input, shape index: {}]   ;;  %s4179_s16 = inlined_call_operand.hbm [shape: f32[1,32], index: 16, kind: input, shape index: {}]   ;;  %s4180_s17 = inlined_call_operand.hbm [shape: f32[1,32], index: 17, kind: input, shape index: {}]   ;;  %s4181_s18 = inlined_call_operand.hbm [shape: f32[2,8,32], index: 18, kind: output, shape index: {0}]   ;;  %s4182_s19 = inlined_call_operand.hbm [shape: f32[2,4,8,8], index: 19, kind: output, shape index: {1}]  }
   0x1   :  { %4205 = sst [smem:[#allocation54_spill]] %s4163_s0 }
   0x2   :  { %4206 = sst [smem:[#allocation55_spill]] %s4164_s1 }
   0x3   :  { %4207 = sst [smem:[#allocation56_spill]] %s4165_s2 }
   0x4   :  { %4208 = sst [smem:[#allocation57_spill]] %s4166_s3 }
   0x5   :  { %4209 = sst [smem:[#allocation58_spill]] %s4167_s4 }
   0x6   :  { %4210 = sst [smem:[#allocation59_spill]] %s4168_s5 }
   0x7   :  { %4211 = sst [smem:[#allocation60_spill]] %s4169_s6 }
   0x8   :  { %4212 = sst [smem:[#allocation61_spill]] %s4170_s7 }
   0x9   :  { %4213 = sst [smem:[#allocation62_spill]] %s4171_s8 }
   0xa   :  { %4214 = sst [smem:[#allocation63_spill]] %s4179_s16 }
   0xb   :  { %4215 = sst [smem:[#allocation64_spill]] %s4180_s17 }
   0xc   :  { %4216 = sst [smem:[#allocation65_spill]] %s4181_s18 }
   0xd   :  { %4217 = sst [smem:[#allocation66_spill]] %s4182_s19 }
   0xe   :  { %25 = vsyncpa [#allocation4], 0 }
   0xf   :  { %27 = vsyncpa [#allocation4 + $0x1], 0 }
  0x10   :  { %28 = vsyncpa [#allocation7], 0 }
  0x11   :  { %30 = vsyncpa [#allocation7 + $0x1], 0 }
  0x12   :  { %31 = vsyncpa [#allocation10], 0 }
  0x13   :  { %32 = vsyncpa [#allocation13], 0 }
  0x14   :  { %33 = vsyncpa [#allocation16], 0 }
  0x15   :  { %34 = vsyncpa [#allocation19], 0 }
  0x16   :  { %35 = vsyncpa [#allocation22], 0 }
  0x17   :  { %36 = vsyncpa [#allocation25], 0 }
  0x18   :  { %37 = vsyncpa [#allocation28], 0 }
  0x19   :  { %38 = vsyncpa [#allocation31], 0 }
  0x1a   :  { %39 = vsyncpa [#allocation5], 0 }
  0x1b   :  { %41 = vsyncpa [#allocation5 + $0x1], 0 }
  0x1c   :  { %42 = vsyncpa [#allocation34], 0 }
  0x1d   :  { %44 = vsyncpa [#allocation34 + $0x1], 0  ;;  %s3427_s0 = smov 0   ;;  %s3429_s30 = smov 0  }
  0x1e   :  { %s3431_s20 = smov 0   ;;  %s3433_s21 = smov 0  }
  0x1f LB: > { %4218 = sst [smem:[#allocation48_spill]] %s3282_s0  ;;  %s3296_s1 = smov [#allocation8]   ;;  %s3294_s21 = sphi %s3433_s21, %s4286_s21   ;;  %s3290_s20 = sphi %s3431_s20, %s4285_s20   ;;  %s3286_s30 = sphi %s3429_s30, %s4284_s30   ;;  %s3282_s0 = sphi %s3427_s0, %s4283_s0  }
  0x20   : > { %4219 = sst [smem:[#allocation49_spill]] %s3286_s30  ;;  %s507_s22 = sshll.u32 %s3296_s1, 4  ;;  %s3453_s22 = int_to_ptr.vmem [resolvable:$true] %s507_s22 }
  0x21   : > { %4220 = sst [smem:[#allocation50_spill]] %s3290_s20  ;;  %s3448_s2 = sadd.s32 4294967295, %s3294_s21  }
  0x22   : > { %4221 = sst [smem:[#allocation51_spill]] %s3294_s21  ;;  %p2154_p0 = scmp.ge.s32.totalorder %s3294_s21, 1 }
  0x23   : > { %4222 = sst [smem:[#allocation52_spill]] %s3448_s2  ;;  %p4199_p1 = scmp.eq.s32.totalorder %s3448_s2, 0 }
  0x24   : > { %p495_p2 = scmp.lt.s32.totalorder %s3294_s21, 3  ;;  %s3297_s24 = smov [#allocation9]  }
  0x25   : > { %s521_s25 = sshll.u32 %s3297_s24, 4  ;;  %s3298_s26 = smov [#allocation12]   ;;  %s3468_s25 = int_to_ptr.vmem [resolvable:$true] %s521_s25 }
  0x26   : > { %p3455_p3 = pnand %p2154_p0, %p495_p2  ;;  %s545_s27 = sshll.u32 %s3298_s26, 4  ;;  %s3470_s27 = int_to_ptr.vmem [resolvable:$true] %s545_s27 }
  0x27   : > { %s4226_s1 = sld [smem:[#allocation56_spill]] }
  0x28   : > { %s4223_s23 = scalar_select %p3455_p3, 1, 0 }
  0x29   : > { %p2458_p5 = pneg %p3455_p3 }
  0x2a   : > { %4224 = sst [smem:[#allocation53_spill]] %s4223_s23 }
  0x2b   : > { %p3464_p6 = pnand %p2458_p5, %p4199_p1 }
  0x2d   : > { %s2648_s18 = scalar_lea.hbm %s4226_s1, 256  ;;  %p3480_p8 = pneg %p3464_p6 }
  0x2e   : > { %p2649_p7 = scmp.ne.s32.totalorder %s4226_s1, %s2648_s18  ;;  %p2655_p11 = scmp.lt.u32.totalorder %s2648_s18, %s4226_s1 }
  0x30   : > { %p2651_p9 = pnand %p3480_p8, %p2649_p7 }
  0x32   : > { %p2652_p10 = pneg %p2651_p9 }
  0x34   : > { %p2657_p12 = pnand %p2655_p11, %p2652_p10 }
  0x36   : > { %2660 = shalt.err (!%p2657_p12)
}
  0x37   : > { %s2661_s19 = scalar_lea.vmem %s3453_s22, 256  ;;  %p2669_p5 = scmp.lt.s32.totalorder %s3453_s22, %s3453_s22 }
  0x38   : > { %p2662_p13 = scmp.ne.s32.totalorder %s3453_s22, %s2661_s19  ;;  %p2670_p4 = scmp.lt.s32.totalorder %s2661_s19, %s2661_s19 }
  0x3a   : > { %p2664_p0 = pnand %p2662_p13, %p3480_p8  ;;  %p2671_p7 = por %p2670_p4, %p2669_p5 }
  0x3c   : > { %p2665_p2 = pneg %p2664_p0 }
  0x3e   : > { %p2672_p9 = pnand %p2671_p7, %p2665_p2 }
  0x40   : > { %2675 = shalt.err (!%p2672_p9)
}
  0x41   : > { %s3299_s23 = smov 64   ;;  %s3300_s18 = smov 4  }
  0x42   : > { %2461 = dma.hbm_to_vmem [thread:$0]  (!%p3464_p6), %s4226_s1, 256, %s3453_s22, [#allocation7], %s3299_s23, %s3299_s23, %s3300_s18  }
  0x43   : > { %s4228_s0 = sld [smem:[#allocation57_spill]] }
  0x49   : > { %s4229_s17 = smov %s4228_s0  ;;  %s2676_s19 = scalar_lea.hbm %s4228_s0, 16 }
  0x4a   : > { %p2677_p4 = scmp.ne.s32.totalorder %s4229_s17, %s2676_s19  ;;  %p2683_p12 = scmp.lt.u32.totalorder %s2676_s19, %s4229_s17 }
  0x4c   : > { %p2679_p10 = pnand %p2677_p4, %p3480_p8 }
  0x4e   : > { %p2680_p11 = pneg %p2679_p10 }
  0x50   : > { %p2685_p13 = pnand %p2683_p12, %p2680_p11 }
  0x52   : > { %2688 = shalt.err (!%p2685_p13)
}
  0x53   : > { %s2689_s22 = scalar_lea.vmem %s3468_s25, 16  ;;  %s2696_s0 = scalar_lea.vmem %s3468_s25, 32 }
  0x54   : > { %p2690_p0 = scmp.ne.s32.totalorder %s3468_s25, %s2689_s22  ;;  %p2697_p7 = scmp.lt.s32.totalorder %s3468_s25, %s3468_s25 }
  0x55   : > { %p2698_p9 = scmp.lt.s32.totalorder %s2696_s0, %s2689_s22 }
  0x56   : > { %p2692_p2 = pnand %p2690_p0, %p3480_p8 }
  0x57   : > { %p2699_p4 = por %p2698_p9, %p2697_p7 }
  0x58   : > { %p2693_p5 = pneg %p2692_p2 }
  0x5a   : > { %p2700_p10 = pnand %p2699_p4, %p2693_p5 }
  0x5c   : > { %2703 = shalt.err (!%p2700_p10)
}
  0x5d   : > { %2464 = dma.hbm_to_vmem [thread:$0]  (!%p3464_p6), %s4229_s17, 16, %s3468_s25, [#allocation10]  }
  0x5e   : > { %s4230_s5 = sld [smem:[#allocation59_spill]] }
  0x64   : > { %s2704_s2 = scalar_lea.hbm %s4230_s5, 16 }
  0x65   : > { %p2705_p11 = scmp.ne.s32.totalorder %s4230_s5, %s2704_s2  ;;  %p2711_p0 = scmp.lt.u32.totalorder %s2704_s2, %s4230_s5 }
  0x67   : > { %p2707_p12 = pnand %p2705_p11, %p3480_p8 }
  0x69   : > { %p2708_p13 = pneg %p2707_p12 }
  0x6b   : > { %p2713_p2 = pnand %p2711_p0, %p2708_p13 }
  0x6d   : > { %2716 = shalt.err (!%p2713_p2)
}
  0x6e   : > { %s2717_s25 = scalar_lea.vmem %s3470_s27, 16  ;;  %s2724_s22 = scalar_lea.vmem %s3470_s27, 32 }
  0x6f   : > { %p2718_p5 = scmp.ne.s32.totalorder %s3470_s27, %s2717_s25  ;;  %p2725_p4 = scmp.lt.s32.totalorder %s3470_s27, %s3470_s27 }
  0x70   : > { %p2726_p10 = scmp.lt.s32.totalorder %s2724_s22, %s2717_s25 }
  0x71   : > { %p2720_p7 = pnand %p2718_p5, %p3480_p8 }
  0x72   : > { %p2727_p11 = por %p2726_p10, %p2725_p4 }
  0x73   : > { %p2721_p9 = pneg %p2720_p7 }
  0x75   : > { %p2728_p12 = pnand %p2727_p11, %p2721_p9 }
  0x77   : > { %2731 = shalt.err (!%p2728_p12)
}
  0x78   : > { %2470 = dma.hbm_to_vmem [thread:$0]  (!%p3464_p6), %s4230_s5, 16, %s3470_s27, [#allocation13]  }
  0x79   : > { %s3301_s30 = smov [#allocation15]   ;;  %s3302_s21 = smov [#allocation18]  }
  0x7a   : > { %s569_s20 = sshll.u32 %s3301_s30, 4  ;;  %s593_s2 = sshll.u32 %s3302_s21, 4  ;;  %s570_s20 = int_to_ptr.vmem [resolvable:$true] %s569_s20  ;;  %s594_s2 = int_to_ptr.vmem [resolvable:$true] %s593_s2 }
  0x7b   : > { %s4231_s7 = sld [smem:[#allocation61_spill]] }
  0x81   : > { %s2732_s26 = scalar_lea.hbm %s4231_s7, 16 }
  0x82   : > { %p2733_p13 = scmp.ne.s32.totalorder %s4231_s7, %s2732_s26  ;;  %p2739_p5 = scmp.lt.u32.totalorder %s2732_s26, %s4231_s7 }
  0x84   : > { %p2735_p0 = pnand %p2733_p13, %p3480_p8 }
  0x86   : > { %p2736_p2 = pneg %p2735_p0 }
  0x88   : > { %p2741_p7 = pnand %p2739_p5, %p2736_p2 }
  0x8a   : > { %2744 = shalt.err (!%p2741_p7)
}
  0x8b   : > { %s2745_s27 = scalar_lea.vmem %s570_s20, 16  ;;  %s2752_s16 = scalar_lea.vmem %s570_s20, 32 }
  0x8c   : > { %p2746_p9 = scmp.ne.s32.totalorder %s570_s20, %s2745_s27  ;;  %p2753_p11 = scmp.lt.s32.totalorder %s570_s20, %s570_s20 }
  0x8d   : > { %p2754_p12 = scmp.lt.s32.totalorder %s2752_s16, %s2745_s27 }
  0x8e   : > { %p2748_p4 = pnand %p2746_p9, %p3480_p8 }
  0x8f   : > { %p2755_p1 = por %p2754_p12, %p2753_p11 }
  0x90   : > { %p2749_p10 = pneg %p2748_p4 }
  0x92   : > { %p2756_p3 = pnand %p2755_p1, %p2749_p10 }
  0x94   : > { %2759 = shalt.err (!%p2756_p3)
}
  0x95   : > { %2476 = dma.hbm_to_vmem [thread:$0]  (!%p3464_p6), %s4231_s7, 16, %s570_s20, [#allocation16]  }
  0x96   : > { %s2760_s26 = scalar_lea.hbm %s4172_s9, 16 }
  0x97   : > { %p2761_p13 = scmp.ne.s32.totalorder %s4172_s9, %s2760_s26  ;;  %p2767_p3 = scmp.lt.u32.totalorder %s2760_s26, %s4172_s9 }
  0x99   : > { %p2763_p0 = pnand %p2761_p13, %p3480_p8 }
  0x9b   : > { %p2764_p1 = pneg %p2763_p0 }
  0x9d   : > { %p2769_p2 = pnand %p2767_p3, %p2764_p1 }
  0x9f   : > { %2772 = shalt.err (!%p2769_p2)
}
  0xa0   : > { %s2773_s27 = scalar_lea.vmem %s594_s2, 16  ;;  %s2780_s20 = scalar_lea.vmem %s594_s2, 32 }
  0xa1   : > { %p2774_p5 = scmp.ne.s32.totalorder %s594_s2, %s2773_s27  ;;  %p2781_p4 = scmp.lt.s32.totalorder %s594_s2, %s594_s2 }
  0xa2   : > { %p2782_p10 = scmp.lt.s32.totalorder %s2780_s20, %s2773_s27 }
  0xa3   : > { %p2776_p7 = pnand %p2774_p5, %p3480_p8 }
  0xa4   : > { %p2783_p11 = por %p2782_p10, %p2781_p4 }
  0xa5   : > { %p2777_p9 = pneg %p2776_p7 }
  0xa7   : > { %p2784_p12 = pnand %p2783_p11, %p2777_p9 }
  0xa9   : > { %2787 = shalt.err (!%p2784_p12)
}
  0xaa   : > { %2482 = dma.hbm_to_vmem [thread:$0]  (!%p3464_p6), %s4172_s9, 16, %s594_s2, [#allocation19]  }
  0xab   : > { %s3303_s21 = smov [#allocation21]   ;;  %s3304_s29 = smov [#allocation24]  }
  0xac   : > { %s615_s28 = sshll.u32 %s3303_s21, 4  ;;  %s639_s26 = sshll.u32 %s3304_s29, 4  ;;  %s616_s28 = int_to_ptr.vmem [resolvable:$true] %s615_s28  ;;  %s640_s26 = int_to_ptr.vmem [resolvable:$true] %s639_s26 }
  0xad   : > { %s2788_s22 = scalar_lea.hbm %s4174_s11, 16 }
  0xae   : > { %p2789_p13 = scmp.ne.s32.totalorder %s4174_s11, %s2788_s22  ;;  %p2795_p3 = scmp.lt.u32.totalorder %s2788_s22, %s4174_s11 }
  0xb0   : > { %p2791_p0 = pnand %p2789_p13, %p3480_p8 }
  0xb2   : > { %p2792_p1 = pneg %p2791_p0 }
  0xb4   : > { %p2797_p2 = pnand %p2795_p3, %p2792_p1 }
  0xb6   : > { %2800 = shalt.err (!%p2797_p2)
}
  0xb7   : > { %s2801_s2 = scalar_lea.vmem %s616_s28, 16  ;;  %s2808_s30 = scalar_lea.vmem %s616_s28, 32 }
  0xb8   : > { %p2802_p5 = scmp.ne.s32.totalorder %s616_s28, %s2801_s2  ;;  %p2809_p4 = scmp.lt.s32.totalorder %s616_s28, %s616_s28 }
  0xb9   : > { %p2810_p10 = scmp.lt.s32.totalorder %s2808_s30, %s2801_s2 }
  0xba   : > { %p2804_p7 = pnand %p2802_p5, %p3480_p8 }
  0xbb   : > { %p2811_p11 = por %p2810_p10, %p2809_p4 }
  0xbc   : > { %p2805_p9 = pneg %p2804_p7 }
  0xbe   : > { %p2812_p12 = pnand %p2811_p11, %p2805_p9 }
  0xc0   : > { %2815 = shalt.err (!%p2812_p12)
}
  0xc1   : > { %2488 = dma.hbm_to_vmem [thread:$0]  (!%p3464_p6), %s4174_s11, 16, %s616_s28, [#allocation22]  }
  0xc2   : > { %s2816_s22 = scalar_lea.hbm %s4176_s13, 16 }
  0xc3   : > { %p2817_p13 = scmp.ne.s32.totalorder %s4176_s13, %s2816_s22  ;;  %p2823_p3 = scmp.lt.u32.totalorder %s2816_s22, %s4176_s13 }
  0xc5   : > { %p2819_p0 = pnand %p2817_p13, %p3480_p8 }
  0xc7   : > { %p2820_p1 = pneg %p2819_p0 }
  0xc9   : > { %p2825_p2 = pnand %p2823_p3, %p2820_p1 }
  0xcb   : > { %2828 = shalt.err (!%p2825_p2)
}
  0xcc   : > { %s2829_s2 = scalar_lea.vmem %s640_s26, 16  ;;  %s2836_s28 = scalar_lea.vmem %s640_s26, 32 }
  0xcd   : > { %p2830_p5 = scmp.ne.s32.totalorder %s640_s26, %s2829_s2  ;;  %p2837_p4 = scmp.lt.s32.totalorder %s640_s26, %s640_s26 }
  0xce   : > { %p2838_p10 = scmp.lt.s32.totalorder %s2836_s28, %s2829_s2 }
  0xcf   : > { %p2832_p7 = pnand %p2830_p5, %p3480_p8 }
  0xd0   : > { %p2839_p11 = por %p2838_p10, %p2837_p4 }
  0xd1   : > { %p2833_p9 = pneg %p2832_p7 }
  0xd3   : > { %p2840_p12 = pnand %p2839_p11, %p2833_p9 }
  0xd5   : > { %2843 = shalt.err (!%p2840_p12)
}
  0xd6   : > { %2494 = dma.hbm_to_vmem [thread:$0]  (!%p3464_p6), %s4176_s13, 16, %s640_s26, [#allocation25]  }
  0xd7   : > { %s3305_s29 = smov [#allocation27]   ;;  %s3306_s25 = smov [#allocation11]  }
  0xd8   : > { %s663_s19 = sshll.u32 %s3305_s29, 4  ;;  %s531_s22 = sshll.u32 %s3306_s25, 4  ;;  %s664_s19 = int_to_ptr.vmem [resolvable:$true] %s663_s19  ;;  %s532_s22 = int_to_ptr.vmem [resolvable:$true] %s531_s22 }
  0xd9   : > { %s2844_s20 = scalar_lea.hbm %s4178_s15, 16 }
  0xda   : > { %p2845_p13 = scmp.ne.s32.totalorder %s4178_s15, %s2844_s20  ;;  %p2851_p3 = scmp.lt.u32.totalorder %s2844_s20, %s4178_s15 }
  0xdc   : > { %p2847_p0 = pnand %p2845_p13, %p3480_p8 }
  0xde   : > { %p2848_p1 = pneg %p2847_p0 }
  0xe0   : > { %p2853_p2 = pnand %p2851_p3, %p2848_p1 }
  0xe2   : > { %2856 = shalt.err (!%p2853_p2)
}
  0xe3   : > { %s2857_s26 = scalar_lea.vmem %s664_s19, 16  ;;  %s2864_s21 = scalar_lea.vmem %s664_s19, 32 }
  0xe4   : > { %p2858_p5 = scmp.ne.s32.totalorder %s664_s19, %s2857_s26  ;;  %p2865_p4 = scmp.lt.s32.totalorder %s664_s19, %s664_s19 }
  0xe5   : > { %p2866_p10 = scmp.lt.s32.totalorder %s2864_s21, %s2857_s26 }
  0xe6   : > { %p2860_p7 = pnand %p2858_p5, %p3480_p8 }
  0xe7   : > { %p2867_p11 = por %p2866_p10, %p2865_p4 }
  0xe8   : > { %p2861_p9 = pneg %p2860_p7 }
  0xea   : > { %p2868_p12 = pnand %p2867_p11, %p2861_p9 }
  0xec   : > { %2871 = shalt.err (!%p2868_p12)
}
  0xed   : > { %2500 = dma.hbm_to_vmem [thread:$0]  (!%p3464_p6), %s4178_s15, 16, %s664_s19, [#allocation28]  }
  0xee   : > { %s4232_s4 = sld [smem:[#allocation58_spill]] }
  0xf4   : > { %s2872_s20 = scalar_lea.hbm %s4232_s4, 256 }
  0xf5   : > { %p2873_p13 = scmp.ne.s32.totalorder %s4232_s4, %s2872_s20  ;;  %p2879_p3 = scmp.lt.u32.totalorder %s2872_s20, %s4232_s4 }
  0xf7   : > { %p2875_p0 = pnand %p2873_p13, %p3480_p8 }
  0xf9   : > { %p2876_p1 = pneg %p2875_p0 }
  0xfb   : > { %p2881_p2 = pnand %p2879_p3, %p2876_p1 }
  0xfd   : > { %2884 = shalt.err (!%p2881_p2)
}
  0xfe   : > { %s2885_s26 = scalar_lea.vmem %s532_s22, 256  ;;  %p2893_p4 = scmp.lt.s32.totalorder %s532_s22, %s532_s22 }
  0xff   : > { %p2886_p5 = scmp.ne.s32.totalorder %s532_s22, %s2885_s26  ;;  %p2894_p10 = scmp.lt.s32.totalorder %s2885_s26, %s2885_s26 }
 0x101   : > { %p2888_p7 = pnand %p2886_p5, %p3480_p8  ;;  %p2895_p11 = por %p2894_p10, %p2893_p4 }
 0x103   : > { %p2889_p9 = pneg %p2888_p7 }
 0x105   : > { %p2896_p12 = pnand %p2895_p11, %p2889_p9 }
 0x107   : > { %2899 = shalt.err (!%p2896_p12)
}
 0x108   : > { %2467 = dma.hbm_to_vmem [thread:$0]  (!%p3464_p6), %s4232_s4, 256, %s532_s22, [#allocation10], %s3299_s23, %s3299_s23, %s3300_s18  }
 0x109   : > { %s3307_s29 = smov [#allocation14]   ;;  %s3308_s0 = smov [#allocation17]  }
 0x10a   : > { %s555_s25 = sshll.u32 %s3307_s29, 4  ;;  %s579_s27 = sshll.u32 %s3308_s0, 4  ;;  %s556_s25 = int_to_ptr.vmem [resolvable:$true] %s555_s25  ;;  %s580_s27 = int_to_ptr.vmem [resolvable:$true] %s579_s27 }
 0x10b   : > { %s4233_s6 = sld [smem:[#allocation60_spill]] }
 0x111   : > { %s2900_s2 = scalar_lea.hbm %s4233_s6, 256 }
 0x112   : > { %p2901_p13 = scmp.ne.s32.totalorder %s4233_s6, %s2900_s2  ;;  %p2907_p3 = scmp.lt.u32.totalorder %s2900_s2, %s4233_s6 }
 0x114   : > { %p2903_p0 = pnand %p2901_p13, %p3480_p8 }
 0x116   : > { %p2904_p1 = pneg %p2903_p0 }
 0x118   : > { %p2909_p2 = pnand %p2907_p3, %p2904_p1 }
 0x11a   : > { %2912 = shalt.err (!%p2909_p2)
}
 0x11b   : > { %s2913_s22 = scalar_lea.vmem %s556_s25, 256  ;;  %p2921_p4 = scmp.lt.s32.totalorder %s556_s25, %s556_s25 }
 0x11c   : > { %p2914_p5 = scmp.ne.s32.totalorder %s556_s25, %s2913_s22  ;;  %p2922_p10 = scmp.lt.s32.totalorder %s2913_s22, %s2913_s22 }
 0x11e   : > { %p2916_p7 = pnand %p2914_p5, %p3480_p8  ;;  %p2923_p11 = por %p2922_p10, %p2921_p4 }
 0x120   : > { %p2917_p9 = pneg %p2916_p7 }
 0x122   : > { %p2924_p12 = pnand %p2923_p11, %p2917_p9 }
 0x124   : > { %2927 = shalt.err (!%p2924_p12)
}
 0x125   : > { %2473 = dma.hbm_to_vmem [thread:$0]  (!%p3464_p6), %s4233_s6, 256, %s556_s25, [#allocation13], %s3299_s23, %s3299_s23, %s3300_s18  }
 0x126   : > { %s4234_s8 = sld [smem:[#allocation62_spill]] }
 0x12c   : > { %s2928_s16 = scalar_lea.hbm %s4234_s8, 256 }
 0x12d   : > { %p2929_p13 = scmp.ne.s32.totalorder %s4234_s8, %s2928_s16  ;;  %p2935_p3 = scmp.lt.u32.totalorder %s2928_s16, %s4234_s8 }
 0x12f   : > { %p2931_p0 = pnand %p2929_p13, %p3480_p8 }
 0x131   : > { %p2932_p1 = pneg %p2931_p0 }
 0x133   : > { %p2937_p2 = pnand %p2935_p3, %p2932_p1 }
 0x135   : > { %2940 = shalt.err (!%p2937_p2)
}
 0x136   : > { %s2941_s19 = scalar_lea.vmem %s580_s27, 256  ;;  %p2949_p4 = scmp.lt.s32.totalorder %s580_s27, %s580_s27 }
 0x137   : > { %p2942_p5 = scmp.ne.s32.totalorder %s580_s27, %s2941_s19  ;;  %p2950_p10 = scmp.lt.s32.totalorder %s2941_s19, %s2941_s19 }
 0x139   : > { %p2944_p7 = pnand %p2942_p5, %p3480_p8  ;;  %p2951_p11 = por %p2950_p10, %p2949_p4 }
 0x13b   : > { %p2945_p9 = pneg %p2944_p7 }
 0x13d   : > { %p2952_p12 = pnand %p2951_p11, %p2945_p9 }
 0x13f   : > { %2955 = shalt.err (!%p2952_p12)
}
 0x140   : > { %2479 = dma.hbm_to_vmem [thread:$0]  (!%p3464_p6), %s4234_s8, 256, %s580_s27, [#allocation16], %s3299_s23, %s3299_s23, %s3300_s18  }
 0x141   : > { %s3309_s21 = smov [#allocation20]   ;;  %s3310_s0 = smov [#allocation23]  }
 0x142   : > { %s604_s29 = sshll.u32 %s3309_s21, 4  ;;  %s625_s20 = sshll.u32 %s3310_s0, 4  ;;  %s605_s29 = int_to_ptr.vmem [resolvable:$true] %s604_s29  ;;  %s626_s20 = int_to_ptr.vmem [resolvable:$true] %s625_s20 }
 0x143   : > { %s2956_s28 = scalar_lea.hbm %s4173_s10, 16 }
 0x144   : > { %p2957_p13 = scmp.ne.s32.totalorder %s4173_s10, %s2956_s28  ;;  %p2963_p3 = scmp.lt.u32.totalorder %s2956_s28, %s4173_s10 }
 0x146   : > { %p2959_p0 = pnand %p2957_p13, %p3480_p8 }
 0x148   : > { %p2960_p1 = pneg %p2959_p0 }
 0x14a   : > { %p2965_p2 = pnand %p2963_p3, %p2960_p1 }
 0x14c   : > { %2968 = shalt.err (!%p2965_p2)
}
 0x14d   : > { %s2969_s27 = scalar_lea.vmem %s605_s29, 16  ;;  %s2976_s22 = scalar_lea.vmem %s605_s29, 32 }
 0x14e   : > { %p2970_p5 = scmp.ne.s32.totalorder %s605_s29, %s2969_s27  ;;  %p2977_p4 = scmp.lt.s32.totalorder %s605_s29, %s605_s29 }
 0x14f   : > { %p2978_p10 = scmp.lt.s32.totalorder %s2976_s22, %s2969_s27 }
 0x150   : > { %p2972_p7 = pnand %p2970_p5, %p3480_p8 }
 0x151   : > { %p2979_p11 = por %p2978_p10, %p2977_p4 }
 0x152   : > { %p2973_p9 = pneg %p2972_p7 }
 0x154   : > { %p2980_p12 = pnand %p2979_p11, %p2973_p9 }
 0x156   : > { %2983 = shalt.err (!%p2980_p12)
}
 0x157   : > { %2485 = dma.hbm_to_vmem [thread:$0]  (!%p3464_p6), %s4173_s10, 16, %s605_s29, [#allocation19]  }
 0x158   : > { %s2984_s28 = scalar_lea.hbm %s4175_s12, 256 }
 0x159   : > { %p2985_p13 = scmp.ne.s32.totalorder %s4175_s12, %s2984_s28  ;;  %p2991_p3 = scmp.lt.u32.totalorder %s2984_s28, %s4175_s12 }
 0x15b   : > { %p2987_p0 = pnand %p2985_p13, %p3480_p8 }
 0x15d   : > { %p2988_p1 = pneg %p2987_p0 }
 0x15f   : > { %p2993_p2 = pnand %p2991_p3, %p2988_p1 }
 0x161   : > { %2996 = shalt.err (!%p2993_p2)
}
 0x162   : > { %s2997_s27 = scalar_lea.vmem %s626_s20, 256  ;;  %p3005_p4 = scmp.lt.s32.totalorder %s626_s20, %s626_s20 }
 0x163   : > { %p2998_p5 = scmp.ne.s32.totalorder %s626_s20, %s2997_s27  ;;  %p3006_p10 = scmp.lt.s32.totalorder %s2997_s27, %s2997_s27 }
 0x165   : > { %p3000_p7 = pnand %p2998_p5, %p3480_p8  ;;  %p3007_p11 = por %p3006_p10, %p3005_p4 }
 0x167   : > { %p3001_p9 = pneg %p3000_p7 }
 0x169   : > { %p3008_p12 = pnand %p3007_p11, %p3001_p9 }
 0x16b   : > { %3011 = shalt.err (!%p3008_p12)
}
 0x16c   : > { %2491 = dma.hbm_to_vmem [thread:$0]  (!%p3464_p6), %s4175_s12, 256, %s626_s20, [#allocation22], %s3299_s23, %s3299_s23, %s3300_s18  }
 0x16d   : > { %s3311_s21 = smov [#allocation26]   ;;  %s3312_s16 = smov [#allocation29]  }
 0x16e   : > { %s649_s0 = sshll.u32 %s3311_s21, 4  ;;  %s674_s2 = sshll.u32 %s3312_s16, 4  ;;  %s650_s0 = int_to_ptr.vmem [resolvable:$true] %s649_s0  ;;  %s675_s2 = int_to_ptr.vmem [resolvable:$true] %s674_s2 }
 0x16f   : > { %s3012_s26 = scalar_lea.hbm %s4177_s14, 512 }
 0x170   : > { %p3013_p13 = scmp.ne.s32.totalorder %s4177_s14, %s3012_s26  ;;  %p3019_p3 = scmp.lt.u32.totalorder %s3012_s26, %s4177_s14 }
 0x172   : > { %p3015_p0 = pnand %p3013_p13, %p3480_p8 }
 0x174   : > { %p3016_p1 = pneg %p3015_p0 }
 0x176   : > { %p3021_p2 = pnand %p3019_p3, %p3016_p1 }
 0x178   : > { %3024 = shalt.err (!%p3021_p2)
}
 0x179   : > { %s3025_s20 = scalar_lea.vmem %s650_s0, 512  ;;  %p3033_p4 = scmp.lt.s32.totalorder %s650_s0, %s650_s0 }
 0x17a   : > { %p3026_p5 = scmp.ne.s32.totalorder %s650_s0, %s3025_s20  ;;  %p3034_p10 = scmp.lt.s32.totalorder %s3025_s20, %s3025_s20 }
 0x17c   : > { %p3028_p7 = pnand %p3026_p5, %p3480_p8  ;;  %p3035_p11 = por %p3034_p10, %p3033_p4 }
 0x17e   : > { %p3029_p9 = pneg %p3028_p7 }
 0x180   : > { %p3036_p12 = pnand %p3035_p11, %p3029_p9 }
 0x182   : > { %3039 = shalt.err (!%p3036_p12)
}
 0x183   : > { %2497 = dma.hbm_to_vmem [thread:$0]  (!%p3464_p6), %s4177_s14, 512, %s650_s0, [#allocation25], %s3299_s23, %s3299_s23, %s3300_s18  }
 0x184   : > { %s4235_s30 = sld [smem:[#allocation63_spill]] }
 0x18a   : > { %s4236_s26 = smov %s4235_s30  ;;  %s3040_s19 = scalar_lea.hbm %s4235_s30, 16 }
 0x18b   : > { %p3041_p13 = scmp.ne.s32.totalorder %s4236_s26, %s3040_s19  ;;  %p3047_p3 = scmp.lt.u32.totalorder %s3040_s19, %s4236_s26 }
 0x18d   : > { %p3043_p0 = pnand %p3041_p13, %p3480_p8 }
 0x18f   : > { %p3044_p1 = pneg %p3043_p0 }
 0x191   : > { %p3049_p2 = pnand %p3047_p3, %p3044_p1 }
 0x193   : > { %3052 = shalt.err (!%p3049_p2)
}
 0x194   : > { %s3053_s22 = scalar_lea.vmem %s675_s2, 16  ;;  %s3060_s23 = scalar_lea.vmem %s675_s2, 32 }
 0x195   : > { %p3054_p5 = scmp.ne.s32.totalorder %s675_s2, %s3053_s22  ;;  %p3061_p4 = scmp.lt.s32.totalorder %s675_s2, %s675_s2 }
 0x196   : > { %p3062_p10 = scmp.lt.s32.totalorder %s3060_s23, %s3053_s22 }
 0x197   : > { %p3056_p7 = pnand %p3054_p5, %p3480_p8 }
 0x198   : > { %p3063_p11 = por %p3062_p10, %p3061_p4 }
 0x199   : > { %p3057_p9 = pneg %p3056_p7 }
 0x19b   : > { %p3064_p12 = pnand %p3063_p11, %p3057_p9 }
 0x19d   : > { %3067 = shalt.err (!%p3064_p12)
}
 0x19e   : > { %2503 = dma.hbm_to_vmem [thread:$0]  (!%p3464_p6), %s4236_s26, 16, %s675_s2, [#allocation28]  }
 0x19f   : > { %s3313_s21 = smov [#allocation30]   ;;  %s4237_s19 = sld [smem:[#allocation64_spill]] }
 0x1a0   : > { %s685_s16 = sshll.u32 %s3313_s21, 4  ;;  %s686_s16 = int_to_ptr.vmem [resolvable:$true] %s685_s16 }
 0x1a5   : > { %s3068_s25 = scalar_lea.hbm %s4237_s19, 16 }
 0x1a6   : > { %p3069_p13 = scmp.ne.s32.totalorder %s4237_s19, %s3068_s25  ;;  %p3075_p3 = scmp.lt.u32.totalorder %s3068_s25, %s4237_s19 }
 0x1a8   : > { %p3071_p0 = pnand %p3069_p13, %p3480_p8 }
 0x1aa   : > { %p3072_p1 = pneg %p3071_p0 }
 0x1ac   : > { %p3077_p2 = pnand %p3075_p3, %p3072_p1 }
 0x1ae   : > { %3080 = shalt.err (!%p3077_p2)
}
 0x1af   : > { %s3081_s2 = scalar_lea.vmem %s686_s16, 16  ;;  %s3088_s23 = scalar_lea.vmem %s686_s16, 32 }
 0x1b0   : > { %p3082_p5 = scmp.ne.s32.totalorder %s686_s16, %s3081_s2  ;;  %p3089_p4 = scmp.lt.s32.totalorder %s686_s16, %s686_s16 }
 0x1b1   : > { %p3090_p10 = scmp.lt.s32.totalorder %s3088_s23, %s3081_s2 }
 0x1b2   : > { %p3084_p7 = pnand %p3082_p5, %p3480_p8 }
 0x1b3   : > { %p3091_p11 = por %p3090_p10, %p3089_p4 }
 0x1b4   : > { %p3085_p9 = pneg %p3084_p7 }
 0x1b6   : > { %p3092_p12 = pnand %p3091_p11, %p3085_p9 }
 0x1b8   : > { %3095 = shalt.err (!%p3092_p12)
}
 0x1b9   : > { %s4238_s21 = sld [smem:[#allocation51_spill]]  ;;  %s4239_s28 = sld [smem:[#allocation50_spill]] }
 0x1ba   : > { %s4240_s30 = sld [smem:[#allocation49_spill]]  ;;  %s4241_s24 = sld [smem:[#allocation48_spill]] }
 0x1bb   : > { %s4242_s25 = sld [smem:[#allocation52_spill]]  ;;  %s4248_s1 = sld [smem:[#allocation54_spill]] }
 0x1bc   : > { %2506 = dma.hbm_to_vmem [thread:$0]  (!%p3464_p6), %s4237_s19, 16, %s686_s16, [#allocation31]  }
 0x1bf   : > { %s2153_s27 = sadd.s32 4294967294, %s4238_s21   ;;  %s3803_s3 = sadd.s32 1, %s4238_s21  }
 0x1c0   : > { %s54_s29 = ssub.s32 %s4238_s21, %s3803_s3  ;;  %s57_s20 = sadd.s32 1, %s4239_s28 }
 0x1c1   : > { %p55_p8 = scmp.eq.s32.totalorder %s54_s29, 0  ;;  %p64_p13 = scmp.ne.s32.totalorder %s4239_s28, %s4240_s30 }
 0x1c2   : > { %p65_p0 = scmp.eq.s32.totalorder %s4238_s21, 0  ;;  %p70_p1 = scmp.ne.s32.totalorder %s4240_s30, %s4241_s24 }
 0x1c3   : > { %s3814_s22 = scalar_select %p55_p8, %s4239_s28, %s57_s20  }
 0x1c4   : > { %p3816_p3 = por %p65_p0, %p64_p13  ;;  %p4244_p2 = scmp.eq.s32.totalorder %s4242_s25, 0 }
 0x1c5   : > { %p456_p5 = scmp.eq.s32.totalorder %s4242_s25, 1  ;;  %p462_p7 = scmp.eq.s32.totalorder %s2153_s27, 1 }
 0x1c6   : > { %p3822_p6 = por %p4244_p2, %p70_p1  ;;  %p2537_p9 = scmp.lt.s32.totalorder %s4238_s21, 2 }
 0x1c7   : > { %s3829_s23 = sand.u32 1, %s4239_s28   ;;  %p3831_p4 = por %p456_p5, %p64_p13 }
 0x1c8   : > { %s4245_s16 = scalar_select %p3822_p6, 1, 0 }
 0x1c9   : > { %s4246_s18 = scalar_select %p3831_p4, 1, 0 }
 0x1ca   : > { %p3835_p10 = por %p462_p7, %p70_p1  ;;  %s2172_s30 = sshll.u32 %s3829_s23, 3 }
 0x1cb   : > { %s2173_s24 = sshll.u32 %s4238_s21, 7  ;;  %s700_s28 = scalar_lea.vmem [#allocation3], %s2172_s30 }
 0x1cc   : > { %s4247_s0 = scalar_select %p3835_p10, 1, 0 }
 0x1cd   : > { %s3844_s25 = scalar_lea.hbm %s4248_s1, %s2173_s24  ;;  %s707_s27 = sshll.u32 %s700_s28, 4  ;;  %s3846_s27 = int_to_ptr.vmem [resolvable:$true] %s707_s27 }
 0x1ce   : > { %p3850_p11 = pnand %p2537_p9, %p3816_p3  ;;  %s697_s6 = scalar_lea.sflag [#allocation4], %s3829_s23 }
 0x1cf   : > { %s3096_s29 = scalar_lea.hbm %s3844_s25, 128  ;;  %s3101_s2 = scalar_lea.hbm %s4248_s1, 256 }
 0x1d0   : > { %p3097_p12 = scmp.ne.s32.totalorder %s3844_s25, %s3096_s29  ;;  %p3098_p8 = pneg %p3850_p11 }
 0x1d1   : > { %p3102_p1 = scmp.lt.u32.totalorder %s3844_s25, %s4248_s1  ;;  %p3103_p3 = scmp.lt.u32.totalorder %s3101_s2, %s3096_s29 }
 0x1d2   : > { %p3099_p13 = pnand %p3098_p8, %p3097_p12  ;;  %p3105_p5 = scmp.lt.u32.totalorder %s3096_s29, %s3844_s25 }
 0x1d3   : > { %p3104_p2 = por %p3103_p3, %p3102_p1 }
 0x1d4   : > { %p3100_p0 = pneg %p3099_p13 }
 0x1d5   : > { %p3106_p7 = por %p3105_p5, %p3104_p2 }
 0x1d7   : > { %p3107_p9 = pnand %p3106_p7, %p3100_p0 }
 0x1d9   : > { %3110 = shalt.err (!%p3107_p9)
}
 0x1da   : > { %s3111_s5 = scalar_lea.vmem %s3846_s27, 128  ;;  %s3314_s30 = smov [#allocation3]  }
 0x1db   : > { %p3112_p12 = scmp.ne.s32.totalorder %s3846_s27, %s3111_s5  ;;  %s3116_s24 = sshll.u32 %s3314_s30, 4  ;;  %s3117_s24 = int_to_ptr.vmem [resolvable:$false] %s3116_s24 }
 0x1dc   : > { %s3118_s20 = scalar_lea.vmem %s3117_s24, 256  ;;  %p3119_p4 = scmp.lt.s32.totalorder %s3846_s27, %s3117_s24 }
 0x1dd   : > { %p3114_p13 = pnand %p3112_p12, %p3098_p8  ;;  %p3120_p1 = scmp.lt.s32.totalorder %s3118_s20, %s3111_s5 }
 0x1df   : > { %p3115_p10 = pneg %p3114_p13  ;;  %p3121_p3 = por %p3120_p1, %p3119_p4 }
 0x1e1   : > { %p3122_p2 = pnand %p3121_p3, %p3115_p10 }
 0x1e3   : > { %3125 = shalt.err (!%p3122_p2)
}
 0x1e4   : > { %2510 = dma.hbm_to_vmem [thread:$0]  (!%p3850_p11), %s3844_s25, 128, %s3846_s27, %s697_s6  }
 0x1e5   : > { %s2174_s29 = sshll.u32 %s4238_s21, 4  ;;  %s717_s2 = scalar_lea.vmem [#allocation6], %s3829_s23 }
 0x1e6   : > { %s724_s28 = sshll.u32 %s717_s2, 4  ;;  %s4250_s7 = sld [smem:[#allocation55_spill]]  ;;  %s725_s28 = int_to_ptr.vmem [resolvable:$true] %s724_s28 }
 0x1e7   : > { %s4251_s5 = sand.u32 1, %s4238_s21  }
 0x1e8   : > { %s715_s20 = scalar_lea.sflag [#allocation7], %s4251_s5 }
 0x1ec   : > { %s3886_s24 = scalar_lea.hbm %s4250_s7, %s2174_s29  ;;  %s3131_s25 = scalar_lea.hbm %s4250_s7, 32 }
 0x1ed   : > { %s3126_s8 = scalar_lea.hbm %s3886_s24, 16  ;;  %p3132_p5 = scmp.lt.u32.totalorder %s3886_s24, %s4250_s7 }
 0x1ee   : > { %p3127_p4 = scmp.ne.s32.totalorder %s3886_s24, %s3126_s8  ;;  %p3133_p7 = scmp.lt.u32.totalorder %s3131_s25, %s3126_s8 }
 0x1ef   : > { %p3135_p12 = scmp.lt.u32.totalorder %s3126_s8, %s3886_s24 }
 0x1f0   : > { %p3129_p10 = pnand %p3127_p4, %p3098_p8  ;;  %p3134_p9 = por %p3133_p7, %p3132_p5 }
 0x1f2   : > { %p3130_p0 = pneg %p3129_p10  ;;  %p3136_p13 = por %p3135_p12, %p3134_p9 }
 0x1f4   : > { %p3137_p1 = pnand %p3136_p13, %p3130_p0 }
 0x1f6   : > { %3140 = shalt.err (!%p3137_p1)
}
 0x1f7   : > { %s3141_s21 = scalar_lea.vmem %s725_s28, 16  ;;  %s3315_s29 = smov [#allocation6]  }
 0x1f8   : > { %p3142_p3 = scmp.ne.s32.totalorder %s725_s28, %s3141_s21  ;;  %s3146_s2 = sshll.u32 %s3315_s29, 4  ;;  %s3147_s2 = int_to_ptr.vmem [resolvable:$false] %s3146_s2 }
 0x1f9   : > { %s3148_s30 = scalar_lea.vmem %s3147_s2, 32  ;;  %p3149_p10 = scmp.lt.s32.totalorder %s725_s28, %s3147_s2 }
 0x1fa   : > { %p3144_p2 = pnand %p3142_p3, %p3098_p8  ;;  %p3150_p6 = scmp.lt.s32.totalorder %s3148_s30, %s3141_s21 }
 0x1fc   : > { %p3145_p4 = pneg %p3144_p2  ;;  %p3151_p5 = por %p3150_p6, %p3149_p10 }
 0x1fe   : > { %p3152_p7 = pnand %p3151_p5, %p3145_p4 }
 0x200   : > { %3155 = shalt.err (!%p3152_p7)
}
 0x201   : > { %2513 = dma.hbm_to_vmem [thread:$0]  (!%p3850_p11), %s3886_s24, 16, %s725_s28, %s715_s20  }
 0x202   : > { %s4252_s8 = sld [smem:[#allocation53_spill]] }
 0x208   : > { %p4253_p0 = scmp.ne.s32.totalorder %s4252_s8, 0 }
 0x209   : > { %s4254_s5 = sld [smem:[#allocation49_spill]] (!%p4253_p0)  ;;  %p4255_p6 = scmp.ne.s32.totalorder (!%p4253_p0), %s4245_s16, 0 }
 0x20a   : > { %733 = sbr.rel (%p4253_p0) target bundleno = 3093 (0xc15), region = 92 }
 0x20f   : > { %s3912_s6 = sand.u32 (!%p4253_p0), 1, %s4254_s5  }
 0x210   : > { %s2176_s23 = sshll.u32 (!%p4253_p0), %s3912_s6, 3  ;;  %s736_s25 = scalar_lea.sflag (!%p4253_p0), [#allocation4], %s3912_s6 }
 0x211   : > { %s3918_s1 = scalar_lea.vmem [#allocation3], %s2176_s23 }
 0x212   : > { %3229 = dma.done.wait (%p4255_p6), %s736_s25, 128  }
 0x213   : > { %3231 = vsyncadd (%p4255_p6), %s736_s25, 4294967168  ;;  %s4256_s4 = sld [smem:[#allocation52_spill]]  ;;  %s747_s20 = scalar_lea.vmem [#allocation6], %s3912_s6 }
 0x219   : > { %s744_s28 = sand.u32 1, %s4256_s4  }
 0x21a   : > { %s745_s24 = scalar_lea.sflag [#allocation7], %s744_s28 }
 0x21b   : > { %3233 = dma.done.wait (%p4255_p6), %s745_s24, 16  }
 0x21c   : > { %3235 = vsyncadd (%p4255_p6), %s745_s24, 4294967280  ;;  %p4257_p11 = scmp.eq.s32.totalorder %s4256_s4, 0 }
 0x21e   : > { %3237 = dma.done.wait (%p4257_p11), [#allocation7], 256   ;;  %p4258_p8 = pmov %p4257_p11 }
 0x220   : > { %3239 = vsyncadd (%p4258_p8), [#allocation7], 4294967040  ;;  %p4259_p9 = pmov %p4258_p8 }
 0x221   : > { %p4260_p12 = pmov %p4258_p8 }
 0x222   : > { %3241 = dma.done.wait (%p4259_p9), [#allocation10], 272  }
 0x223   : > { %3243 = vsyncadd (%p4260_p12), [#allocation10], 4294967024  ;;  %p4261_p13 = pmov %p4258_p8 }
 0x224   : > { %p4262_p1 = pmov %p4258_p8 }
 0x225   : > { %3245 = dma.done.wait (%p4261_p13), [#allocation13], 272  }
 0x226   : > { %3247 = vsyncadd (%p4262_p1), [#allocation13], 4294967024  ;;  %p4263_p3 = pmov %p4262_p1 }
 0x227   : > { %p4264_p2 = pmov %p4262_p1 }
 0x228   : > { %3249 = dma.done.wait (%p4263_p3), [#allocation16], 272  }
 0x229   : > { %3251 = vsyncadd (%p4264_p2), [#allocation16], 4294967024  ;;  %p4265_p4 = pmov %p4262_p1 }
 0x22a   : > { %p4266_p10 = pmov %p4262_p1 }
 0x22b   : > { %3253 = dma.done.wait (%p4265_p4), [#allocation19], 32  }
 0x22c   : > { %3255 = vsyncadd (%p4266_p10), [#allocation19], 4294967264  ;;  %p4267_p5 = pmov %p4262_p1 }
 0x22d   : > { %p4268_p7 = pmov %p4262_p1 }
 0x22e   : > { %3257 = dma.done.wait (%p4267_p5), [#allocation22], 272  }
 0x22f   : > { %3259 = vsyncadd (%p4268_p7), [#allocation22], 4294967024  ;;  %p4269_p0 = pmov %p4262_p1 }
 0x231   : > { %3261 = dma.done.wait (%p4269_p0), [#allocation25], 528   ;;  %p4270_p6 = pmov %p4269_p0 }
 0x232   : > { %p4271_p11 = pmov %p4269_p0 }
 0x233   : > { %3263 = vsyncadd (%p4270_p6), [#allocation25], 4294966768 }
 0x234   : > { %3265 = dma.done.wait (%p4271_p11), [#allocation28], 32   ;;  %p4272_p8 = pmov %p4269_p0 }
 0x235   : > { %p4273_p9 = pmov %p4269_p0 }
 0x236   : > { %3267 = vsyncadd (%p4272_p8), [#allocation28], 4294967264 }
 0x237   : > { %3269 = dma.done.wait (%p4273_p9), [#allocation31], 16   ;;  %p4274_p12 = pmov %p4269_p0 }
 0x238   : > { %v3316_v0 = vmov 0.0   ;;  %vm3317_vm0 = vmmov 0   ;;  %v2614_v1 = vld [vmem:[#allocation11] sm:$0xff]   ;;  %v2615_v2 = vld [vmem:[#allocation8] sm:$0xff]   ;;  %v2617_v4 = vld [vmem:[#allocation8 + $0x8] sm:$0xff]   ;;  %vm901_vm1 = vcmask 261120   ;;  %v1125_v34 = vlaneseq }
 0x239   : > { %3271 = vsyncadd (%p4274_p12), [#allocation31], 4294967280  ;;  %2294 = vmatprep.subr.bf16.mxu1 %v3316_v0  ;;  %2286 = vmatprep.subr.bf16.mxu0 %v3316_v0  ;;  %v2616_v3 = vld [vmem:[#allocation11 + $0x8] sm:$0xff]   ;;  %v2199_v7 = vld [vmem:[#allocation12] ss:$0 sm:$0xff]  ;;  %vm1077_vm2 = vcmask 64512  }
 0x23a   : > { %2298 = vmatprep.mubr.msk.bf16.mxu1 %vm3317_vm0, %v3316_v0  ;;  %2290 = vmatprep.mubr.msk.bf16.mxu0 %vm3317_vm0, %v3316_v0  ;;  %v3975_v5 = vld [vmem:[%s3918_s1] sm:$0xff]  ;;  %s3318_s16 = smov 112   ;;  %s3319_s27 = smov 120   ;;  %v2618_v23 = vld [vmem:[#allocation14] sm:$0xff]   ;;  %v1126_v35 = vshrl.u32 %v1125_v34, 7  ;;  %vm1147_vm3 = vcmask 1043456  }
 0x23b   : > { %2295 = vmatpush3.bf16.msra.mxu1 %v2614_v1  ;;  %2287 = vmatpush3.bf16.msra.mxu0 %v2615_v2  ;;  %v877_v6 = vpack.c.bf16 %v3975_v5, %v3975_v5  ;;  %v2195_v8 = vld [vmem:[#allocation9] ss:$0 sm:$0xff]  ;;  %s3320_s21 = smov 104   ;;  %v1075_v36 = vld [vmem:[%s747_s20] sm:$0x1]  ;;  %s2194_s29 = sshll.u32 %s3912_s6, 5 }
 0x23c   : > { %2296 = vmatprep.subr.bf16.mxu1 %v3316_v0  ;;  %2288 = vmatprep.subr.bf16.mxu0 %v3316_v0  ;;  %v2619_v24 = vld [vmem:[#allocation14 + $0x8] sm:$0xff]   ;;  %v1076_v37 = vmul.f32 1e+09, %v1075_v36  ;;  %v1127_v38 = vsub.s32 0, %v1126_v35  ;;  %v2203_v46 = vld [vmem:[#allocation15] ss:$0 sm:$0xff] }
 0x23d   : > { %s4034_s2 = scalar_lea.vmem [#allocation33], %s2194_s29  ;;  %vm1192_vm4 = vcmask 60416   ;;  %s3321_s30 = smov 8   ;;  %vm1317_vm5 = vcmask 126016   ;;  %vm1439_vm6 = vcmask 191616   ;;  %vm1561_vm7 = vcmask 257216  }
 0x23e   : > { %v1128_v39 = vrot.slane %v1076_v37, %v1127_v38  ;;  %s3322_s8 = smov 16   ;;  %s3323_s5 = smov 24   ;;  %vm1769_vm8 = vcmask 523264  }
 0x23f   : > { %2297 = vmatpush3.bf16.msra.mxu1 %v2616_v3  ;;  %2289 = vmatpush3.bf16.msra.mxu0 %v2617_v4  ;;  %s2249_s25 = sshll.u32 %s4256_s4, 9  ;;  %s1876_s1 = sshll.u32 %s4034_s2, 4  ;;  %s4085_s1 = int_to_ptr.vmem [resolvable:$true] %s1876_s1 }
 0x240   : > { %2310 = vmatprep.subr.bf16.mxu1 %v3316_v0  ;;  %2302 = vmatprep.subr.bf16.mxu0 %v3316_v0  ;;  %s4275_s20 = sld [smem:[#allocation66_spill]]  ;;  %s3156_s29 = scalar_lea.vmem %s4085_s1, 512 }
 0x241   : > { %p3157_p13 = scmp.ne.s32.totalorder %s4085_s1, %s3156_s29  ;;  %p4277_p1 = scmp.ne.s32.totalorder %s4246_s18, 0 }
 0x242   : > { %2299 = vmatmul.mubr.msk.bf16.vlgmr.msra.gmra.mrb[0].mxu1 %vm901_vm1, %v877_v6  ;;  %2291 = vmatmul.mubr.msk.bf16.vlgmr.msra.gmra.mrb[0].mxu0 %vm901_vm1, %v877_v6 }
 0x243   : > { %2312 = vmatprep.mubr.msk.bf16.mxu1 %vm3317_vm0, %v3316_v0  ;;  %2306 = vmatprep.mubr.msk.bf16.mxu0 %vm3317_vm0, %v3316_v0  ;;  %p3158_p3 = pnand %p3157_p13, %p4277_p1 }
 0x244   : > { %2303 = vmatpush3.bf16.msra.mxu0 %v2618_v23 }
 0x245   : > { %2304 = vmatprep.subr.bf16.mxu0 %v3316_v0  ;;  %p3159_p2 = pneg %p3158_p3 }
 0x248   : > { %2305 = vmatpush3.bf16.msra.mxu0 %v2619_v24 }
 0x249   : > { %2316 = vmatprep.subr.bf16.mxu0 %v3316_v0 }
 0x24b   : > { %2307 = vmatmul.mubr.msk.bf16.vlgmr.msra.gmra.mrb[4].mxu0 %vm901_vm1, %v877_v6 }
 0x24c   : > { %2318 = vmatprep.mubr.msk.bf16.mxu0 %vm3317_vm0, %v3316_v0 }
 0x315   : > { %v1002_v9 = vpop.f32.mrb[0].mxu1  ;;  %v939_v12 = vpop.f32.mrb[0].mxu0 }
 0x316   : > { %v1003_v10 = vadd.f32 %v2199_v7, %v1002_v9  ;;  %v2300_v11 = vpop.f32.mrb[1].mxu1  ;;  %v940_v13 = vadd.f32 %v2195_v8, %v939_v12  ;;  %v2292_v15 = vpop.f32.mrb[1].mxu0 }
 0x317   : > { %v1005_v14 = vpop.f32.mrb[2].mxu1  ;;  %v942_v18 = vpop.f32.mrb[2].mxu0 }
 0x318   : > { %v1073_v16 = vpack.c.bf16 %v1003_v10, %v1003_v10  ;;  %v2301_v17 = vpop.f32.mrb[3].mxu1  ;;  %v1071_v19 = vmul.f32 0.35355338, %v940_v13  ;;  %v2293_v20 = vpop.f32.mrb[3].mxu0 }
 0x31a   : > { %1321 = vrot.lane.b32.xlu1 %v1073_v16, %s3318_s16  ;;  %1198 = vrot.lane.b32.xlu0 %v1073_v16, %s3319_s27  ;;  %v1082_v21 = vsel %vm1077_vm2, %v1073_v16, 0  ;;  %v1072_v22 = vpack.c.bf16 %v1071_v19, %v1071_v19 }
 0x31b   : > { %2311 = vmatpush3.bf16.xpose.msra.mxu1 %v1082_v21 }
 0x31c   : > { %2322 = vmatprep.subr.bf16.mxu1 %v3316_v0 }
 0x31e   : > { %1319 = vrot.lane.b32.xlu1 %v1072_v22, %s3318_s16  ;;  %1195 = vrot.lane.b32.xlu0 %v1072_v22, %s3319_s27  ;;  %v1065_v47 = vpop.f32.mrb[4].mxu0 }
 0x31f   : > { %v1066_v48 = vadd.f32 %v2203_v46, %v1065_v47  ;;  %v2308_v49 = vpop.f32.mrb[5].mxu0 }
 0x320   : > { %v1068_v50 = vpop.f32.mrb[6].mxu0 }
 0x321   : > { %v1074_v51 = vpack.c.bf16 %v1066_v48, %v1066_v48  ;;  %v2309_v52 = vpop.f32.mrb[7].mxu0 }
 0x322   : > { %1441 = vrot.lane.b32.xlu1 %v1072_v22, %s3320_s21  ;;  %1443 = vrot.lane.b32.xlu0 %v1073_v16, %s3320_s21 }
 0x323   : > { %2313 = vmatmul.mubr.msk.bf16.vlgmr.msra.gmra.mrb[4].mxu1 %vm1077_vm2, %v1072_v22  ;;  %v1149_v53 = vsel %vm1147_vm3, %v1074_v51, 0 }
 0x324   : > { %2324 = vmatprep.mubr.msk.bf16.mxu1 %vm3317_vm0, %v3316_v0  ;;  %2317 = vmatpush3.bf16.msra.mxu0 %v1149_v53 }
 0x325   : > { %2328 = vmatprep.subr.bf16.mxu0 %v3316_v0 }
 0x38c   : > { %v1199_v25 = vpop.permute.xlu0 %1198  ;;  %v1322_v27 = vpop.permute.xlu1 %1321 }
 0x38d   : > { %v1204_v26 = vsel %vm1077_vm2, %v1199_v25, 0  ;;  %v1327_v29 = vsel %vm1077_vm2, %v1322_v27, 0 }
 0x38e   : > { %2323 = vmatpush3.bf16.xpose.msra.mxu1 %v1204_v26 }
 0x38f   : > { %2334 = vmatprep.subr.bf16.mxu1 %v3316_v0 }
 0x390   : > { %v1196_v28 = vpop.permute.xlu0 %1195  ;;  %v1320_v31 = vpop.permute.xlu1 %1319 }
 0x394   : > { %v1444_v30 = vpop.permute.xlu0 %1443  ;;  %v1442_v33 = vpop.permute.xlu1 %1441 }
 0x395   : > { %2325 = vmatmul.mubr.msk.bf16.vlgmr.msra.gmra.mrb[8].mxu1 %vm1077_vm2, %v1196_v28  ;;  %v1449_v32 = vsel %vm1077_vm2, %v1444_v30, 0 }
 0x396   : > { %2335 = vmatpush3.bf16.xpose.msra.mxu1 %v1327_v29  ;;  %2336 = vmatprep.mubr.msk.bf16.mxu1 %vm3317_vm0, %v3316_v0 }
 0x397   : > { %2346 = vmatprep.subr.bf16.mxu1 %v3316_v0 }
 0x39d   : > { %2337 = vmatmul.mubr.msk.bf16.vlgmr.msra.gmra.mrb[12].mxu1 %vm1077_vm2, %v1320_v31 }
 0x39e   : > { %2347 = vmatpush3.bf16.xpose.msra.mxu1 %v1449_v32  ;;  %2348 = vmatprep.mubr.msk.bf16.mxu1 %vm3317_vm0, %v3316_v0 }
 0x39f   : > { %2358 = vmatprep.subr.bf16.mxu1 %v3316_v0 }
 0x3a5   : > { %2349 = vmatmul.mubr.msk.bf16.vlgmr.msra.gmra.mrb[16].mxu1 %vm1077_vm2, %v1442_v33 }
 0x3a6   : > { %2362 = vmatprep.mubr.msk.bf16.mxu1 %vm3317_vm0, %v3316_v0 }
 0x3f6   : > { %v1118_v40 = vpop.f32.mrb[4].mxu1 }
 0x3f7   : > { %v1130_v41 = vsub.f32 %v1118_v40, %v1128_v39  ;;  %v2314_v42 = vpop.f32.mrb[5].mxu1 }
 0x3f8   : > { %v1121_v43 = vpop.f32.mrb[6].mxu1 }
 0x3f9   : > { %v2315_v44 = vpop.f32.mrb[7].mxu1  ;;  %v1131_v45 = vsel %vm1077_vm2, %v1130_v41, -inf }
 0x3fa   : > { %1132 = vmax.xlane.f32.xlu0 %v1131_v45 }
 0x468   : > { %v1240_v54 = vpop.f32.mrb[8].mxu1 }
 0x469   : > { %v1246_v55 = vsub.f32 %v1240_v54, %v1128_v39  ;;  %v2326_v56 = vpop.f32.mrb[9].mxu1 }
 0x46a   : > { %v1243_v57 = vpop.f32.mrb[10].mxu1 }
 0x46b   : > { %v2327_v58 = vpop.f32.mrb[11].mxu1  ;;  %v1247_v59 = vsel %vm1077_vm2, %v1246_v55, -inf }
 0x46c   : > { %1248 = vmax.xlane.f32.xlu1 %v1247_v59 }
 0x470   : > { %v1363_v60 = vpop.f32.mrb[12].mxu1 }
 0x471   : > { %v1369_v61 = vsub.f32 %v1363_v60, %v1128_v39  ;;  %v2338_v62 = vpop.f32.mrb[13].mxu1 }
 0x472   : > { %v1366_v63 = vpop.f32.mrb[14].mxu1  ;;  %v2620_v62 = vld [vmem:[#allocation17] sm:$0xff]  }
 0x473   : > { %v2339_v1 = vpop.f32.mrb[15].mxu1  ;;  %v1370_v2 = vsel %vm1077_vm2, %v1369_v61, -inf  ;;  %2359 = vmatpush3.bf16.msra.mxu1 %v2620_v62 }
 0x474   : > { %1371 = vmax.xlane.f32.xlu0 %v1370_v2  ;;  %v2621_v1 = vld [vmem:[#allocation17 + $0x8] sm:$0xff]   ;;  %2360 = vmatprep.subr.bf16.mxu1 %v3316_v0 }
 0x477   : > { %2361 = vmatpush3.bf16.msra.mxu1 %v2621_v1 }
 0x478   : > { %v1485_v3 = vpop.f32.mrb[16].mxu1  ;;  %2374 = vmatprep.subr.bf16.mxu1 %v3316_v0 }
 0x479   : > { %v1491_v4 = vsub.f32 %v1485_v3, %v1128_v39  ;;  %v2350_v6 = vpop.f32.mrb[17].mxu1 }
 0x47a   : > { %v1488_v7 = vpop.f32.mrb[18].mxu1 }
 0x47b   : > { %v2351_v8 = vpop.f32.mrb[19].mxu1  ;;  %v1492_v9 = vsel %vm1077_vm2, %v1491_v4, -inf }
 0x47c   : > { %1493 = vmax.xlane.f32.xlu0 %v1492_v9 }
 0x487   : > { %v1133_v10 = vpop.xlane.xlu0 %1132 }
 0x488   : > { %v1134_v11 = vsub.f32 %v1130_v41, %v1133_v10 }
 0x48a   : > { %v1135_v12 = vmul.f32 1.442695, %v1134_v11 }
 0x48c   : > { %2628 = vpow2.f32 %v1135_v12 }
 0x496   : > { %v2629_v13 = vpop.eup %2628 }
 0x497   : > { %v1137_v14 = vsel %vm1077_vm2, %v2629_v13, 0.0 }
 0x498   : > { %1138 = vadd.xlane.f32.xlu1 %v1137_v14 }
 0x4a9   : > { %1262 = vrot.lane.b32.xlu1 %v1074_v51, %s3319_s27  ;;  %s4083_s27 = scalar_lea.hbm %s4275_s20, %s2249_s25 }
 0x4f9   : > { %v1249_v15 = vpop.xlane.xlu1 %1248 }
 0x4fa   : > { %v1250_v16 = vsub.f32 %v1246_v55, %v1249_v15 }
 0x4fc   : > { %v1251_v17 = vmul.f32 1.442695, %v1250_v16  ;;  %v2221_v16 = vld [vmem:[#allocation18] ss:$0 sm:$0xff] }
 0x4fe   : > { %2630 = vpow2.f32 %v1251_v17 }
 0x501   : > { %v1372_v18 = vpop.xlane.xlu0 %1371 }
 0x502   : > { %v1373_v19 = vsub.f32 %v1369_v61, %v1372_v18 }
 0x504   : > { %v1374_v20 = vmul.f32 1.442695, %v1373_v19 }
 0x506   : > { %2632 = vpow2.f32 %v1374_v20 }
 0x508   : > { %v2631_v21 = vpop.eup %2630 }
 0x509   : > { %v1494_v22 = vpop.xlane.xlu0 %1493  ;;  %v1253_v23 = vsel %vm1077_vm2, %v2631_v21, 0.0 }
 0x50a   : > { %v1495_v24 = vsub.f32 %v1491_v4, %v1494_v22  ;;  %1254 = vadd.xlane.f32.xlu0 %v1253_v23 }
 0x50c   : > { %v1496_v25 = vmul.f32 1.442695, %v1495_v24 }
 0x50e   : > { %2634 = vpow2.f32 %v1496_v25 }
 0x510   : > { %v2633_v26 = vpop.eup %2632 }
 0x511   : > { %v1376_v27 = vsel %vm1077_vm2, %v2633_v26, 0.0 }
 0x512   : > { %1377 = vadd.xlane.f32.xlu1 %v1376_v27 }
 0x518   : > { %v2635_v28 = vpop.eup %2634 }
 0x519   : > { %v1498_v29 = vsel %vm1077_vm2, %v2635_v28, 0.0 }
 0x51a   : > { %1499 = vadd.xlane.f32.xlu0 %v1498_v29  ;;  %v2622_v29 = vld [vmem:[#allocation23] sm:$0xff]  }
 0x523   : > { %1506 = vrot.lane.b32.xlu1 %v1074_v51, %s3320_s21  ;;  %s1850_s21 = scalar_lea.sflag [#allocation34], %s3912_s6 }
 0x525   : > { %v1139_v30 = vpop.xlane.xlu1 %1138 }
 0x526   : > { %2636 = vrcp.f32 %v1139_v30  ;;  %v2623_v30 = vld [vmem:[#allocation23 + $0x8] sm:$0xff]  }
 0x529   : > { %v1263_v32 = vpop.permute.xlu1 %1262 }
 0x52a   : > { %v1268_v35 = vsel %vm1147_vm3, %v1263_v32, 0  ;;  %v2625_v32 = vld [vmem:[#allocation26 + $0x8] sm:$0xff]  }
 0x530   : > { %v2637_v31 = vpop.eup %2636  ;;  %1384 = vrot.lane.b32.xlu0 %v1074_v51, %s3318_s16  ;;  %s4276_s16 = smov %s4275_s20 }
 0x531   : > { %v1141_v33 = vmul.f32 %v2637_v31, %v2629_v13  ;;  %v2624_v31 = vld [vmem:[#allocation26] sm:$0xff]  }
 0x533   : > { %1142 = vst.msk [vmem:[%s4034_s2] sm:$0xff] %vm1077_vm2, %v1141_v33  ;;  %v1143_v34 = vpack.c.bf16 %v1141_v33, %v1141_v33 }
 0x535   : > { %2319 = vmatmul.mubr.msk.bf16.vlgmr.msra.gmra.mrb[8].mxu0 %vm1077_vm2, %v1143_v34 }
 0x536   : > { %2329 = vmatpush3.bf16.msra.mxu0 %v1268_v35  ;;  %2330 = vmatprep.mubr.msk.bf16.mxu0 %vm3317_vm0, %v3316_v0 }
 0x537   : > { %2340 = vmatprep.subr.bf16.mxu0 %v3316_v0 }
 0x597   : > { %v1255_v36 = vpop.xlane.xlu0 %1254 }
 0x598   : > { %2638 = vrcp.f32 %v1255_v36  ;;  %v2225_v36 = vld [vmem:[#allocation20] ss:$0 sm:$0xff] }
 0x59f   : > { %v1378_v37 = vpop.xlane.xlu1 %1377 }
 0x5a0   : > { %2640 = vrcp.f32 %v1378_v37 }
 0x5a2   : > { %v2639_v38 = vpop.eup %2638 }
 0x5a3   : > { %v1257_v39 = vmul.f32 %v2639_v38, %v2631_v21  ;;  %v1507_v46 = vpop.permute.xlu1 %1506  ;;  %v2226_v38 = vld [vmem:[#allocation21] ss:$0 sm:$0xff] }
 0x5a4   : > { %v1512_v48 = vsel %vm1147_vm3, %v1507_v46, 0 }
 0x5a5   : > { %2210 = vst.msk [vmem:[%s4034_s2 + $0x8] sm:$0xff] %vm1077_vm2, %v1257_v39  ;;  %v1260_v40 = vpack.c.bf16 %v1257_v39, %v1257_v39 }
 0x5a7   : > { %v1500_v41 = vpop.xlane.xlu0 %1499  ;;  %2331 = vmatmul.mubr.msk.bf16.vlgmr.msra.gmra.mrb[12].mxu0 %vm1077_vm2, %v1260_v40 }
 0x5a8   : > { %2642 = vrcp.f32 %v1500_v41  ;;  %2342 = vmatprep.mubr.msk.bf16.mxu0 %vm3317_vm0, %v3316_v0 }
 0x5aa   : > { %v2641_v42 = vpop.eup %2640 }
 0x5ab   : > { %v1380_v43 = vmul.f32 %v2641_v42, %v2633_v26  ;;  %v1385_v44 = vpop.permute.xlu0 %1384  ;;  %v2626_v42 = vld [vmem:[#allocation26 + $0x10] sm:$0xff]  }
 0x5ac   : > { %v1390_v45 = vsel %vm1147_vm3, %v1385_v44, 0  ;;  %v2227_v44 = vld [vmem:[#allocation24] ss:$0 sm:$0xff] }
 0x5ad   : > { %2214 = vst.msk [vmem:[%s4034_s2 + $0x10] sm:$0xff] %vm1077_vm2, %v1380_v43  ;;  %2341 = vmatpush3.bf16.msra.mxu0 %v1390_v45  ;;  %v1383_v47 = vpack.c.bf16 %v1380_v43, %v1380_v43  ;;  %v2627_v43 = vld [vmem:[#allocation26 + $0x18] sm:$0xff]  }
 0x5ae   : > { %2352 = vmatprep.subr.bf16.mxu0 %v3316_v0 }
 0x5b0   : > { %2343 = vmatmul.mubr.msk.bf16.vlgmr.msra.gmra.mrb[16].mxu0 %vm1077_vm2, %v1383_v47 }
 0x5b1   : > { %2353 = vmatpush3.bf16.msra.mxu0 %v1512_v48  ;;  %2354 = vmatprep.mubr.msk.bf16.mxu0 %vm3317_vm0, %v3316_v0 }
 0x5b2   : > { %v2643_v49 = vpop.eup %2642  ;;  %2366 = vmatprep.subr.bf16.mxu0 %v3316_v0 }
 0x5b3   : > { %v1502_v50 = vmul.f32 %v2643_v49, %v2635_v28 }
 0x5b5   : > { %2218 = vst.msk [vmem:[%s4034_s2 + $0x18] sm:$0xff] %vm1077_vm2, %v1502_v50  ;;  %v1505_v51 = vpack.c.bf16 %v1502_v50, %v1502_v50 }
 0x5b8   : > { %2355 = vmatmul.mubr.msk.bf16.vlgmr.msra.gmra.mrb[20].mxu0 %vm1077_vm2, %v1505_v51 }
 0x5b9   : > { %2370 = vmatprep.mubr.msk.bf16.mxu0 %vm3317_vm0, %v3316_v0  ;;  %2367 = vmatpush3.bf16.msra.mxu0 %v2622_v29 }
 0x5ba   : > { %2368 = vmatprep.subr.bf16.mxu0 %v3316_v0 }
 0x5bd   : > { %2369 = vmatpush3.bf16.msra.mxu0 %v2623_v30 }
 0x608   : > { %v1185_v52 = vpop.f32.mrb[8].mxu0 }
 0x609   : > { %v1191_v53 = vpack.c.bf16 %v1185_v52, %v1185_v52  ;;  %v2320_v54 = vpop.f32.mrb[9].mxu0  ;;  %v2231_v52 = vld [vmem:[#allocation27] ss:$0 sm:$0xff] }
 0x60a   : > { %v1188_v55 = vpop.f32.mrb[10].mxu0 }
 0x60b   : > { %1193 = vst.msk [vmem:[#allocation2] sm:$0xf] %vm1192_vm4, %v1191_v53  ;;  %v2321_v56 = vpop.f32.mrb[11].mxu0 }
 0x67a   : > { %v1304_v57 = vpop.f32.mrb[12].mxu0 }
 0x67b   : > { %v2246_v58 = vpack.c.bf16 %v1304_v57, %v1304_v57  ;;  %v2332_v59 = vpop.f32.mrb[13].mxu0 }
 0x67c   : > { %v1307_v60 = vpop.f32.mrb[14].mxu0 }
 0x67d   : > { %1314 = vrot.lane.b32.xlu1 %v2246_v58, %s3321_s30  ;;  %v2333_v61 = vpop.f32.mrb[15].mxu0 }
 0x683   : > { %v1426_v63 = vpop.f32.mrb[16].mxu0 }
 0x684   : > { %v2247_v2 = vpack.c.bf16 %v1426_v63, %v1426_v63  ;;  %v2344_v3 = vpop.f32.mrb[17].mxu0 }
 0x685   : > { %v1429_v4 = vpop.f32.mrb[18].mxu0 }
 0x686   : > { %1436 = vrot.lane.b32.xlu0 %v2247_v2, %s3322_s8  ;;  %v2345_v6 = vpop.f32.mrb[19].mxu0  ;;  %s3324_s8 = smov [#allocation33]  }
 0x68b   : > { %v1548_v7 = vpop.f32.mrb[20].mxu0 }
 0x68c   : > { %v2248_v8 = vpack.c.bf16 %v1548_v7, %v1548_v7  ;;  %v2356_v9 = vpop.f32.mrb[21].mxu0 }
 0x68d   : > { %v1551_v10 = vpop.f32.mrb[22].mxu0 }
 0x68e   : > { %1558 = vrot.lane.b32.xlu1 %v2248_v8, %s3323_s5  ;;  %v2357_v11 = vpop.f32.mrb[23].mxu0  ;;  %s3160_s5 = sshll.u32 %s3324_s8, 4  ;;  %s3161_s5 = int_to_ptr.vmem [resolvable:$false] %s3160_s5 }
 0x68f   : > { %s3162_s2 = scalar_lea.vmem %s3161_s5, 1024  ;;  %p3163_p4 = scmp.lt.s32.totalorder %s4085_s1, %s3161_s5 }
 0x690   : > { %p3164_p10 = scmp.lt.s32.totalorder %s3162_s2, %s3156_s29 }
 0x692   : > { %p3165_p5 = por %p3164_p10, %p3163_p4 }
 0x694   : > { %p3166_p7 = pnand %p3165_p5, %p3159_p2 }
 0x6ef   : > { %v1315_v12 = vpop.permute.xlu1 %1314 }
 0x6f0   : > { %1318 = vst.msk [vmem:[#allocation2] sm:$0xf] %vm1317_vm5, %v1315_v12 }
 0x6f8   : > { %v1437_v13 = vpop.permute.xlu0 %1436 }
 0x6f9   : > { %1440 = vst.msk [vmem:[#allocation2] sm:$0xf] %vm1439_vm6, %v1437_v13 }
 0x700   : > { %v1559_v14 = vpop.permute.xlu1 %1558 }
 0x701   : > { %1562 = vst.msk [vmem:[#allocation2] sm:$0xf] %vm1561_vm7, %v1559_v14 }
 0x708   : > { %v1563_v15 = vld [vmem:[#allocation2] sm:$0xf] }
 0x709   : > { %2363 = vmatmul.mubr.msk.bf16.vlgmr.msra.gmra.mrb[20].mxu1 %vm901_vm1, %v1563_v15 }
 0x70a   : > { %2382 = vmatprep.mubr.msk.bf16.mxu1 %vm3317_vm0, %v3316_v0  ;;  %2375 = vmatpush3.bf16.msra.mxu1 %v2624_v31 }
 0x70b   : > { %2376 = vmatprep.subr.bf16.mxu1 %v3316_v0 }
 0x70e   : > { %2377 = vmatpush3.bf16.msra.mxu1 %v2625_v32 }
 0x70f   : > { %2378 = vmatprep.subr.bf16.mxu1 %v3316_v0 }
 0x712   : > { %2379 = vmatpush3.bf16.msra.mxu1 %v2626_v42 }
 0x713   : > { %2380 = vmatprep.subr.bf16.mxu1 %v3316_v0 }
 0x716   : > { %2381 = vmatpush3.bf16.msra.mxu1 %v2627_v43 }
 0x7dc   : > { %v1624_v17 = vpop.f32.mrb[20].mxu1 }
 0x7dd   : > { %v1625_v18 = vadd.f32 %v2221_v16, %v1624_v17  ;;  %v2364_v19 = vpop.f32.mrb[21].mxu1 }
 0x7de   : > { %v1627_v20 = vpop.f32.mrb[22].mxu1 }
 0x7df   : > { %v2365_v21 = vpop.f32.mrb[23].mxu1  ;;  %v1630_v22 = vadd.f32 %v1625_v18, %v3975_v5 }
 0x7e1   : > { %v1633_v23 = vsel %vm901_vm1, %v1630_v22, 0.0 }
 0x7e2   : > { %1634 = vadd.xlane.f32.xlu0 %v1633_v23 }
 0x86f   : > { %v1635_v24 = vpop.xlane.xlu0 %1634 }
 0x870   : > { %v1637_v25 = vmul.f32 0.03125, %v1635_v24 }
 0x872   : > { %v1638_v26 = vsub.f32 %v1630_v22, %v1637_v25 }
 0x874   : > { %v1639_v27 = vmul.f32 %v1638_v26, %v1638_v26 }
 0x876   : > { %v1640_v28 = vsel %vm901_vm1, %v1639_v27, 0.0 }
 0x877   : > { %1641 = vadd.xlane.f32.xlu1 %v1640_v28 }
 0x904   : > { %v1642_v5 = vpop.xlane.xlu1 %1641 }
 0x905   : > { %v1643_v33 = vmul.f32 0.03125, %v1642_v5 }
 0x907   : > { %v1644_v34 = vadd.f32 1e-06, %v1643_v33 }
 0x909   : > { %2644 = vrsqrt.f32 %v1644_v34 }
 0x913   : > { %v2645_v35 = vpop.eup %2644 }
 0x914   : > { %v1646_v37 = vmul.f32 %v2645_v35, %v1638_v26 }
 0x916   : > { %v1653_v39 = vmul.f32 %v2225_v36, %v1646_v37 }
 0x918   : > { %v1660_v40 = vadd.f32 %v2226_v38, %v1653_v39 }
 0x91a   : > { %v1661_v41 = vpack.c.bf16 %v1660_v40, %v1660_v40 }
 0x91c   : > { %2371 = vmatmul.mubr.msk.bf16.vlgmr.msra.gmra.mrb[24].mxu0 %vm901_vm1, %v1661_v41 }
 0x9ef   : > { %v1722_v45 = vpop.f32.mrb[24].mxu0 }
 0x9f0   : > { %v1723_v46 = vadd.f32 %v2227_v44, %v1722_v45  ;;  %v2372_v47 = vpop.f32.mrb[25].mxu0 }
 0x9f1   : > { %v1725_v48 = vpop.f32.mrb[26].mxu0 }
 0x9f2   : > { %v1728_v49 = vmax.f32 %v1723_v46, 0.0  ;;  %v2373_v50 = vpop.f32.mrb[27].mxu0 }
 0x9f4   : > { %v1729_v51 = vpack.c.bf16 %v1728_v49, %v1728_v49 }
 0x9f6   : > { %2383 = vmatmul.mubr.msk.bf16.vlgmr.msra.gmra.mrb[24].mxu1 %vm1769_vm8, %v1729_v51 }
 0xac9   : > { %v1807_v53 = vpop.f32.mrb[24].mxu1 }
 0xaca   : > { %v1808_v54 = vadd.f32 %v2231_v52, %v1807_v53  ;;  %v2384_v55 = vpop.f32.mrb[25].mxu1 }
 0xacb   : > { %v1810_v0 = vpop.f32.mrb[26].mxu1 }
 0xacc   : > { %v2385_v56 = vpop.f32.mrb[27].mxu1  ;;  %v1813_v57 = vadd.f32 %v1808_v54, %v1660_v40 }
 0xace   : > { %v1816_v58 = vsel %vm901_vm1, %v1813_v57, 0.0 }
 0xacf   : > { %1817 = vadd.xlane.f32.xlu0 %v1816_v58 }
 0xb5c   : > { %v1818_v59 = vpop.xlane.xlu0 %1817 }
 0xb5d   : > { %v1819_v60 = vmul.f32 0.03125, %v1818_v59 }
 0xb5f   : > { %v1820_v61 = vsub.f32 %v1813_v57, %v1819_v60 }
 0xb61   : > { %v1821_v62 = vmul.f32 %v1820_v61, %v1820_v61 }
 0xb63   : > { %v1822_v63 = vsel %vm901_vm1, %v1821_v62, 0.0 }
 0xb64   : > { %1823 = vadd.xlane.f32.xlu0 %v1822_v63 }
 0xb65   : > { %3169 = shalt.err (!%p3166_p7)
}
 0xb66   : > { %s3170_s25 = scalar_lea.hbm %s4083_s27, 512  ;;  %s3174_s20 = scalar_lea.hbm %s4276_s16, 1024 }
 0xb67   : > { %p3171_p0 = scmp.ne.s32.totalorder %s4083_s27, %s3170_s25  ;;  %p3175_p8 = scmp.lt.u32.totalorder %s4083_s27, %s4276_s16 }
 0xb68   : > { %p3176_p9 = scmp.lt.u32.totalorder %s3174_s20, %s3170_s25  ;;  %p3178_p13 = scmp.lt.u32.totalorder %s3170_s25, %s4083_s27 }
 0xb69   : > { %p3172_p6 = pnand %p3171_p0, %p4277_p1 }
 0xb6a   : > { %p3177_p12 = por %p3176_p9, %p3175_p8 }
 0xb6b   : > { %p3173_p11 = pneg %p3172_p6 }
 0xb6c   : > { %p3179_p3 = por %p3178_p13, %p3177_p12 }
 0xb6e   : > { %p3180_p2 = pnand %p3179_p3, %p3173_p11 }
 0xb70   : > { %3183 = shalt.err (!%p3180_p2)
}
 0xb71   : > { %s3325_s29 = smov 128   ;;  %v2237_v6 = vld [vmem:[#allocation29] ss:$0 sm:$0xff]  ;;  %v2238_v8 = vld [vmem:[#allocation30] ss:$0 sm:$0xff]  ;;  %s2241_s2 = sshll.u32 %s4256_s4, 7 }
 0xb72   : > { %2455 = dma.vmem_to_hbm [thread:$0]  (%p4277_p1), %s4085_s1, 512, %s4083_s27, %s1850_s21, %s3325_s29, %s3325_s29, %s3321_s30  }
 0xb73   : > { %s867_s25 = scalar_lea.vmem [#allocation32], %s2176_s23  ;;  %s4278_s8 = sld [smem:[#allocation65_spill]] }
 0xb74   : > { %s1863_s28 = sshll.u32 %s867_s25, 4  ;;  %s1845_s1 = scalar_lea.sflag [#allocation5], %s3912_s6  ;;  %s4120_s28 = int_to_ptr.vmem [resolvable:$true] %s1863_s28 }
 0xb75   : > { %s3184_s27 = scalar_lea.vmem %s4120_s28, 128  ;;  %s3326_s23 = smov [#allocation32]  }
 0xb76   : > { %p3185_p4 = scmp.ne.s32.totalorder %s4120_s28, %s3184_s27  ;;  %s3188_s4 = sshll.u32 %s3326_s23, 4  ;;  %s3189_s4 = int_to_ptr.vmem [resolvable:$false] %s3188_s4 }
 0xb77   : > { %s3190_s21 = scalar_lea.vmem %s3189_s4, 256  ;;  %p3191_p7 = scmp.lt.s32.totalorder %s4120_s28, %s3189_s4 }
 0xb78   : > { %p3186_p10 = pnand %p3185_p4, %p4277_p1  ;;  %p3192_p0 = scmp.lt.s32.totalorder %s3190_s21, %s3184_s27 }
 0xb79   : > { %s4118_s30 = scalar_lea.hbm %s4278_s8, %s2241_s2 }
 0xb7a   : > { %p3187_p5 = pneg %p3186_p10  ;;  %p3193_p6 = por %p3192_p0, %p3191_p7 }
 0xb7c   : > { %p3194_p11 = pnand %p3193_p6, %p3187_p5 }
 0xbf1   : > { %v1824_v1 = vpop.xlane.xlu0 %1823 }
 0xbf2   : > { %v1825_v2 = vmul.f32 0.03125, %v1824_v1 }
 0xbf4   : > { %v1826_v3 = vadd.f32 1e-06, %v1825_v2 }
 0xbf6   : > { %2646 = vrsqrt.f32 %v1826_v3 }
 0xc00   : > { %v2647_v4 = vpop.eup %2646 }
 0xc01   : > { %v1828_v7 = vmul.f32 %v2647_v4, %v1820_v61 }
 0xc03   : > { %v1835_v9 = vmul.f32 %v2237_v6, %v1828_v7 }
 0xc05   : > { %v1842_v10 = vadd.f32 %v2238_v8, %v1835_v9 }
 0xc07   : > { %1843 = vst.msk [vmem:[%s867_s25] sm:$0xff] %vm901_vm1, %v1842_v10 }
 0xc08   : > { %3197 = shalt.err (!%p3194_p11)
}
 0xc09   : > { %s3198_s6 = scalar_lea.hbm %s4118_s30, 128  ;;  %s3202_s2 = scalar_lea.hbm %s4278_s8, 256 }
 0xc0a   : > { %p3199_p8 = scmp.ne.s32.totalorder %s4118_s30, %s3198_s6  ;;  %p3203_p13 = scmp.lt.u32.totalorder %s4118_s30, %s4278_s8 }
 0xc0b   : > { %p3204_p3 = scmp.lt.u32.totalorder %s3202_s2, %s3198_s6  ;;  %p3206_p4 = scmp.lt.u32.totalorder %s3198_s6, %s4118_s30 }
 0xc0c   : > { %p3200_p9 = pnand %p3199_p8, %p4277_p1 }
 0xc0d   : > { %p3205_p2 = por %p3204_p3, %p3203_p13 }
 0xc0e   : > { %p3201_p12 = pneg %p3200_p9 }
 0xc0f   : > { %p3207_p10 = por %p3206_p4, %p3205_p2 }
 0xc11   : > { %p3208_p5 = pnand %p3207_p10, %p3201_p12 }
 0xc13   : > { %3211 = shalt.err (!%p3208_p5)
}
 0xc14   : > { %2454 = dma.vmem_to_hbm [thread:$0]  (%p4277_p1), %s4120_s28, 128, %s4118_s30, %s1845_s1  }
 0xc15 PF: > { %s4279_s20 = sld [smem:[#allocation48_spill]]  ;;  %s4280_s27 = sld [smem:[#allocation51_spill]] }
 0xc16   : > { %p4281_p7 = scmp.ne.s32.totalorder %s4247_s0, 0 }
 0xc1b   : > { %s1891_s23 = sand.u32 1, %s4279_s20   ;;  %p4282_p0 = scmp.ge.s32.totalorder %s4280_s27, 2 }
 0xc1c   : > { %s1892_s4 = scalar_lea.sflag [#allocation5], %s1891_s23 }
 0xc1d   : > { %p2515_p6 = pnand %p4282_p0, %p4281_p7 }
 0xc1f   : > { %3273 = dma.done.wait (!%p2515_p6), %s1892_s4, 128  }
 0xc20   : > { %3275 = vsyncadd (!%p2515_p6), %s1892_s4, 4294967168  ;;  %s1901_s21 = scalar_lea.sflag [#allocation34], %s1891_s23 }
 0xc21   : > { %3277 = dma.done.wait (!%p2515_p6), %s1901_s21, 512  }
 0xc22   : > { %3279 = vsyncadd (!%p2515_p6), %s1901_s21, 4294966784  ;;  %s4283_s0 = sld [smem:[#allocation49_spill]]  ;;  %s4284_s30 = sld [smem:[#allocation50_spill]] }
 0xc23   : > { %p47_p1 = scmp.ge.s32.totalorder %s3803_s3, 4   ;;  %s4285_s20 = smov %s3814_s22 }
 0xc24   : > { %s4286_s21 = smov %s3803_s3 }
 0xc25   :  { %49 = sbr.rel (!%p47_p1) target bundleno = 31 (0x1f), region = 234 }
 0xc2c   :  { %1906 = vsyncpa [#allocation4], 1 }
 0xc2d   :  { %1908 = vsyncpa [#allocation4 + $0x1], 1 }
 0xc2e   :  { %1909 = vsyncpa [#allocation7], 1 }
 0xc2f   :  { %1911 = vsyncpa [#allocation7 + $0x1], 1 }
 0xc30   :  { %1912 = vsyncpa [#allocation10], 1 }
 0xc31   :  { %1913 = vsyncpa [#allocation13], 1 }
 0xc32   :  { %1914 = vsyncpa [#allocation16], 1 }
 0xc33   :  { %1915 = vsyncpa [#allocation19], 1 }
 0xc34   :  { %1916 = vsyncpa [#allocation22], 1 }
 0xc35   :  { %1917 = vsyncpa [#allocation25], 1 }
 0xc36   :  { %1918 = vsyncpa [#allocation28], 1 }
 0xc37   :  { %1919 = vsyncpa [#allocation31], 1 }
 0xc38   :  { %1920 = vsyncpa [#allocation5], 1 }
 0xc39   :  { %1922 = vsyncpa [#allocation5 + $0x1], 1 }
 0xc3a   :  { %1923 = vsyncpa [#allocation34], 1 }
 0xc3b   :  { %1925 = vsyncpa [#allocation34 + $0x1], 1 }

</bundles_post_ra>
